<compile_context>
chip_gen: v5e
topology: v5e:2x2
jax: 0.10.0
libtpu: 0.0.40
codegen_flags: <defaults>
</compile_context>

<pallas_src>
import functools
import math

import jax
import jax.numpy as jnp
from jax import lax
from jax.experimental import pallas as pl
from jax.experimental.pallas import tpu as pltpu  # noqa: F401  (kept for TPU-specific use)

# --- small synthetic BERT config -------------------------------------------
B, S, H = 2, 8, 128          # batch, sequence, hidden
NH, DH = 4, 32               # heads, head dim (NH * DH == H)
FF = 256                     # intermediate (FFN) size
NUM_LAYERS = 2               # num_bert_layers (small synthetic stand-in)
VOCAB = 64
MAX_POS = 16
EPS = 1e-12                  # BERT LayerNorm eps


# ---------------- fused Pallas kernel ---------------------------------------

def _bert_pool_kernel(
        mask_ref,                       # [B, 1, S] f32 (1 = real token, 0 = pad)
        x_emb_ref,                      # [B*S, H] f32 (embedding sum, pre-LN)
        emb_g_ref, emb_b_ref,           # [1, H]
        wq_ref, wk_ref, wv_ref,         # [L*NH, H, DH] bf16 (per-layer, per-head)
        bq_ref, bk_ref, bv_ref,         # [L*NH, 1, DH] f32
        wo_ref,                         # [L*NH, DH, H] bf16 (output proj, per head)
        bo_ref,                         # [L, 1, H] f32
        ln1_g_ref, ln1_b_ref,           # [L, 1, H]
        wi_ref, bi_ref,                 # [L, H, FF] bf16, [L, 1, FF] f32
        wo2_ref, bo2_ref,               # [L, FF, H] bf16, [L, 1, H]  f32
        ln2_g_ref, ln2_b_ref,           # [L, 1, H]
        out_ref,                        # [B, H] f32 (pooled output)
        *, pooling):

    def ln(x, g, b):                    # LayerNorm in f32
        mu = jnp.mean(x, axis=-1, keepdims=True)
        xc = x - mu
        var = jnp.mean(xc * xc, axis=-1, keepdims=True)
        return xc * lax.rsqrt(var + EPS) * g + b

    def mm(a_f32, w_bf16):              # bf16 MXU matmul, f32 accumulate
        return jnp.dot(a_f32.astype(jnp.bfloat16), w_bf16,
                       preferred_element_type=jnp.float32)

    # --- embedding LayerNorm (once) ---
    x = ln(x_emb_ref[...], emb_g_ref[...], emb_b_ref[...])       # [B*S, H] f32

    # --- attention bias, hoisted out of the layer / head loops ---
    bias = (1.0 - mask_ref[...]) * (-10000.0)                     # [B, 1, S]
    scale = 1.0 / math.sqrt(DH)

    # --- statically unrolled encoder layers; x is the loop carry ---
    for l in range(NUM_LAYERS):
        x_bf = x.astype(jnp.bfloat16)
        attn = jnp.zeros((B * S, H), jnp.float32)
        for h in range(NH):             # weight-packed heads: no lane slicing
            i = l * NH + h
            q = jnp.dot(x_bf, wq_ref[i], preferred_element_type=jnp.float32) + bq_ref[i]
            k = jnp.dot(x_bf, wk_ref[i], preferred_element_type=jnp.float32) + bk_ref[i]
            v = jnp.dot(x_bf, wv_ref[i], preferred_element_type=jnp.float32) + bv_ref[i]
            q3 = q.reshape(B, S, DH).astype(jnp.bfloat16)
            k3 = k.reshape(B, S, DH).astype(jnp.bfloat16)
            v3 = v.reshape(B, S, DH).astype(jnp.bfloat16)
            s = jnp.einsum("bqd,bkd->bqk", q3, k3,
                           preferred_element_type=jnp.float32) * scale + bias
            m = jnp.max(s, axis=-1, keepdims=True)
            p = jnp.exp(s - m)
            denom = jnp.sum(p, axis=-1, keepdims=True)
            p = p * pl.reciprocal(denom, approx=True)             # softmax div on EUP
            ctx = jnp.einsum("bqk,bkd->bqd", p.astype(jnp.bfloat16), v3,
                             preferred_element_type=jnp.float32)  # [B, S, DH]
            attn = attn + jnp.dot(ctx.reshape(B * S, DH).astype(jnp.bfloat16),
                                  wo_ref[i], preferred_element_type=jnp.float32)
        x = ln(attn + bo_ref[l] + x, ln1_g_ref[l], ln1_b_ref[l])

        # --- feed-forward (exact erf GELU, as in HF BERT) ---
        inter = mm(x, wi_ref[l]) + bi_ref[l]
        inter = 0.5 * inter * (1.0 + lax.erf(inter * 0.7071067811865476))
        x = ln(mm(inter, wo2_ref[l]) + bo2_ref[l] + x, ln2_g_ref[l], ln2_b_ref[l])

    # --- pooling (same kernel, no extra store of the final activation) ---
    e = x.reshape(B, S, H)
    if pooling == "cls":
        out_ref[...] = e[:, 0, :]
    elif pooling == "max":
        out_ref[...] = jnp.max(e, axis=1)                         # unmasked .max(dim=1)
    else:
        # BertPool "mean": UNMASKED sum over S, divided by clamp(mask_sum, 1)
        msum = jnp.sum(mask_ref[...], axis=-1)                    # [B, 1]
        inv = pl.reciprocal(jnp.maximum(msum, 1.0), approx=True)
        out_ref[...] = jnp.sum(e, axis=1) * inv


def bert_pool_forward(ids, params, pooling="cls"):
    # attention_mask = (ids > 0).float()   -- exactly as in BertPool.forward
    mask = (ids > 0).astype(jnp.float32)                          # [B, S]

    # BERT embeddings: table lookups are plain-JAX glue; LayerNorm is in-kernel.
    x_emb = (params["word_emb"][ids]
             + params["pos_emb"][jnp.arange(S)][None, :, :]
             + params["tok_emb"][0][None, None, :]).reshape(B * S, H)

    # One-time wrapper-side weight packing: fold the head split/merge into the
    # parameter layout so the kernel never lane-slices or concatenates.
    L = NUM_LAYERS
    wqkv, bqkv = params["wqkv"], params["bqkv"]                   # (L,H,3H) bf16, (L,1,3H) f32

    def split_w(w):     # (L, H, H) -> (L*NH, H, DH), head-major
        return w.reshape(L, H, NH, DH).transpose(0, 2, 1, 3).reshape(L * NH, H, DH)

    def split_b(b):     # (L, 1, H) -> (L*NH, 1, DH)
        return b.reshape(L, 1, NH, DH).transpose(0, 2, 1, 3).reshape(L * NH, 1, DH)

    wq = split_w(wqkv[:, :, 0 * H:1 * H])
    wk = split_w(wqkv[:, :, 1 * H:2 * H])
    wv = split_w(wqkv[:, :, 2 * H:3 * H])
    bq = split_b(bqkv[:, :, 0 * H:1 * H])
    bk = split_b(bqkv[:, :, 1 * H:2 * H])
    bv = split_b(bqkv[:, :, 2 * H:3 * H])
    woh = params["wo"].reshape(L, NH, DH, H).reshape(L * NH, DH, H)   # bf16

    kernel = functools.partial(_bert_pool_kernel, pooling=pooling)
    # Single grid step: all arrays (≈0.6 MiB total) live as full VMEM blocks.
    return pl.pallas_call(
        kernel,
        out_shape=jax.ShapeDtypeStruct((B, H), jnp.float32),
    )(mask.reshape(B, 1, S), x_emb,
      params["emb_ln_g"], params["emb_ln_b"],
      wq, wk, wv, bq, bk, bv,
      woh, params["bo"],
      params["ln1_g"], params["ln1_b"],
      params["wi"], params["bi"], params["wo2"], params["bo2"],
      params["ln2_g"], params["ln2_b"])


# ---------------- synthetic parameters ---------------------------------------

def init_params(key):
    def normal(k, shape, scale=0.02):
        return scale * jax.random.normal(k, shape, dtype=jnp.float32)

    keys = jax.random.split(key, 3 + NUM_LAYERS)
    names = ("wqkv", "bqkv", "wo", "bo", "ln1_g", "ln1_b",
             "wi", "bi", "wo2", "bo2", "ln2_g", "ln2_b")
    stacks = {n: [] for n in names}
    for l in range(NUM_LAYERS):
        lk = jax.random.split(keys[3 + l], 12)
        wq, wk, wv = normal(lk[0], (H, H)), normal(lk[1], (H, H)), normal(lk[2], (H, H))
        stacks["wqkv"].append(jnp.concatenate([wq, wk, wv], 1).astype(jnp.bfloat16))
        stacks["bqkv"].append(normal(lk[3], (1, 3 * H)))
        stacks["wo"].append(normal(lk[4], (H, H)).astype(jnp.bfloat16))
        stacks["bo"].append(normal(lk[5], (1, H)))
        stacks["ln1_g"].append(1.0 + normal(lk[6], (1, H)))
        stacks["ln1_b"].append(normal(lk[7], (1, H)))
        stacks["wi"].append(normal(lk[8], (H, FF)).astype(jnp.bfloat16))
        stacks["bi"].append(normal(lk[9], (1, FF)))
        stacks["wo2"].append(normal(lk[10], (FF, H)).astype(jnp.bfloat16))
        stacks["bo2"].append(normal(lk[11], (1, H)))
        stacks["ln2_g"].append(jnp.ones((1, H), jnp.float32))
        stacks["ln2_b"].append(jnp.zeros((1, H), jnp.float32))

    params = {
        "word_emb": normal(keys[0], (VOCAB, H)),
        "pos_emb": normal(keys[1], (MAX_POS, H)),
        "tok_emb": normal(keys[2], (2, H)),
        "emb_ln_g": jnp.ones((1, H), jnp.float32),
        "emb_ln_b": jnp.zeros((1, H), jnp.float32),
    }
    params.update({n: jnp.stack(v) for n, v in stacks.items()})
    return params


# ---------------- pure-JAX reference (same bf16 matmul math) ------------------

def bert_pool_reference(ids, params, pooling="cls"):
    mask = (ids > 0).astype(jnp.float32)
    bias = ((1.0 - mask) * -10000.0).reshape(B, 1, 1, S)

    def ln(x, g, b):
        mu = x.mean(-1, keepdims=True)
        xc = x - mu
        var = (xc * xc).mean(-1, keepdims=True)
        return xc * lax.rsqrt(var + EPS) * g + b

    def mm(a, w):
        return jnp.dot(a.astype(jnp.bfloat16), w, preferred_element_type=jnp.float32)

    x = (params["word_emb"][ids] + params["pos_emb"][jnp.arange(S)][None]
         + params["tok_emb"][0][None, None, :]).reshape(B * S, H)
    x = ln(x, params["emb_ln_g"], params["emb_ln_b"])
    for l in range(NUM_LAYERS):
        qkv = mm(x, params["wqkv"][l]) + params["bqkv"][l]
        q, k, v = qkv[:, :H], qkv[:, H:2 * H], qkv[:, 2 * H:]
        sh = lambda t: t.reshape(B, S, NH, DH).transpose(0, 2, 1, 3).astype(jnp.bfloat16)
        s = jnp.einsum("bhqd,bhkd->bhqk", sh(q), sh(k),
                       preferred_element_type=jnp.float32) / math.sqrt(DH) + bias
        p = jax.nn.softmax(s, axis=-1)
        ctx = jnp.einsum("bhqk,bhkd->bhqd", p.astype(jnp.bfloat16), sh(v),
                         preferred_element_type=jnp.float32)
        ctx = ctx.transpose(0, 2, 1, 3).reshape(B * S, H)
        x = ln(mm(ctx, params["wo"][l]) + params["bo"][l] + x,
               params["ln1_g"][l], params["ln1_b"][l])
        inter = mm(x, params["wi"][l]) + params["bi"][l]
        inter = 0.5 * inter * (1.0 + lax.erf(inter * 0.7071067811865476))
        x = ln(mm(inter, params["wo2"][l]) + params["bo2"][l] + x,
               params["ln2_g"][l], params["ln2_b"][l])
    embs = x.reshape(B, S, H)
    if pooling == "cls":
        return embs[:, 0, :]
    if pooling == "max":
        return embs.max(axis=1)
    return embs.sum(axis=1) / jnp.maximum(mask.sum(axis=1, keepdims=True), 1.0)


if __name__ == "__main__":
    key = jax.random.PRNGKey(0)
    pkey, ikey = jax.random.split(key)
    params = init_params(pkey)

    ids = jax.random.randint(ikey, (B, S), 1, VOCAB, dtype=jnp.int32)
    ids = ids.at[1, 5:].set(0)       # padding tokens -> exercises attention_mask

    fwd = jax.jit(bert_pool_forward, static_argnames=("pooling",))
    for pooling in ("cls", "mean", "max"):
        out = jax.block_until_ready(fwd(ids, params, pooling=pooling))
        ref = bert_pool_reference(ids, params, pooling=pooling)
        assert out.shape == (B, H)
        assert bool(jnp.all(jnp.isfinite(out)))
        err = float(jnp.max(jnp.abs(out - ref)))
        assert bool(jnp.allclose(out, ref, atol=2e-2, rtol=2e-2)), (
            f"{pooling}: max abs err {err}")

    print("KERNEL_OK")
</pallas_src>

<mosaic_0001>
module attributes {stable_mosaic.version = 11 : i64} {
  func.func @_bert_pool_kernel(%arg0: memref<2x1x8xf32, #tpu.memory_space<vmem>>, %arg1: memref<16x128xf32, #tpu.memory_space<vmem>>, %arg2: memref<1x128xf32, #tpu.memory_space<vmem>>, %arg3: memref<1x128xf32, #tpu.memory_space<vmem>>, %arg4: memref<8x128x32xbf16, #tpu.memory_space<vmem>>, %arg5: memref<8x128x32xbf16, #tpu.memory_space<vmem>>, %arg6: memref<8x128x32xbf16, #tpu.memory_space<vmem>>, %arg7: memref<8x1x32xf32, #tpu.memory_space<vmem>>, %arg8: memref<8x1x32xf32, #tpu.memory_space<vmem>>, %arg9: memref<8x1x32xf32, #tpu.memory_space<vmem>>, %arg10: memref<8x32x128xbf16, #tpu.memory_space<vmem>>, %arg11: memref<2x1x128xf32, #tpu.memory_space<vmem>>, %arg12: memref<2x1x128xf32, #tpu.memory_space<vmem>>, %arg13: memref<2x1x128xf32, #tpu.memory_space<vmem>>, %arg14: memref<2x128x256xbf16, #tpu.memory_space<vmem>>, %arg15: memref<2x1x256xf32, #tpu.memory_space<vmem>>, %arg16: memref<2x256x128xbf16, #tpu.memory_space<vmem>>, %arg17: memref<2x1x128xf32, #tpu.memory_space<vmem>>, %arg18: memref<2x1x128xf32, #tpu.memory_space<vmem>>, %arg19: memref<2x1x128xf32, #tpu.memory_space<vmem>>, %arg20: memref<2x128xf32, #tpu.memory_space<vmem>>) attributes {dimension_semantics = [], scalar_prefetch = 0 : i64, scratch_operands = 0 : i64, tpu.core_type = #tpu.core_type<tc>} {
    %c0 = arith.constant 0 : index
    %c0_0 = arith.constant 0 : index
    %0 = vector.load %arg1[%c0, %c0_0] : memref<16x128xf32, #tpu.memory_space<vmem>>, vector<16x128xf32>
    %c0_1 = arith.constant 0 : index
    %c0_2 = arith.constant 0 : index
    %1 = vector.load %arg2[%c0_1, %c0_2] : memref<1x128xf32, #tpu.memory_space<vmem>>, vector<1x128xf32>
    %c0_3 = arith.constant 0 : index
    %c0_4 = arith.constant 0 : index
    %2 = vector.load %arg3[%c0_3, %c0_4] : memref<1x128xf32, #tpu.memory_space<vmem>>, vector<1x128xf32>
    %cst = arith.constant dense<0.000000e+00> : vector<16xf32>
    %3 = vector.multi_reduction <add>, %0, %cst [1] : vector<16x128xf32> to vector<16xf32>
    %4 = vector.shape_cast %3 : vector<16xf32> to vector<16x1xf32>
    %cst_5 = arith.constant 1.280000e+02 : f32
    %5 = vector.broadcast %cst_5 : f32 to vector<16x1xf32>
    %6 = arith.divf %4, %5 : vector<16x1xf32>
    %7 = vector.broadcast %6 : vector<16x1xf32> to vector<16x128xf32>
    %8 = arith.subf %0, %7 : vector<16x128xf32>
    %9 = arith.mulf %8, %8 : vector<16x128xf32>
    %cst_6 = arith.constant dense<0.000000e+00> : vector<16xf32>
    %10 = vector.multi_reduction <add>, %9, %cst_6 [1] : vector<16x128xf32> to vector<16xf32>
    %11 = vector.shape_cast %10 : vector<16xf32> to vector<16x1xf32>
    %cst_7 = arith.constant 1.280000e+02 : f32
    %12 = vector.broadcast %cst_7 : f32 to vector<16x1xf32>
    %13 = arith.divf %11, %12 : vector<16x1xf32>
    %cst_8 = arith.constant 9.99999996E-13 : f32
    %14 = vector.broadcast %cst_8 : f32 to vector<16x1xf32>
    %15 = arith.addf %13, %14 : vector<16x1xf32>
    %16 = math.rsqrt %15 : vector<16x1xf32>
    %17 = vector.broadcast %16 : vector<16x1xf32> to vector<16x128xf32>
    %18 = arith.mulf %8, %17 : vector<16x128xf32>
    %19 = vector.broadcast %1 : vector<1x128xf32> to vector<16x128xf32>
    %20 = arith.mulf %18, %19 : vector<16x128xf32>
    %21 = vector.broadcast %2 : vector<1x128xf32> to vector<16x128xf32>
    %22 = arith.addf %20, %21 : vector<16x128xf32>
    %c0_9 = arith.constant 0 : index
    %c0_10 = arith.constant 0 : index
    %c0_11 = arith.constant 0 : index
    %23 = vector.load %arg0[%c0_9, %c0_10, %c0_11] : memref<2x1x8xf32, #tpu.memory_space<vmem>>, vector<2x1x8xf32>
    %cst_12 = arith.constant 1.000000e+00 : f32
    %24 = vector.broadcast %cst_12 : f32 to vector<2x1x8xf32>
    %25 = arith.subf %24, %23 : vector<2x1x8xf32>
    %cst_13 = arith.constant -1.000000e+04 : f32
    %26 = vector.broadcast %cst_13 : f32 to vector<2x1x8xf32>
    %27 = arith.mulf %25, %26 : vector<2x1x8xf32>
    %28 = arith.truncf %22 : vector<16x128xf32> to vector<16x128xbf16>
    %cst_14 = arith.constant 0.000000e+00 : f32
    %29 = vector.broadcast %cst_14 : f32 to vector<16x128xf32>
    %c0_15 = arith.constant 0 : index
    %c0_16 = arith.constant 0 : index
    %c0_17 = arith.constant 0 : index
    %30 = vector.load %arg4[%c0_15, %c0_16, %c0_17] : memref<8x128x32xbf16, #tpu.memory_space<vmem>>, vector<1x128x32xbf16>
    %31 = vector.shape_cast %30 : vector<1x128x32xbf16> to vector<128x32xbf16>
    %cst_18 = arith.constant dense<0.000000e+00> : vector<16x32xf32>
    %32 = tpu.matmul %28, %31, %cst_18 {dimension_numbers = #tpu.dot_dimension_numbers<[1], [0], [0], [1], [0, 0, 1, 1], [], []>} : vector<16x128xbf16>, vector<128x32xbf16>, vector<16x32xf32> -> vector<16x32xf32>
    %c0_19 = arith.constant 0 : index
    %c0_20 = arith.constant 0 : index
    %c0_21 = arith.constant 0 : index
    %33 = vector.load %arg7[%c0_19, %c0_20, %c0_21] : memref<8x1x32xf32, #tpu.memory_space<vmem>>, vector<1x1x32xf32>
    %34 = vector.shape_cast %33 : vector<1x1x32xf32> to vector<1x32xf32>
    %35 = vector.broadcast %34 : vector<1x32xf32> to vector<16x32xf32>
    %36 = arith.addf %32, %35 : vector<16x32xf32>
    %c0_22 = arith.constant 0 : index
    %c0_23 = arith.constant 0 : index
    %c0_24 = arith.constant 0 : index
    %37 = vector.load %arg5[%c0_22, %c0_23, %c0_24] : memref<8x128x32xbf16, #tpu.memory_space<vmem>>, vector<1x128x32xbf16>
    %38 = vector.shape_cast %37 : vector<1x128x32xbf16> to vector<128x32xbf16>
    %cst_25 = arith.constant dense<0.000000e+00> : vector<16x32xf32>
    %39 = tpu.matmul %28, %38, %cst_25 {dimension_numbers = #tpu.dot_dimension_numbers<[1], [0], [0], [1], [0, 0, 1, 1], [], []>} : vector<16x128xbf16>, vector<128x32xbf16>, vector<16x32xf32> -> vector<16x32xf32>
    %c0_26 = arith.constant 0 : index
    %c0_27 = arith.constant 0 : index
    %c0_28 = arith.constant 0 : index
    %40 = vector.load %arg8[%c0_26, %c0_27, %c0_28] : memref<8x1x32xf32, #tpu.memory_space<vmem>>, vector<1x1x32xf32>
    %41 = vector.shape_cast %40 : vector<1x1x32xf32> to vector<1x32xf32>
    %42 = vector.broadcast %41 : vector<1x32xf32> to vector<16x32xf32>
    %43 = arith.addf %39, %42 : vector<16x32xf32>
    %c0_29 = arith.constant 0 : index
    %c0_30 = arith.constant 0 : index
    %c0_31 = arith.constant 0 : index
    %44 = vector.load %arg6[%c0_29, %c0_30, %c0_31] : memref<8x128x32xbf16, #tpu.memory_space<vmem>>, vector<1x128x32xbf16>
    %45 = vector.shape_cast %44 : vector<1x128x32xbf16> to vector<128x32xbf16>
    %cst_32 = arith.constant dense<0.000000e+00> : vector<16x32xf32>
    %46 = tpu.matmul %28, %45, %cst_32 {dimension_numbers = #tpu.dot_dimension_numbers<[1], [0], [0], [1], [0, 0, 1, 1], [], []>} : vector<16x128xbf16>, vector<128x32xbf16>, vector<16x32xf32> -> vector<16x32xf32>
    %c0_33 = arith.constant 0 : index
    %c0_34 = arith.constant 0 : index
    %c0_35 = arith.constant 0 : index
    %47 = vector.load %arg9[%c0_33, %c0_34, %c0_35] : memref<8x1x32xf32, #tpu.memory_space<vmem>>, vector<1x1x32xf32>
    %48 = vector.shape_cast %47 : vector<1x1x32xf32> to vector<1x32xf32>
    %49 = vector.broadcast %48 : vector<1x32xf32> to vector<16x32xf32>
    %50 = arith.addf %46, %49 : vector<16x32xf32>
    %51 = vector.shape_cast %36 : vector<16x32xf32> to vector<2x8x32xf32>
    %52 = arith.truncf %51 : vector<2x8x32xf32> to vector<2x8x32xbf16>
    %53 = vector.shape_cast %43 : vector<16x32xf32> to vector<2x8x32xf32>
    %54 = arith.truncf %53 : vector<2x8x32xf32> to vector<2x8x32xbf16>
    %55 = vector.shape_cast %50 : vector<16x32xf32> to vector<2x8x32xf32>
    %56 = arith.truncf %55 : vector<2x8x32xf32> to vector<2x8x32xbf16>
    "tpu.trace_start"() <{level = 10 : i32, message = "bqd,bkd->bqk"}> : () -> ()
    %cst_36 = arith.constant dense<0.000000e+00> : vector<2x8x8xf32>
    %57 = tpu.matmul %52, %54, %cst_36 {dimension_numbers = #tpu.dot_dimension_numbers<[2], [2], [1], [1], [0, 0, 0, 1, 1, 1], [0], [0]>} : vector<2x8x32xbf16>, vector<2x8x32xbf16>, vector<2x8x8xf32> -> vector<2x8x8xf32>
    "tpu.trace_stop"() : () -> ()
    %cst_37 = arith.constant 0.176776692 : f32
    %58 = vector.broadcast %cst_37 : f32 to vector<2x8x8xf32>
    %59 = arith.mulf %57, %58 : vector<2x8x8xf32>
    %60 = vector.broadcast %27 : vector<2x1x8xf32> to vector<2x8x8xf32>
    %61 = arith.addf %59, %60 : vector<2x8x8xf32>
    %cst_38 = arith.constant dense<0xFF800000> : vector<2x8xf32>
    %62 = vector.multi_reduction <maximumf>, %61, %cst_38 [2] : vector<2x8x8xf32> to vector<2x8xf32>
    %63 = vector.shape_cast %62 : vector<2x8xf32> to vector<2x8x1xf32>
    %64 = vector.broadcast %63 : vector<2x8x1xf32> to vector<2x8x8xf32>
    %65 = arith.subf %61, %64 : vector<2x8x8xf32>
    %66 = math.exp %65 : vector<2x8x8xf32>
    %cst_39 = arith.constant dense<0.000000e+00> : vector<2x8xf32>
    %67 = vector.multi_reduction <add>, %66, %cst_39 [2] : vector<2x8x8xf32> to vector<2x8xf32>
    %68 = vector.shape_cast %67 : vector<2x8xf32> to vector<2x8x1xf32>
    %69 = tpu.reciprocal %68 {approx = true} : vector<2x8x1xf32> -> vector<2x8x1xf32>
    %70 = vector.broadcast %69 : vector<2x8x1xf32> to vector<2x8x8xf32>
    %71 = arith.mulf %66, %70 : vector<2x8x8xf32>
    %72 = arith.truncf %71 : vector<2x8x8xf32> to vector<2x8x8xbf16>
    "tpu.trace_start"() <{level = 10 : i32, message = "bqk,bkd->bqd"}> : () -> ()
    %cst_40 = arith.constant dense<0.000000e+00> : vector<2x8x32xf32>
    %73 = tpu.matmul %72, %56, %cst_40 {dimension_numbers = #tpu.dot_dimension_numbers<[2], [1], [1], [2], [0, 0, 0, 1, 1, 2], [0], [0]>} : vector<2x8x8xbf16>, vector<2x8x32xbf16>, vector<2x8x32xf32> -> vector<2x8x32xf32>
    "tpu.trace_stop"() : () -> ()
    %74 = vector.shape_cast %73 : vector<2x8x32xf32> to vector<16x32xf32>
    %75 = arith.truncf %74 : vector<16x32xf32> to vector<16x32xbf16>
    %c0_41 = arith.constant 0 : index
    %c0_42 = arith.constant 0 : index
    %c0_43 = arith.constant 0 : index
    %76 = vector.load %arg10[%c0_41, %c0_42, %c0_43] : memref<8x32x128xbf16, #tpu.memory_space<vmem>>, vector<1x32x128xbf16>
    %77 = vector.shape_cast %76 : vector<1x32x128xbf16> to vector<32x128xbf16>
    %cst_44 = arith.constant dense<0.000000e+00> : vector<16x128xf32>
    %78 = tpu.matmul %75, %77, %cst_44 {dimension_numbers = #tpu.dot_dimension_numbers<[1], [0], [0], [1], [0, 0, 1, 1], [], []>} : vector<16x32xbf16>, vector<32x128xbf16>, vector<16x128xf32> -> vector<16x128xf32>
    %79 = arith.addf %29, %78 : vector<16x128xf32>
    %c1 = arith.constant 1 : index
    %c0_45 = arith.constant 0 : index
    %c0_46 = arith.constant 0 : index
    %80 = vector.load %arg4[%c1, %c0_45, %c0_46] : memref<8x128x32xbf16, #tpu.memory_space<vmem>>, vector<1x128x32xbf16>
    %81 = vector.shape_cast %80 : vector<1x128x32xbf16> to vector<128x32xbf16>
    %cst_47 = arith.constant dense<0.000000e+00> : vector<16x32xf32>
    %82 = tpu.matmul %28, %81, %cst_47 {dimension_numbers = #tpu.dot_dimension_numbers<[1], [0], [0], [1], [0, 0, 1, 1], [], []>} : vector<16x128xbf16>, vector<128x32xbf16>, vector<16x32xf32> -> vector<16x32xf32>
    %c1_48 = arith.constant 1 : index
    %c0_49 = arith.constant 0 : index
    %c0_50 = arith.constant 0 : index
    %83 = vector.load %arg7[%c1_48, %c0_49, %c0_50] : memref<8x1x32xf32, #tpu.memory_space<vmem>>, vector<1x1x32xf32>
    %84 = vector.shape_cast %83 : vector<1x1x32xf32> to vector<1x32xf32>
    %85 = vector.broadcast %84 : vector<1x32xf32> to vector<16x32xf32>
    %86 = arith.addf %82, %85 : vector<16x32xf32>
    %c1_51 = arith.constant 1 : index
    %c0_52 = arith.constant 0 : index
    %c0_53 = arith.constant 0 : index
    %87 = vector.load %arg5[%c1_51, %c0_52, %c0_53] : memref<8x128x32xbf16, #tpu.memory_space<vmem>>, vector<1x128x32xbf16>
    %88 = vector.shape_cast %87 : vector<1x128x32xbf16> to vector<128x32xbf16>
    %cst_54 = arith.constant dense<0.000000e+00> : vector<16x32xf32>
    %89 = tpu.matmul %28, %88, %cst_54 {dimension_numbers = #tpu.dot_dimension_numbers<[1], [0], [0], [1], [0, 0, 1, 1], [], []>} : vector<16x128xbf16>, vector<128x32xbf16>, vector<16x32xf32> -> vector<16x32xf32>
    %c1_55 = arith.constant 1 : index
    %c0_56 = arith.constant 0 : index
    %c0_57 = arith.constant 0 : index
    %90 = vector.load %arg8[%c1_55, %c0_56, %c0_57] : memref<8x1x32xf32, #tpu.memory_space<vmem>>, vector<1x1x32xf32>
    %91 = vector.shape_cast %90 : vector<1x1x32xf32> to vector<1x32xf32>
    %92 = vector.broadcast %91 : vector<1x32xf32> to vector<16x32xf32>
    %93 = arith.addf %89, %92 : vector<16x32xf32>
    %c1_58 = arith.constant 1 : index
    %c0_59 = arith.constant 0 : index
    %c0_60 = arith.constant 0 : index
    %94 = vector.load %arg6[%c1_58, %c0_59, %c0_60] : memref<8x128x32xbf16, #tpu.memory_space<vmem>>, vector<1x128x32xbf16>
    %95 = vector.shape_cast %94 : vector<1x128x32xbf16> to vector<128x32xbf16>
    %cst_61 = arith.constant dense<0.000000e+00> : vector<16x32xf32>
    %96 = tpu.matmul %28, %95, %cst_61 {dimension_numbers = #tpu.dot_dimension_numbers<[1], [0], [0], [1], [0, 0, 1, 1], [], []>} : vector<16x128xbf16>, vector<128x32xbf16>, vector<16x32xf32> -> vector<16x32xf32>
    %c1_62 = arith.constant 1 : index
    %c0_63 = arith.constant 0 : index
    %c0_64 = arith.constant 0 : index
    %97 = vector.load %arg9[%c1_62, %c0_63, %c0_64] : memref<8x1x32xf32, #tpu.memory_space<vmem>>, vector<1x1x32xf32>
    %98 = vector.shape_cast %97 : vector<1x1x32xf32> to vector<1x32xf32>
    %99 = vector.broadcast %98 : vector<1x32xf32> to vector<16x32xf32>
    %100 = arith.addf %96, %99 : vector<16x32xf32>
    %101 = vector.shape_cast %86 : vector<16x32xf32> to vector<2x8x32xf32>
    %102 = arith.truncf %101 : vector<2x8x32xf32> to vector<2x8x32xbf16>
    %103 = vector.shape_cast %93 : vector<16x32xf32> to vector<2x8x32xf32>
    %104 = arith.truncf %103 : vector<2x8x32xf32> to vector<2x8x32xbf16>
    %105 = vector.shape_cast %100 : vector<16x32xf32> to vector<2x8x32xf32>
    %106 = arith.truncf %105 : vector<2x8x32xf32> to vector<2x8x32xbf16>
    "tpu.trace_start"() <{level = 10 : i32, message = "bqd,bkd->bqk"}> : () -> ()
    %cst_65 = arith.constant dense<0.000000e+00> : vector<2x8x8xf32>
    %107 = tpu.matmul %102, %104, %cst_65 {dimension_numbers = #tpu.dot_dimension_numbers<[2], [2], [1], [1], [0, 0, 0, 1, 1, 1], [0], [0]>} : vector<2x8x32xbf16>, vector<2x8x32xbf16>, vector<2x8x8xf32> -> vector<2x8x8xf32>
    "tpu.trace_stop"() : () -> ()
    %cst_66 = arith.constant 0.176776692 : f32
    %108 = vector.broadcast %cst_66 : f32 to vector<2x8x8xf32>
    %109 = arith.mulf %107, %108 : vector<2x8x8xf32>
    %110 = vector.broadcast %27 : vector<2x1x8xf32> to vector<2x8x8xf32>
    %111 = arith.addf %109, %110 : vector<2x8x8xf32>
    %cst_67 = arith.constant dense<0xFF800000> : vector<2x8xf32>
    %112 = vector.multi_reduction <maximumf>, %111, %cst_67 [2] : vector<2x8x8xf32> to vector<2x8xf32>
    %113 = vector.shape_cast %112 : vector<2x8xf32> to vector<2x8x1xf32>
    %114 = vector.broadcast %113 : vector<2x8x1xf32> to vector<2x8x8xf32>
    %115 = arith.subf %111, %114 : vector<2x8x8xf32>
    %116 = math.exp %115 : vector<2x8x8xf32>
    %cst_68 = arith.constant dense<0.000000e+00> : vector<2x8xf32>
    %117 = vector.multi_reduction <add>, %116, %cst_68 [2] : vector<2x8x8xf32> to vector<2x8xf32>
    %118 = vector.shape_cast %117 : vector<2x8xf32> to vector<2x8x1xf32>
    %119 = tpu.reciprocal %118 {approx = true} : vector<2x8x1xf32> -> vector<2x8x1xf32>
    %120 = vector.broadcast %119 : vector<2x8x1xf32> to vector<2x8x8xf32>
    %121 = arith.mulf %116, %120 : vector<2x8x8xf32>
    %122 = arith.truncf %121 : vector<2x8x8xf32> to vector<2x8x8xbf16>
    "tpu.trace_start"() <{level = 10 : i32, message = "bqk,bkd->bqd"}> : () -> ()
    %cst_69 = arith.constant dense<0.000000e+00> : vector<2x8x32xf32>
    %123 = tpu.matmul %122, %106, %cst_69 {dimension_numbers = #tpu.dot_dimension_numbers<[2], [1], [1], [2], [0, 0, 0, 1, 1, 2], [0], [0]>} : vector<2x8x8xbf16>, vector<2x8x32xbf16>, vector<2x8x32xf32> -> vector<2x8x32xf32>
    "tpu.trace_stop"() : () -> ()
    %124 = vector.shape_cast %123 : vector<2x8x32xf32> to vector<16x32xf32>
    %125 = arith.truncf %124 : vector<16x32xf32> to vector<16x32xbf16>
    %c1_70 = arith.constant 1 : index
    %c0_71 = arith.constant 0 : index
    %c0_72 = arith.constant 0 : index
    %126 = vector.load %arg10[%c1_70, %c0_71, %c0_72] : memref<8x32x128xbf16, #tpu.memory_space<vmem>>, vector<1x32x128xbf16>
    %127 = vector.shape_cast %126 : vector<1x32x128xbf16> to vector<32x128xbf16>
    %cst_73 = arith.constant dense<0.000000e+00> : vector<16x128xf32>
    %128 = tpu.matmul %125, %127, %cst_73 {dimension_numbers = #tpu.dot_dimension_numbers<[1], [0], [0], [1], [0, 0, 1, 1], [], []>} : vector<16x32xbf16>, vector<32x128xbf16>, vector<16x128xf32> -> vector<16x128xf32>
    %129 = arith.addf %79, %128 : vector<16x128xf32>
    %c2 = arith.constant 2 : index
    %c0_74 = arith.constant 0 : index
    %c0_75 = arith.constant 0 : index
    %130 = vector.load %arg4[%c2, %c0_74, %c0_75] : memref<8x128x32xbf16, #tpu.memory_space<vmem>>, vector<1x128x32xbf16>
    %131 = vector.shape_cast %130 : vector<1x128x32xbf16> to vector<128x32xbf16>
    %cst_76 = arith.constant dense<0.000000e+00> : vector<16x32xf32>
    %132 = tpu.matmul %28, %131, %cst_76 {dimension_numbers = #tpu.dot_dimension_numbers<[1], [0], [0], [1], [0, 0, 1, 1], [], []>} : vector<16x128xbf16>, vector<128x32xbf16>, vector<16x32xf32> -> vector<16x32xf32>
    %c2_77 = arith.constant 2 : index
    %c0_78 = arith.constant 0 : index
    %c0_79 = arith.constant 0 : index
    %133 = vector.load %arg7[%c2_77, %c0_78, %c0_79] : memref<8x1x32xf32, #tpu.memory_space<vmem>>, vector<1x1x32xf32>
    %134 = vector.shape_cast %133 : vector<1x1x32xf32> to vector<1x32xf32>
    %135 = vector.broadcast %134 : vector<1x32xf32> to vector<16x32xf32>
    %136 = arith.addf %132, %135 : vector<16x32xf32>
    %c2_80 = arith.constant 2 : index
    %c0_81 = arith.constant 0 : index
    %c0_82 = arith.constant 0 : index
    %137 = vector.load %arg5[%c2_80, %c0_81, %c0_82] : memref<8x128x32xbf16, #tpu.memory_space<vmem>>, vector<1x128x32xbf16>
    %138 = vector.shape_cast %137 : vector<1x128x32xbf16> to vector<128x32xbf16>
    %cst_83 = arith.constant dense<0.000000e+00> : vector<16x32xf32>
    %139 = tpu.matmul %28, %138, %cst_83 {dimension_numbers = #tpu.dot_dimension_numbers<[1], [0], [0], [1], [0, 0, 1, 1], [], []>} : vector<16x128xbf16>, vector<128x32xbf16>, vector<16x32xf32> -> vector<16x32xf32>
    %c2_84 = arith.constant 2 : index
    %c0_85 = arith.constant 0 : index
    %c0_86 = arith.constant 0 : index
    %140 = vector.load %arg8[%c2_84, %c0_85, %c0_86] : memref<8x1x32xf32, #tpu.memory_space<vmem>>, vector<1x1x32xf32>
    %141 = vector.shape_cast %140 : vector<1x1x32xf32> to vector<1x32xf32>
    %142 = vector.broadcast %141 : vector<1x32xf32> to vector<16x32xf32>
    %143 = arith.addf %139, %142 : vector<16x32xf32>
    %c2_87 = arith.constant 2 : index
    %c0_88 = arith.constant 0 : index
    %c0_89 = arith.constant 0 : index
    %144 = vector.load %arg6[%c2_87, %c0_88, %c0_89] : memref<8x128x32xbf16, #tpu.memory_space<vmem>>, vector<1x128x32xbf16>
    %145 = vector.shape_cast %144 : vector<1x128x32xbf16> to vector<128x32xbf16>
    %cst_90 = arith.constant dense<0.000000e+00> : vector<16x32xf32>
    %146 = tpu.matmul %28, %145, %cst_90 {dimension_numbers = #tpu.dot_dimension_numbers<[1], [0], [0], [1], [0, 0, 1, 1], [], []>} : vector<16x128xbf16>, vector<128x32xbf16>, vector<16x32xf32> -> vector<16x32xf32>
    %c2_91 = arith.constant 2 : index
    %c0_92 = arith.constant 0 : index
    %c0_93 = arith.constant 0 : index
    %147 = vector.load %arg9[%c2_91, %c0_92, %c0_93] : memref<8x1x32xf32, #tpu.memory_space<vmem>>, vector<1x1x32xf32>
    %148 = vector.shape_cast %147 : vector<1x1x32xf32> to vector<1x32xf32>
    %149 = vector.broadcast %148 : vector<1x32xf32> to vector<16x32xf32>
    %150 = arith.addf %146, %149 : vector<16x32xf32>
    %151 = vector.shape_cast %136 : vector<16x32xf32> to vector<2x8x32xf32>
    %152 = arith.truncf %151 : vector<2x8x32xf32> to vector<2x8x32xbf16>
    %153 = vector.shape_cast %143 : vector<16x32xf32> to vector<2x8x32xf32>
    %154 = arith.truncf %153 : vector<2x8x32xf32> to vector<2x8x32xbf16>
    %155 = vector.shape_cast %150 : vector<16x32xf32> to vector<2x8x32xf32>
    %156 = arith.truncf %155 : vector<2x8x32xf32> to vector<2x8x32xbf16>
    "tpu.trace_start"() <{level = 10 : i32, message = "bqd,bkd->bqk"}> : () -> ()
    %cst_94 = arith.constant dense<0.000000e+00> : vector<2x8x8xf32>
    %157 = tpu.matmul %152, %154, %cst_94 {dimension_numbers = #tpu.dot_dimension_numbers<[2], [2], [1], [1], [0, 0, 0, 1, 1, 1], [0], [0]>} : vector<2x8x32xbf16>, vector<2x8x32xbf16>, vector<2x8x8xf32> -> vector<2x8x8xf32>
    "tpu.trace_stop"() : () -> ()
    %cst_95 = arith.constant 0.176776692 : f32
    %158 = vector.broadcast %cst_95 : f32 to vector<2x8x8xf32>
    %159 = arith.mulf %157, %158 : vector<2x8x8xf32>
    %160 = vector.broadcast %27 : vector<2x1x8xf32> to vector<2x8x8xf32>
    %161 = arith.addf %159, %160 : vector<2x8x8xf32>
    %cst_96 = arith.constant dense<0xFF800000> : vector<2x8xf32>
    %162 = vector.multi_reduction <maximumf>, %161, %cst_96 [2] : vector<2x8x8xf32> to vector<2x8xf32>
    %163 = vector.shape_cast %162 : vector<2x8xf32> to vector<2x8x1xf32>
    %164 = vector.broadcast %163 : vector<2x8x1xf32> to vector<2x8x8xf32>
    %165 = arith.subf %161, %164 : vector<2x8x8xf32>
    %166 = math.exp %165 : vector<2x8x8xf32>
    %cst_97 = arith.constant dense<0.000000e+00> : vector<2x8xf32>
    %167 = vector.multi_reduction <add>, %166, %cst_97 [2] : vector<2x8x8xf32> to vector<2x8xf32>
    %168 = vector.shape_cast %167 : vector<2x8xf32> to vector<2x8x1xf32>
    %169 = tpu.reciprocal %168 {approx = true} : vector<2x8x1xf32> -> vector<2x8x1xf32>
    %170 = vector.broadcast %169 : vector<2x8x1xf32> to vector<2x8x8xf32>
    %171 = arith.mulf %166, %170 : vector<2x8x8xf32>
    %172 = arith.truncf %171 : vector<2x8x8xf32> to vector<2x8x8xbf16>
    "tpu.trace_start"() <{level = 10 : i32, message = "bqk,bkd->bqd"}> : () -> ()
    %cst_98 = arith.constant dense<0.000000e+00> : vector<2x8x32xf32>
    %173 = tpu.matmul %172, %156, %cst_98 {dimension_numbers = #tpu.dot_dimension_numbers<[2], [1], [1], [2], [0, 0, 0, 1, 1, 2], [0], [0]>} : vector<2x8x8xbf16>, vector<2x8x32xbf16>, vector<2x8x32xf32> -> vector<2x8x32xf32>
    "tpu.trace_stop"() : () -> ()
    %174 = vector.shape_cast %173 : vector<2x8x32xf32> to vector<16x32xf32>
    %175 = arith.truncf %174 : vector<16x32xf32> to vector<16x32xbf16>
    %c2_99 = arith.constant 2 : index
    %c0_100 = arith.constant 0 : index
    %c0_101 = arith.constant 0 : index
    %176 = vector.load %arg10[%c2_99, %c0_100, %c0_101] : memref<8x32x128xbf16, #tpu.memory_space<vmem>>, vector<1x32x128xbf16>
    %177 = vector.shape_cast %176 : vector<1x32x128xbf16> to vector<32x128xbf16>
    %cst_102 = arith.constant dense<0.000000e+00> : vector<16x128xf32>
    %178 = tpu.matmul %175, %177, %cst_102 {dimension_numbers = #tpu.dot_dimension_numbers<[1], [0], [0], [1], [0, 0, 1, 1], [], []>} : vector<16x32xbf16>, vector<32x128xbf16>, vector<16x128xf32> -> vector<16x128xf32>
    %179 = arith.addf %129, %178 : vector<16x128xf32>
    %c3 = arith.constant 3 : index
    %c0_103 = arith.constant 0 : index
    %c0_104 = arith.constant 0 : index
    %180 = vector.load %arg4[%c3, %c0_103, %c0_104] : memref<8x128x32xbf16, #tpu.memory_space<vmem>>, vector<1x128x32xbf16>
    %181 = vector.shape_cast %180 : vector<1x128x32xbf16> to vector<128x32xbf16>
    %cst_105 = arith.constant dense<0.000000e+00> : vector<16x32xf32>
    %182 = tpu.matmul %28, %181, %cst_105 {dimension_numbers = #tpu.dot_dimension_numbers<[1], [0], [0], [1], [0, 0, 1, 1], [], []>} : vector<16x128xbf16>, vector<128x32xbf16>, vector<16x32xf32> -> vector<16x32xf32>
    %c3_106 = arith.constant 3 : index
    %c0_107 = arith.constant 0 : index
    %c0_108 = arith.constant 0 : index
    %183 = vector.load %arg7[%c3_106, %c0_107, %c0_108] : memref<8x1x32xf32, #tpu.memory_space<vmem>>, vector<1x1x32xf32>
    %184 = vector.shape_cast %183 : vector<1x1x32xf32> to vector<1x32xf32>
    %185 = vector.broadcast %184 : vector<1x32xf32> to vector<16x32xf32>
    %186 = arith.addf %182, %185 : vector<16x32xf32>
    %c3_109 = arith.constant 3 : index
    %c0_110 = arith.constant 0 : index
    %c0_111 = arith.constant 0 : index
    %187 = vector.load %arg5[%c3_109, %c0_110, %c0_111] : memref<8x128x32xbf16, #tpu.memory_space<vmem>>, vector<1x128x32xbf16>
    %188 = vector.shape_cast %187 : vector<1x128x32xbf16> to vector<128x32xbf16>
    %cst_112 = arith.constant dense<0.000000e+00> : vector<16x32xf32>
    %189 = tpu.matmul %28, %188, %cst_112 {dimension_numbers = #tpu.dot_dimension_numbers<[1], [0], [0], [1], [0, 0, 1, 1], [], []>} : vector<16x128xbf16>, vector<128x32xbf16>, vector<16x32xf32> -> vector<16x32xf32>
    %c3_113 = arith.constant 3 : index
    %c0_114 = arith.constant 0 : index
    %c0_115 = arith.constant 0 : index
    %190 = vector.load %arg8[%c3_113, %c0_114, %c0_115] : memref<8x1x32xf32, #tpu.memory_space<vmem>>, vector<1x1x32xf32>
    %191 = vector.shape_cast %190 : vector<1x1x32xf32> to vector<1x32xf32>
    %192 = vector.broadcast %191 : vector<1x32xf32> to vector<16x32xf32>
    %193 = arith.addf %189, %192 : vector<16x32xf32>
    %c3_116 = arith.constant 3 : index
    %c0_117 = arith.constant 0 : index
    %c0_118 = arith.constant 0 : index
    %194 = vector.load %arg6[%c3_116, %c0_117, %c0_118] : memref<8x128x32xbf16, #tpu.memory_space<vmem>>, vector<1x128x32xbf16>
    %195 = vector.shape_cast %194 : vector<1x128x32xbf16> to vector<128x32xbf16>
    %cst_119 = arith.constant dense<0.000000e+00> : vector<16x32xf32>
    %196 = tpu.matmul %28, %195, %cst_119 {dimension_numbers = #tpu.dot_dimension_numbers<[1], [0], [0], [1], [0, 0, 1, 1], [], []>} : vector<16x128xbf16>, vector<128x32xbf16>, vector<16x32xf32> -> vector<16x32xf32>
    %c3_120 = arith.constant 3 : index
    %c0_121 = arith.constant 0 : index
    %c0_122 = arith.constant 0 : index
    %197 = vector.load %arg9[%c3_120, %c0_121, %c0_122] : memref<8x1x32xf32, #tpu.memory_space<vmem>>, vector<1x1x32xf32>
    %198 = vector.shape_cast %197 : vector<1x1x32xf32> to vector<1x32xf32>
    %199 = vector.broadcast %198 : vector<1x32xf32> to vector<16x32xf32>
    %200 = arith.addf %196, %199 : vector<16x32xf32>
    %201 = vector.shape_cast %186 : vector<16x32xf32> to vector<2x8x32xf32>
    %202 = arith.truncf %201 : vector<2x8x32xf32> to vector<2x8x32xbf16>
    %203 = vector.shape_cast %193 : vector<16x32xf32> to vector<2x8x32xf32>
    %204 = arith.truncf %203 : vector<2x8x32xf32> to vector<2x8x32xbf16>
    %205 = vector.shape_cast %200 : vector<16x32xf32> to vector<2x8x32xf32>
    %206 = arith.truncf %205 : vector<2x8x32xf32> to vector<2x8x32xbf16>
    "tpu.trace_start"() <{level = 10 : i32, message = "bqd,bkd->bqk"}> : () -> ()
    %cst_123 = arith.constant dense<0.000000e+00> : vector<2x8x8xf32>
    %207 = tpu.matmul %202, %204, %cst_123 {dimension_numbers = #tpu.dot_dimension_numbers<[2], [2], [1], [1], [0, 0, 0, 1, 1, 1], [0], [0]>} : vector<2x8x32xbf16>, vector<2x8x32xbf16>, vector<2x8x8xf32> -> vector<2x8x8xf32>
    "tpu.trace_stop"() : () -> ()
    %cst_124 = arith.constant 0.176776692 : f32
    %208 = vector.broadcast %cst_124 : f32 to vector<2x8x8xf32>
    %209 = arith.mulf %207, %208 : vector<2x8x8xf32>
    %210 = vector.broadcast %27 : vector<2x1x8xf32> to vector<2x8x8xf32>
    %211 = arith.addf %209, %210 : vector<2x8x8xf32>
    %cst_125 = arith.constant dense<0xFF800000> : vector<2x8xf32>
    %212 = vector.multi_reduction <maximumf>, %211, %cst_125 [2] : vector<2x8x8xf32> to vector<2x8xf32>
    %213 = vector.shape_cast %212 : vector<2x8xf32> to vector<2x8x1xf32>
    %214 = vector.broadcast %213 : vector<2x8x1xf32> to vector<2x8x8xf32>
    %215 = arith.subf %211, %214 : vector<2x8x8xf32>
    %216 = math.exp %215 : vector<2x8x8xf32>
    %cst_126 = arith.constant dense<0.000000e+00> : vector<2x8xf32>
    %217 = vector.multi_reduction <add>, %216, %cst_126 [2] : vector<2x8x8xf32> to vector<2x8xf32>
    %218 = vector.shape_cast %217 : vector<2x8xf32> to vector<2x8x1xf32>
    %219 = tpu.reciprocal %218 {approx = true} : vector<2x8x1xf32> -> vector<2x8x1xf32>
    %220 = vector.broadcast %219 : vector<2x8x1xf32> to vector<2x8x8xf32>
    %221 = arith.mulf %216, %220 : vector<2x8x8xf32>
    %222 = arith.truncf %221 : vector<2x8x8xf32> to vector<2x8x8xbf16>
    "tpu.trace_start"() <{level = 10 : i32, message = "bqk,bkd->bqd"}> : () -> ()
    %cst_127 = arith.constant dense<0.000000e+00> : vector<2x8x32xf32>
    %223 = tpu.matmul %222, %206, %cst_127 {dimension_numbers = #tpu.dot_dimension_numbers<[2], [1], [1], [2], [0, 0, 0, 1, 1, 2], [0], [0]>} : vector<2x8x8xbf16>, vector<2x8x32xbf16>, vector<2x8x32xf32> -> vector<2x8x32xf32>
    "tpu.trace_stop"() : () -> ()
    %224 = vector.shape_cast %223 : vector<2x8x32xf32> to vector<16x32xf32>
    %225 = arith.truncf %224 : vector<16x32xf32> to vector<16x32xbf16>
    %c3_128 = arith.constant 3 : index
    %c0_129 = arith.constant 0 : index
    %c0_130 = arith.constant 0 : index
    %226 = vector.load %arg10[%c3_128, %c0_129, %c0_130] : memref<8x32x128xbf16, #tpu.memory_space<vmem>>, vector<1x32x128xbf16>
    %227 = vector.shape_cast %226 : vector<1x32x128xbf16> to vector<32x128xbf16>
    %cst_131 = arith.constant dense<0.000000e+00> : vector<16x128xf32>
    %228 = tpu.matmul %225, %227, %cst_131 {dimension_numbers = #tpu.dot_dimension_numbers<[1], [0], [0], [1], [0, 0, 1, 1], [], []>} : vector<16x32xbf16>, vector<32x128xbf16>, vector<16x128xf32> -> vector<16x128xf32>
    %229 = arith.addf %179, %228 : vector<16x128xf32>
    %c0_132 = arith.constant 0 : index
    %c0_133 = arith.constant 0 : index
    %c0_134 = arith.constant 0 : index
    %230 = vector.load %arg11[%c0_132, %c0_133, %c0_134] : memref<2x1x128xf32, #tpu.memory_space<vmem>>, vector<1x1x128xf32>
    %231 = vector.shape_cast %230 : vector<1x1x128xf32> to vector<1x128xf32>
    %232 = vector.broadcast %231 : vector<1x128xf32> to vector<16x128xf32>
    %233 = arith.addf %229, %232 : vector<16x128xf32>
    %234 = arith.addf %233, %22 : vector<16x128xf32>
    %c0_135 = arith.constant 0 : index
    %c0_136 = arith.constant 0 : index
    %c0_137 = arith.constant 0 : index
    %235 = vector.load %arg12[%c0_135, %c0_136, %c0_137] : memref<2x1x128xf32, #tpu.memory_space<vmem>>, vector<1x1x128xf32>
    %236 = vector.shape_cast %235 : vector<1x1x128xf32> to vector<1x128xf32>
    %c0_138 = arith.constant 0 : index
    %c0_139 = arith.constant 0 : index
    %c0_140 = arith.constant 0 : index
    %237 = vector.load %arg13[%c0_138, %c0_139, %c0_140] : memref<2x1x128xf32, #tpu.memory_space<vmem>>, vector<1x1x128xf32>
    %238 = vector.shape_cast %237 : vector<1x1x128xf32> to vector<1x128xf32>
    %cst_141 = arith.constant dense<0.000000e+00> : vector<16xf32>
    %239 = vector.multi_reduction <add>, %234, %cst_141 [1] : vector<16x128xf32> to vector<16xf32>
    %240 = vector.shape_cast %239 : vector<16xf32> to vector<16x1xf32>
    %cst_142 = arith.constant 1.280000e+02 : f32
    %241 = vector.broadcast %cst_142 : f32 to vector<16x1xf32>
    %242 = arith.divf %240, %241 : vector<16x1xf32>
    %243 = vector.broadcast %242 : vector<16x1xf32> to vector<16x128xf32>
    %244 = arith.subf %234, %243 : vector<16x128xf32>
    %245 = arith.mulf %244, %244 : vector<16x128xf32>
    %cst_143 = arith.constant dense<0.000000e+00> : vector<16xf32>
    %246 = vector.multi_reduction <add>, %245, %cst_143 [1] : vector<16x128xf32> to vector<16xf32>
    %247 = vector.shape_cast %246 : vector<16xf32> to vector<16x1xf32>
    %cst_144 = arith.constant 1.280000e+02 : f32
    %248 = vector.broadcast %cst_144 : f32 to vector<16x1xf32>
    %249 = arith.divf %247, %248 : vector<16x1xf32>
    %cst_145 = arith.constant 9.99999996E-13 : f32
    %250 = vector.broadcast %cst_145 : f32 to vector<16x1xf32>
    %251 = arith.addf %249, %250 : vector<16x1xf32>
    %252 = math.rsqrt %251 : vector<16x1xf32>
    %253 = vector.broadcast %252 : vector<16x1xf32> to vector<16x128xf32>
    %254 = arith.mulf %244, %253 : vector<16x128xf32>
    %255 = vector.broadcast %236 : vector<1x128xf32> to vector<16x128xf32>
    %256 = arith.mulf %254, %255 : vector<16x128xf32>
    %257 = vector.broadcast %238 : vector<1x128xf32> to vector<16x128xf32>
    %258 = arith.addf %256, %257 : vector<16x128xf32>
    %c0_146 = arith.constant 0 : index
    %c0_147 = arith.constant 0 : index
    %c0_148 = arith.constant 0 : index
    %259 = vector.load %arg14[%c0_146, %c0_147, %c0_148] : memref<2x128x256xbf16, #tpu.memory_space<vmem>>, vector<1x128x256xbf16>
    %260 = vector.shape_cast %259 : vector<1x128x256xbf16> to vector<128x256xbf16>
    %261 = arith.truncf %258 : vector<16x128xf32> to vector<16x128xbf16>
    %cst_149 = arith.constant dense<0.000000e+00> : vector<16x256xf32>
    %262 = tpu.matmul %261, %260, %cst_149 {dimension_numbers = #tpu.dot_dimension_numbers<[1], [0], [0], [1], [0, 0, 1, 1], [], []>} : vector<16x128xbf16>, vector<128x256xbf16>, vector<16x256xf32> -> vector<16x256xf32>
    %c0_150 = arith.constant 0 : index
    %c0_151 = arith.constant 0 : index
    %c0_152 = arith.constant 0 : index
    %263 = vector.load %arg15[%c0_150, %c0_151, %c0_152] : memref<2x1x256xf32, #tpu.memory_space<vmem>>, vector<1x1x256xf32>
    %264 = vector.shape_cast %263 : vector<1x1x256xf32> to vector<1x256xf32>
    %265 = vector.broadcast %264 : vector<1x256xf32> to vector<16x256xf32>
    %266 = arith.addf %262, %265 : vector<16x256xf32>
    %cst_153 = arith.constant 5.000000e-01 : f32
    %267 = vector.broadcast %cst_153 : f32 to vector<16x256xf32>
    %268 = arith.mulf %267, %266 : vector<16x256xf32>
    %cst_154 = arith.constant 0.707106769 : f32
    %269 = vector.broadcast %cst_154 : f32 to vector<16x256xf32>
    %270 = arith.mulf %266, %269 : vector<16x256xf32>
    %271 = math.erf %270 : vector<16x256xf32>
    %cst_155 = arith.constant 1.000000e+00 : f32
    %272 = vector.broadcast %cst_155 : f32 to vector<16x256xf32>
    %273 = arith.addf %272, %271 : vector<16x256xf32>
    %274 = arith.mulf %268, %273 : vector<16x256xf32>
    %c0_156 = arith.constant 0 : index
    %c0_157 = arith.constant 0 : index
    %c0_158 = arith.constant 0 : index
    %275 = vector.load %arg16[%c0_156, %c0_157, %c0_158] : memref<2x256x128xbf16, #tpu.memory_space<vmem>>, vector<1x256x128xbf16>
    %276 = vector.shape_cast %275 : vector<1x256x128xbf16> to vector<256x128xbf16>
    %277 = arith.truncf %274 : vector<16x256xf32> to vector<16x256xbf16>
    %cst_159 = arith.constant dense<0.000000e+00> : vector<16x128xf32>
    %278 = tpu.matmul %277, %276, %cst_159 {dimension_numbers = #tpu.dot_dimension_numbers<[1], [0], [0], [1], [0, 0, 1, 1], [], []>} : vector<16x256xbf16>, vector<256x128xbf16>, vector<16x128xf32> -> vector<16x128xf32>
    %c0_160 = arith.constant 0 : index
    %c0_161 = arith.constant 0 : index
    %c0_162 = arith.constant 0 : index
    %279 = vector.load %arg17[%c0_160, %c0_161, %c0_162] : memref<2x1x128xf32, #tpu.memory_space<vmem>>, vector<1x1x128xf32>
    %280 = vector.shape_cast %279 : vector<1x1x128xf32> to vector<1x128xf32>
    %281 = vector.broadcast %280 : vector<1x128xf32> to vector<16x128xf32>
    %282 = arith.addf %278, %281 : vector<16x128xf32>
    %283 = arith.addf %282, %258 : vector<16x128xf32>
    %c0_163 = arith.constant 0 : index
    %c0_164 = arith.constant 0 : index
    %c0_165 = arith.constant 0 : index
    %284 = vector.load %arg18[%c0_163, %c0_164, %c0_165] : memref<2x1x128xf32, #tpu.memory_space<vmem>>, vector<1x1x128xf32>
    %285 = vector.shape_cast %284 : vector<1x1x128xf32> to vector<1x128xf32>
    %c0_166 = arith.constant 0 : index
    %c0_167 = arith.constant 0 : index
    %c0_168 = arith.constant 0 : index
    %286 = vector.load %arg19[%c0_166, %c0_167, %c0_168] : memref<2x1x128xf32, #tpu.memory_space<vmem>>, vector<1x1x128xf32>
    %287 = vector.shape_cast %286 : vector<1x1x128xf32> to vector<1x128xf32>
    %cst_169 = arith.constant dense<0.000000e+00> : vector<16xf32>
    %288 = vector.multi_reduction <add>, %283, %cst_169 [1] : vector<16x128xf32> to vector<16xf32>
    %289 = vector.shape_cast %288 : vector<16xf32> to vector<16x1xf32>
    %cst_170 = arith.constant 1.280000e+02 : f32
    %290 = vector.broadcast %cst_170 : f32 to vector<16x1xf32>
    %291 = arith.divf %289, %290 : vector<16x1xf32>
    %292 = vector.broadcast %291 : vector<16x1xf32> to vector<16x128xf32>
    %293 = arith.subf %283, %292 : vector<16x128xf32>
    %294 = arith.mulf %293, %293 : vector<16x128xf32>
    %cst_171 = arith.constant dense<0.000000e+00> : vector<16xf32>
    %295 = vector.multi_reduction <add>, %294, %cst_171 [1] : vector<16x128xf32> to vector<16xf32>
    %296 = vector.shape_cast %295 : vector<16xf32> to vector<16x1xf32>
    %cst_172 = arith.constant 1.280000e+02 : f32
    %297 = vector.broadcast %cst_172 : f32 to vector<16x1xf32>
    %298 = arith.divf %296, %297 : vector<16x1xf32>
    %cst_173 = arith.constant 9.99999996E-13 : f32
    %299 = vector.broadcast %cst_173 : f32 to vector<16x1xf32>
    %300 = arith.addf %298, %299 : vector<16x1xf32>
    %301 = math.rsqrt %300 : vector<16x1xf32>
    %302 = vector.broadcast %301 : vector<16x1xf32> to vector<16x128xf32>
    %303 = arith.mulf %293, %302 : vector<16x128xf32>
    %304 = vector.broadcast %285 : vector<1x128xf32> to vector<16x128xf32>
    %305 = arith.mulf %303, %304 : vector<16x128xf32>
    %306 = vector.broadcast %287 : vector<1x128xf32> to vector<16x128xf32>
    %307 = arith.addf %305, %306 : vector<16x128xf32>
    %308 = arith.truncf %307 : vector<16x128xf32> to vector<16x128xbf16>
    %cst_174 = arith.constant 0.000000e+00 : f32
    %309 = vector.broadcast %cst_174 : f32 to vector<16x128xf32>
    %c4 = arith.constant 4 : index
    %c0_175 = arith.constant 0 : index
    %c0_176 = arith.constant 0 : index
    %310 = vector.load %arg4[%c4, %c0_175, %c0_176] : memref<8x128x32xbf16, #tpu.memory_space<vmem>>, vector<1x128x32xbf16>
    %311 = vector.shape_cast %310 : vector<1x128x32xbf16> to vector<128x32xbf16>
    %cst_177 = arith.constant dense<0.000000e+00> : vector<16x32xf32>
    %312 = tpu.matmul %308, %311, %cst_177 {dimension_numbers = #tpu.dot_dimension_numbers<[1], [0], [0], [1], [0, 0, 1, 1], [], []>} : vector<16x128xbf16>, vector<128x32xbf16>, vector<16x32xf32> -> vector<16x32xf32>
    %c4_178 = arith.constant 4 : index
    %c0_179 = arith.constant 0 : index
    %c0_180 = arith.constant 0 : index
    %313 = vector.load %arg7[%c4_178, %c0_179, %c0_180] : memref<8x1x32xf32, #tpu.memory_space<vmem>>, vector<1x1x32xf32>
    %314 = vector.shape_cast %313 : vector<1x1x32xf32> to vector<1x32xf32>
    %315 = vector.broadcast %314 : vector<1x32xf32> to vector<16x32xf32>
    %316 = arith.addf %312, %315 : vector<16x32xf32>
    %c4_181 = arith.constant 4 : index
    %c0_182 = arith.constant 0 : index
    %c0_183 = arith.constant 0 : index
    %317 = vector.load %arg5[%c4_181, %c0_182, %c0_183] : memref<8x128x32xbf16, #tpu.memory_space<vmem>>, vector<1x128x32xbf16>
    %318 = vector.shape_cast %317 : vector<1x128x32xbf16> to vector<128x32xbf16>
    %cst_184 = arith.constant dense<0.000000e+00> : vector<16x32xf32>
    %319 = tpu.matmul %308, %318, %cst_184 {dimension_numbers = #tpu.dot_dimension_numbers<[1], [0], [0], [1], [0, 0, 1, 1], [], []>} : vector<16x128xbf16>, vector<128x32xbf16>, vector<16x32xf32> -> vector<16x32xf32>
    %c4_185 = arith.constant 4 : index
    %c0_186 = arith.constant 0 : index
    %c0_187 = arith.constant 0 : index
    %320 = vector.load %arg8[%c4_185, %c0_186, %c0_187] : memref<8x1x32xf32, #tpu.memory_space<vmem>>, vector<1x1x32xf32>
    %321 = vector.shape_cast %320 : vector<1x1x32xf32> to vector<1x32xf32>
    %322 = vector.broadcast %321 : vector<1x32xf32> to vector<16x32xf32>
    %323 = arith.addf %319, %322 : vector<16x32xf32>
    %c4_188 = arith.constant 4 : index
    %c0_189 = arith.constant 0 : index
    %c0_190 = arith.constant 0 : index
    %324 = vector.load %arg6[%c4_188, %c0_189, %c0_190] : memref<8x128x32xbf16, #tpu.memory_space<vmem>>, vector<1x128x32xbf16>
    %325 = vector.shape_cast %324 : vector<1x128x32xbf16> to vector<128x32xbf16>
    %cst_191 = arith.constant dense<0.000000e+00> : vector<16x32xf32>
    %326 = tpu.matmul %308, %325, %cst_191 {dimension_numbers = #tpu.dot_dimension_numbers<[1], [0], [0], [1], [0, 0, 1, 1], [], []>} : vector<16x128xbf16>, vector<128x32xbf16>, vector<16x32xf32> -> vector<16x32xf32>
    %c4_192 = arith.constant 4 : index
    %c0_193 = arith.constant 0 : index
    %c0_194 = arith.constant 0 : index
    %327 = vector.load %arg9[%c4_192, %c0_193, %c0_194] : memref<8x1x32xf32, #tpu.memory_space<vmem>>, vector<1x1x32xf32>
    %328 = vector.shape_cast %327 : vector<1x1x32xf32> to vector<1x32xf32>
    %329 = vector.broadcast %328 : vector<1x32xf32> to vector<16x32xf32>
    %330 = arith.addf %326, %329 : vector<16x32xf32>
    %331 = vector.shape_cast %316 : vector<16x32xf32> to vector<2x8x32xf32>
    %332 = arith.truncf %331 : vector<2x8x32xf32> to vector<2x8x32xbf16>
    %333 = vector.shape_cast %323 : vector<16x32xf32> to vector<2x8x32xf32>
    %334 = arith.truncf %333 : vector<2x8x32xf32> to vector<2x8x32xbf16>
    %335 = vector.shape_cast %330 : vector<16x32xf32> to vector<2x8x32xf32>
    %336 = arith.truncf %335 : vector<2x8x32xf32> to vector<2x8x32xbf16>
    "tpu.trace_start"() <{level = 10 : i32, message = "bqd,bkd->bqk"}> : () -> ()
    %cst_195 = arith.constant dense<0.000000e+00> : vector<2x8x8xf32>
    %337 = tpu.matmul %332, %334, %cst_195 {dimension_numbers = #tpu.dot_dimension_numbers<[2], [2], [1], [1], [0, 0, 0, 1, 1, 1], [0], [0]>} : vector<2x8x32xbf16>, vector<2x8x32xbf16>, vector<2x8x8xf32> -> vector<2x8x8xf32>
    "tpu.trace_stop"() : () -> ()
    %cst_196 = arith.constant 0.176776692 : f32
    %338 = vector.broadcast %cst_196 : f32 to vector<2x8x8xf32>
    %339 = arith.mulf %337, %338 : vector<2x8x8xf32>
    %340 = vector.broadcast %27 : vector<2x1x8xf32> to vector<2x8x8xf32>
    %341 = arith.addf %339, %340 : vector<2x8x8xf32>
    %cst_197 = arith.constant dense<0xFF800000> : vector<2x8xf32>
    %342 = vector.multi_reduction <maximumf>, %341, %cst_197 [2] : vector<2x8x8xf32> to vector<2x8xf32>
    %343 = vector.shape_cast %342 : vector<2x8xf32> to vector<2x8x1xf32>
    %344 = vector.broadcast %343 : vector<2x8x1xf32> to vector<2x8x8xf32>
    %345 = arith.subf %341, %344 : vector<2x8x8xf32>
    %346 = math.exp %345 : vector<2x8x8xf32>
    %cst_198 = arith.constant dense<0.000000e+00> : vector<2x8xf32>
    %347 = vector.multi_reduction <add>, %346, %cst_198 [2] : vector<2x8x8xf32> to vector<2x8xf32>
    %348 = vector.shape_cast %347 : vector<2x8xf32> to vector<2x8x1xf32>
    %349 = tpu.reciprocal %348 {approx = true} : vector<2x8x1xf32> -> vector<2x8x1xf32>
    %350 = vector.broadcast %349 : vector<2x8x1xf32> to vector<2x8x8xf32>
    %351 = arith.mulf %346, %350 : vector<2x8x8xf32>
    %352 = arith.truncf %351 : vector<2x8x8xf32> to vector<2x8x8xbf16>
    "tpu.trace_start"() <{level = 10 : i32, message = "bqk,bkd->bqd"}> : () -> ()
    %cst_199 = arith.constant dense<0.000000e+00> : vector<2x8x32xf32>
    %353 = tpu.matmul %352, %336, %cst_199 {dimension_numbers = #tpu.dot_dimension_numbers<[2], [1], [1], [2], [0, 0, 0, 1, 1, 2], [0], [0]>} : vector<2x8x8xbf16>, vector<2x8x32xbf16>, vector<2x8x32xf32> -> vector<2x8x32xf32>
    "tpu.trace_stop"() : () -> ()
    %354 = vector.shape_cast %353 : vector<2x8x32xf32> to vector<16x32xf32>
    %355 = arith.truncf %354 : vector<16x32xf32> to vector<16x32xbf16>
    %c4_200 = arith.constant 4 : index
    %c0_201 = arith.constant 0 : index
    %c0_202 = arith.constant 0 : index
    %356 = vector.load %arg10[%c4_200, %c0_201, %c0_202] : memref<8x32x128xbf16, #tpu.memory_space<vmem>>, vector<1x32x128xbf16>
    %357 = vector.shape_cast %356 : vector<1x32x128xbf16> to vector<32x128xbf16>
    %cst_203 = arith.constant dense<0.000000e+00> : vector<16x128xf32>
    %358 = tpu.matmul %355, %357, %cst_203 {dimension_numbers = #tpu.dot_dimension_numbers<[1], [0], [0], [1], [0, 0, 1, 1], [], []>} : vector<16x32xbf16>, vector<32x128xbf16>, vector<16x128xf32> -> vector<16x128xf32>
    %359 = arith.addf %309, %358 : vector<16x128xf32>
    %c5 = arith.constant 5 : index
    %c0_204 = arith.constant 0 : index
    %c0_205 = arith.constant 0 : index
    %360 = vector.load %arg4[%c5, %c0_204, %c0_205] : memref<8x128x32xbf16, #tpu.memory_space<vmem>>, vector<1x128x32xbf16>
    %361 = vector.shape_cast %360 : vector<1x128x32xbf16> to vector<128x32xbf16>
    %cst_206 = arith.constant dense<0.000000e+00> : vector<16x32xf32>
    %362 = tpu.matmul %308, %361, %cst_206 {dimension_numbers = #tpu.dot_dimension_numbers<[1], [0], [0], [1], [0, 0, 1, 1], [], []>} : vector<16x128xbf16>, vector<128x32xbf16>, vector<16x32xf32> -> vector<16x32xf32>
    %c5_207 = arith.constant 5 : index
    %c0_208 = arith.constant 0 : index
    %c0_209 = arith.constant 0 : index
    %363 = vector.load %arg7[%c5_207, %c0_208, %c0_209] : memref<8x1x32xf32, #tpu.memory_space<vmem>>, vector<1x1x32xf32>
    %364 = vector.shape_cast %363 : vector<1x1x32xf32> to vector<1x32xf32>
    %365 = vector.broadcast %364 : vector<1x32xf32> to vector<16x32xf32>
    %366 = arith.addf %362, %365 : vector<16x32xf32>
    %c5_210 = arith.constant 5 : index
    %c0_211 = arith.constant 0 : index
    %c0_212 = arith.constant 0 : index
    %367 = vector.load %arg5[%c5_210, %c0_211, %c0_212] : memref<8x128x32xbf16, #tpu.memory_space<vmem>>, vector<1x128x32xbf16>
    %368 = vector.shape_cast %367 : vector<1x128x32xbf16> to vector<128x32xbf16>
    %cst_213 = arith.constant dense<0.000000e+00> : vector<16x32xf32>
    %369 = tpu.matmul %308, %368, %cst_213 {dimension_numbers = #tpu.dot_dimension_numbers<[1], [0], [0], [1], [0, 0, 1, 1], [], []>} : vector<16x128xbf16>, vector<128x32xbf16>, vector<16x32xf32> -> vector<16x32xf32>
    %c5_214 = arith.constant 5 : index
    %c0_215 = arith.constant 0 : index
    %c0_216 = arith.constant 0 : index
    %370 = vector.load %arg8[%c5_214, %c0_215, %c0_216] : memref<8x1x32xf32, #tpu.memory_space<vmem>>, vector<1x1x32xf32>
    %371 = vector.shape_cast %370 : vector<1x1x32xf32> to vector<1x32xf32>
    %372 = vector.broadcast %371 : vector<1x32xf32> to vector<16x32xf32>
    %373 = arith.addf %369, %372 : vector<16x32xf32>
    %c5_217 = arith.constant 5 : index
    %c0_218 = arith.constant 0 : index
    %c0_219 = arith.constant 0 : index
    %374 = vector.load %arg6[%c5_217, %c0_218, %c0_219] : memref<8x128x32xbf16, #tpu.memory_space<vmem>>, vector<1x128x32xbf16>
    %375 = vector.shape_cast %374 : vector<1x128x32xbf16> to vector<128x32xbf16>
    %cst_220 = arith.constant dense<0.000000e+00> : vector<16x32xf32>
    %376 = tpu.matmul %308, %375, %cst_220 {dimension_numbers = #tpu.dot_dimension_numbers<[1], [0], [0], [1], [0, 0, 1, 1], [], []>} : vector<16x128xbf16>, vector<128x32xbf16>, vector<16x32xf32> -> vector<16x32xf32>
    %c5_221 = arith.constant 5 : index
    %c0_222 = arith.constant 0 : index
    %c0_223 = arith.constant 0 : index
    %377 = vector.load %arg9[%c5_221, %c0_222, %c0_223] : memref<8x1x32xf32, #tpu.memory_space<vmem>>, vector<1x1x32xf32>
    %378 = vector.shape_cast %377 : vector<1x1x32xf32> to vector<1x32xf32>
    %379 = vector.broadcast %378 : vector<1x32xf32> to vector<16x32xf32>
    %380 = arith.addf %376, %379 : vector<16x32xf32>
    %381 = vector.shape_cast %366 : vector<16x32xf32> to vector<2x8x32xf32>
    %382 = arith.truncf %381 : vector<2x8x32xf32> to vector<2x8x32xbf16>
    %383 = vector.shape_cast %373 : vector<16x32xf32> to vector<2x8x32xf32>
    %384 = arith.truncf %383 : vector<2x8x32xf32> to vector<2x8x32xbf16>
    %385 = vector.shape_cast %380 : vector<16x32xf32> to vector<2x8x32xf32>
    %386 = arith.truncf %385 : vector<2x8x32xf32> to vector<2x8x32xbf16>
    "tpu.trace_start"() <{level = 10 : i32, message = "bqd,bkd->bqk"}> : () -> ()
    %cst_224 = arith.constant dense<0.000000e+00> : vector<2x8x8xf32>
    %387 = tpu.matmul %382, %384, %cst_224 {dimension_numbers = #tpu.dot_dimension_numbers<[2], [2], [1], [1], [0, 0, 0, 1, 1, 1], [0], [0]>} : vector<2x8x32xbf16>, vector<2x8x32xbf16>, vector<2x8x8xf32> -> vector<2x8x8xf32>
    "tpu.trace_stop"() : () -> ()
    %cst_225 = arith.constant 0.176776692 : f32
    %388 = vector.broadcast %cst_225 : f32 to vector<2x8x8xf32>
    %389 = arith.mulf %387, %388 : vector<2x8x8xf32>
    %390 = vector.broadcast %27 : vector<2x1x8xf32> to vector<2x8x8xf32>
    %391 = arith.addf %389, %390 : vector<2x8x8xf32>
    %cst_226 = arith.constant dense<0xFF800000> : vector<2x8xf32>
    %392 = vector.multi_reduction <maximumf>, %391, %cst_226 [2] : vector<2x8x8xf32> to vector<2x8xf32>
    %393 = vector.shape_cast %392 : vector<2x8xf32> to vector<2x8x1xf32>
    %394 = vector.broadcast %393 : vector<2x8x1xf32> to vector<2x8x8xf32>
    %395 = arith.subf %391, %394 : vector<2x8x8xf32>
    %396 = math.exp %395 : vector<2x8x8xf32>
    %cst_227 = arith.constant dense<0.000000e+00> : vector<2x8xf32>
    %397 = vector.multi_reduction <add>, %396, %cst_227 [2] : vector<2x8x8xf32> to vector<2x8xf32>
    %398 = vector.shape_cast %397 : vector<2x8xf32> to vector<2x8x1xf32>
    %399 = tpu.reciprocal %398 {approx = true} : vector<2x8x1xf32> -> vector<2x8x1xf32>
    %400 = vector.broadcast %399 : vector<2x8x1xf32> to vector<2x8x8xf32>
    %401 = arith.mulf %396, %400 : vector<2x8x8xf32>
    %402 = arith.truncf %401 : vector<2x8x8xf32> to vector<2x8x8xbf16>
    "tpu.trace_start"() <{level = 10 : i32, message = "bqk,bkd->bqd"}> : () -> ()
    %cst_228 = arith.constant dense<0.000000e+00> : vector<2x8x32xf32>
    %403 = tpu.matmul %402, %386, %cst_228 {dimension_numbers = #tpu.dot_dimension_numbers<[2], [1], [1], [2], [0, 0, 0, 1, 1, 2], [0], [0]>} : vector<2x8x8xbf16>, vector<2x8x32xbf16>, vector<2x8x32xf32> -> vector<2x8x32xf32>
    "tpu.trace_stop"() : () -> ()
    %404 = vector.shape_cast %403 : vector<2x8x32xf32> to vector<16x32xf32>
    %405 = arith.truncf %404 : vector<16x32xf32> to vector<16x32xbf16>
    %c5_229 = arith.constant 5 : index
    %c0_230 = arith.constant 0 : index
    %c0_231 = arith.constant 0 : index
    %406 = vector.load %arg10[%c5_229, %c0_230, %c0_231] : memref<8x32x128xbf16, #tpu.memory_space<vmem>>, vector<1x32x128xbf16>
    %407 = vector.shape_cast %406 : vector<1x32x128xbf16> to vector<32x128xbf16>
    %cst_232 = arith.constant dense<0.000000e+00> : vector<16x128xf32>
    %408 = tpu.matmul %405, %407, %cst_232 {dimension_numbers = #tpu.dot_dimension_numbers<[1], [0], [0], [1], [0, 0, 1, 1], [], []>} : vector<16x32xbf16>, vector<32x128xbf16>, vector<16x128xf32> -> vector<16x128xf32>
    %409 = arith.addf %359, %408 : vector<16x128xf32>
    %c6 = arith.constant 6 : index
    %c0_233 = arith.constant 0 : index
    %c0_234 = arith.constant 0 : index
    %410 = vector.load %arg4[%c6, %c0_233, %c0_234] : memref<8x128x32xbf16, #tpu.memory_space<vmem>>, vector<1x128x32xbf16>
    %411 = vector.shape_cast %410 : vector<1x128x32xbf16> to vector<128x32xbf16>
    %cst_235 = arith.constant dense<0.000000e+00> : vector<16x32xf32>
    %412 = tpu.matmul %308, %411, %cst_235 {dimension_numbers = #tpu.dot_dimension_numbers<[1], [0], [0], [1], [0, 0, 1, 1], [], []>} : vector<16x128xbf16>, vector<128x32xbf16>, vector<16x32xf32> -> vector<16x32xf32>
    %c6_236 = arith.constant 6 : index
    %c0_237 = arith.constant 0 : index
    %c0_238 = arith.constant 0 : index
    %413 = vector.load %arg7[%c6_236, %c0_237, %c0_238] : memref<8x1x32xf32, #tpu.memory_space<vmem>>, vector<1x1x32xf32>
    %414 = vector.shape_cast %413 : vector<1x1x32xf32> to vector<1x32xf32>
    %415 = vector.broadcast %414 : vector<1x32xf32> to vector<16x32xf32>
    %416 = arith.addf %412, %415 : vector<16x32xf32>
    %c6_239 = arith.constant 6 : index
    %c0_240 = arith.constant 0 : index
    %c0_241 = arith.constant 0 : index
    %417 = vector.load %arg5[%c6_239, %c0_240, %c0_241] : memref<8x128x32xbf16, #tpu.memory_space<vmem>>, vector<1x128x32xbf16>
    %418 = vector.shape_cast %417 : vector<1x128x32xbf16> to vector<128x32xbf16>
    %cst_242 = arith.constant dense<0.000000e+00> : vector<16x32xf32>
    %419 = tpu.matmul %308, %418, %cst_242 {dimension_numbers = #tpu.dot_dimension_numbers<[1], [0], [0], [1], [0, 0, 1, 1], [], []>} : vector<16x128xbf16>, vector<128x32xbf16>, vector<16x32xf32> -> vector<16x32xf32>
    %c6_243 = arith.constant 6 : index
    %c0_244 = arith.constant 0 : index
    %c0_245 = arith.constant 0 : index
    %420 = vector.load %arg8[%c6_243, %c0_244, %c0_245] : memref<8x1x32xf32, #tpu.memory_space<vmem>>, vector<1x1x32xf32>
    %421 = vector.shape_cast %420 : vector<1x1x32xf32> to vector<1x32xf32>
    %422 = vector.broadcast %421 : vector<1x32xf32> to vector<16x32xf32>
    %423 = arith.addf %419, %422 : vector<16x32xf32>
    %c6_246 = arith.constant 6 : index
    %c0_247 = arith.constant 0 : index
    %c0_248 = arith.constant 0 : index
    %424 = vector.load %arg6[%c6_246, %c0_247, %c0_248] : memref<8x128x32xbf16, #tpu.memory_space<vmem>>, vector<1x128x32xbf16>
    %425 = vector.shape_cast %424 : vector<1x128x32xbf16> to vector<128x32xbf16>
    %cst_249 = arith.constant dense<0.000000e+00> : vector<16x32xf32>
    %426 = tpu.matmul %308, %425, %cst_249 {dimension_numbers = #tpu.dot_dimension_numbers<[1], [0], [0], [1], [0, 0, 1, 1], [], []>} : vector<16x128xbf16>, vector<128x32xbf16>, vector<16x32xf32> -> vector<16x32xf32>
    %c6_250 = arith.constant 6 : index
    %c0_251 = arith.constant 0 : index
    %c0_252 = arith.constant 0 : index
    %427 = vector.load %arg9[%c6_250, %c0_251, %c0_252] : memref<8x1x32xf32, #tpu.memory_space<vmem>>, vector<1x1x32xf32>
    %428 = vector.shape_cast %427 : vector<1x1x32xf32> to vector<1x32xf32>
    %429 = vector.broadcast %428 : vector<1x32xf32> to vector<16x32xf32>
    %430 = arith.addf %426, %429 : vector<16x32xf32>
    %431 = vector.shape_cast %416 : vector<16x32xf32> to vector<2x8x32xf32>
    %432 = arith.truncf %431 : vector<2x8x32xf32> to vector<2x8x32xbf16>
    %433 = vector.shape_cast %423 : vector<16x32xf32> to vector<2x8x32xf32>
    %434 = arith.truncf %433 : vector<2x8x32xf32> to vector<2x8x32xbf16>
    %435 = vector.shape_cast %430 : vector<16x32xf32> to vector<2x8x32xf32>
    %436 = arith.truncf %435 : vector<2x8x32xf32> to vector<2x8x32xbf16>
    "tpu.trace_start"() <{level = 10 : i32, message = "bqd,bkd->bqk"}> : () -> ()
    %cst_253 = arith.constant dense<0.000000e+00> : vector<2x8x8xf32>
    %437 = tpu.matmul %432, %434, %cst_253 {dimension_numbers = #tpu.dot_dimension_numbers<[2], [2], [1], [1], [0, 0, 0, 1, 1, 1], [0], [0]>} : vector<2x8x32xbf16>, vector<2x8x32xbf16>, vector<2x8x8xf32> -> vector<2x8x8xf32>
    "tpu.trace_stop"() : () -> ()
    %cst_254 = arith.constant 0.176776692 : f32
    %438 = vector.broadcast %cst_254 : f32 to vector<2x8x8xf32>
    %439 = arith.mulf %437, %438 : vector<2x8x8xf32>
    %440 = vector.broadcast %27 : vector<2x1x8xf32> to vector<2x8x8xf32>
    %441 = arith.addf %439, %440 : vector<2x8x8xf32>
    %cst_255 = arith.constant dense<0xFF800000> : vector<2x8xf32>
    %442 = vector.multi_reduction <maximumf>, %441, %cst_255 [2] : vector<2x8x8xf32> to vector<2x8xf32>
    %443 = vector.shape_cast %442 : vector<2x8xf32> to vector<2x8x1xf32>
    %444 = vector.broadcast %443 : vector<2x8x1xf32> to vector<2x8x8xf32>
    %445 = arith.subf %441, %444 : vector<2x8x8xf32>
    %446 = math.exp %445 : vector<2x8x8xf32>
    %cst_256 = arith.constant dense<0.000000e+00> : vector<2x8xf32>
    %447 = vector.multi_reduction <add>, %446, %cst_256 [2] : vector<2x8x8xf32> to vector<2x8xf32>
    %448 = vector.shape_cast %447 : vector<2x8xf32> to vector<2x8x1xf32>
    %449 = tpu.reciprocal %448 {approx = true} : vector<2x8x1xf32> -> vector<2x8x1xf32>
    %450 = vector.broadcast %449 : vector<2x8x1xf32> to vector<2x8x8xf32>
    %451 = arith.mulf %446, %450 : vector<2x8x8xf32>
    %452 = arith.truncf %451 : vector<2x8x8xf32> to vector<2x8x8xbf16>
    "tpu.trace_start"() <{level = 10 : i32, message = "bqk,bkd->bqd"}> : () -> ()
    %cst_257 = arith.constant dense<0.000000e+00> : vector<2x8x32xf32>
    %453 = tpu.matmul %452, %436, %cst_257 {dimension_numbers = #tpu.dot_dimension_numbers<[2], [1], [1], [2], [0, 0, 0, 1, 1, 2], [0], [0]>} : vector<2x8x8xbf16>, vector<2x8x32xbf16>, vector<2x8x32xf32> -> vector<2x8x32xf32>
    "tpu.trace_stop"() : () -> ()
    %454 = vector.shape_cast %453 : vector<2x8x32xf32> to vector<16x32xf32>
    %455 = arith.truncf %454 : vector<16x32xf32> to vector<16x32xbf16>
    %c6_258 = arith.constant 6 : index
    %c0_259 = arith.constant 0 : index
    %c0_260 = arith.constant 0 : index
    %456 = vector.load %arg10[%c6_258, %c0_259, %c0_260] : memref<8x32x128xbf16, #tpu.memory_space<vmem>>, vector<1x32x128xbf16>
    %457 = vector.shape_cast %456 : vector<1x32x128xbf16> to vector<32x128xbf16>
    %cst_261 = arith.constant dense<0.000000e+00> : vector<16x128xf32>
    %458 = tpu.matmul %455, %457, %cst_261 {dimension_numbers = #tpu.dot_dimension_numbers<[1], [0], [0], [1], [0, 0, 1, 1], [], []>} : vector<16x32xbf16>, vector<32x128xbf16>, vector<16x128xf32> -> vector<16x128xf32>
    %459 = arith.addf %409, %458 : vector<16x128xf32>
    %c7 = arith.constant 7 : index
    %c0_262 = arith.constant 0 : index
    %c0_263 = arith.constant 0 : index
    %460 = vector.load %arg4[%c7, %c0_262, %c0_263] : memref<8x128x32xbf16, #tpu.memory_space<vmem>>, vector<1x128x32xbf16>
    %461 = vector.shape_cast %460 : vector<1x128x32xbf16> to vector<128x32xbf16>
    %cst_264 = arith.constant dense<0.000000e+00> : vector<16x32xf32>
    %462 = tpu.matmul %308, %461, %cst_264 {dimension_numbers = #tpu.dot_dimension_numbers<[1], [0], [0], [1], [0, 0, 1, 1], [], []>} : vector<16x128xbf16>, vector<128x32xbf16>, vector<16x32xf32> -> vector<16x32xf32>
    %c7_265 = arith.constant 7 : index
    %c0_266 = arith.constant 0 : index
    %c0_267 = arith.constant 0 : index
    %463 = vector.load %arg7[%c7_265, %c0_266, %c0_267] : memref<8x1x32xf32, #tpu.memory_space<vmem>>, vector<1x1x32xf32>
    %464 = vector.shape_cast %463 : vector<1x1x32xf32> to vector<1x32xf32>
    %465 = vector.broadcast %464 : vector<1x32xf32> to vector<16x32xf32>
    %466 = arith.addf %462, %465 : vector<16x32xf32>
    %c7_268 = arith.constant 7 : index
    %c0_269 = arith.constant 0 : index
    %c0_270 = arith.constant 0 : index
    %467 = vector.load %arg5[%c7_268, %c0_269, %c0_270] : memref<8x128x32xbf16, #tpu.memory_space<vmem>>, vector<1x128x32xbf16>
    %468 = vector.shape_cast %467 : vector<1x128x32xbf16> to vector<128x32xbf16>
    %cst_271 = arith.constant dense<0.000000e+00> : vector<16x32xf32>
    %469 = tpu.matmul %308, %468, %cst_271 {dimension_numbers = #tpu.dot_dimension_numbers<[1], [0], [0], [1], [0, 0, 1, 1], [], []>} : vector<16x128xbf16>, vector<128x32xbf16>, vector<16x32xf32> -> vector<16x32xf32>
    %c7_272 = arith.constant 7 : index
    %c0_273 = arith.constant 0 : index
    %c0_274 = arith.constant 0 : index
    %470 = vector.load %arg8[%c7_272, %c0_273, %c0_274] : memref<8x1x32xf32, #tpu.memory_space<vmem>>, vector<1x1x32xf32>
    %471 = vector.shape_cast %470 : vector<1x1x32xf32> to vector<1x32xf32>
    %472 = vector.broadcast %471 : vector<1x32xf32> to vector<16x32xf32>
    %473 = arith.addf %469, %472 : vector<16x32xf32>
    %c7_275 = arith.constant 7 : index
    %c0_276 = arith.constant 0 : index
    %c0_277 = arith.constant 0 : index
    %474 = vector.load %arg6[%c7_275, %c0_276, %c0_277] : memref<8x128x32xbf16, #tpu.memory_space<vmem>>, vector<1x128x32xbf16>
    %475 = vector.shape_cast %474 : vector<1x128x32xbf16> to vector<128x32xbf16>
    %cst_278 = arith.constant dense<0.000000e+00> : vector<16x32xf32>
    %476 = tpu.matmul %308, %475, %cst_278 {dimension_numbers = #tpu.dot_dimension_numbers<[1], [0], [0], [1], [0, 0, 1, 1], [], []>} : vector<16x128xbf16>, vector<128x32xbf16>, vector<16x32xf32> -> vector<16x32xf32>
    %c7_279 = arith.constant 7 : index
    %c0_280 = arith.constant 0 : index
    %c0_281 = arith.constant 0 : index
    %477 = vector.load %arg9[%c7_279, %c0_280, %c0_281] : memref<8x1x32xf32, #tpu.memory_space<vmem>>, vector<1x1x32xf32>
    %478 = vector.shape_cast %477 : vector<1x1x32xf32> to vector<1x32xf32>
    %479 = vector.broadcast %478 : vector<1x32xf32> to vector<16x32xf32>
    %480 = arith.addf %476, %479 : vector<16x32xf32>
    %481 = vector.shape_cast %466 : vector<16x32xf32> to vector<2x8x32xf32>
    %482 = arith.truncf %481 : vector<2x8x32xf32> to vector<2x8x32xbf16>
    %483 = vector.shape_cast %473 : vector<16x32xf32> to vector<2x8x32xf32>
    %484 = arith.truncf %483 : vector<2x8x32xf32> to vector<2x8x32xbf16>
    %485 = vector.shape_cast %480 : vector<16x32xf32> to vector<2x8x32xf32>
    %486 = arith.truncf %485 : vector<2x8x32xf32> to vector<2x8x32xbf16>
    "tpu.trace_start"() <{level = 10 : i32, message = "bqd,bkd->bqk"}> : () -> ()
    %cst_282 = arith.constant dense<0.000000e+00> : vector<2x8x8xf32>
    %487 = tpu.matmul %482, %484, %cst_282 {dimension_numbers = #tpu.dot_dimension_numbers<[2], [2], [1], [1], [0, 0, 0, 1, 1, 1], [0], [0]>} : vector<2x8x32xbf16>, vector<2x8x32xbf16>, vector<2x8x8xf32> -> vector<2x8x8xf32>
    "tpu.trace_stop"() : () -> ()
    %cst_283 = arith.constant 0.176776692 : f32
    %488 = vector.broadcast %cst_283 : f32 to vector<2x8x8xf32>
    %489 = arith.mulf %487, %488 : vector<2x8x8xf32>
    %490 = vector.broadcast %27 : vector<2x1x8xf32> to vector<2x8x8xf32>
    %491 = arith.addf %489, %490 : vector<2x8x8xf32>
    %cst_284 = arith.constant dense<0xFF800000> : vector<2x8xf32>
    %492 = vector.multi_reduction <maximumf>, %491, %cst_284 [2] : vector<2x8x8xf32> to vector<2x8xf32>
    %493 = vector.shape_cast %492 : vector<2x8xf32> to vector<2x8x1xf32>
    %494 = vector.broadcast %493 : vector<2x8x1xf32> to vector<2x8x8xf32>
    %495 = arith.subf %491, %494 : vector<2x8x8xf32>
    %496 = math.exp %495 : vector<2x8x8xf32>
    %cst_285 = arith.constant dense<0.000000e+00> : vector<2x8xf32>
    %497 = vector.multi_reduction <add>, %496, %cst_285 [2] : vector<2x8x8xf32> to vector<2x8xf32>
    %498 = vector.shape_cast %497 : vector<2x8xf32> to vector<2x8x1xf32>
    %499 = tpu.reciprocal %498 {approx = true} : vector<2x8x1xf32> -> vector<2x8x1xf32>
    %500 = vector.broadcast %499 : vector<2x8x1xf32> to vector<2x8x8xf32>
    %501 = arith.mulf %496, %500 : vector<2x8x8xf32>
    %502 = arith.truncf %501 : vector<2x8x8xf32> to vector<2x8x8xbf16>
    "tpu.trace_start"() <{level = 10 : i32, message = "bqk,bkd->bqd"}> : () -> ()
    %cst_286 = arith.constant dense<0.000000e+00> : vector<2x8x32xf32>
    %503 = tpu.matmul %502, %486, %cst_286 {dimension_numbers = #tpu.dot_dimension_numbers<[2], [1], [1], [2], [0, 0, 0, 1, 1, 2], [0], [0]>} : vector<2x8x8xbf16>, vector<2x8x32xbf16>, vector<2x8x32xf32> -> vector<2x8x32xf32>
    "tpu.trace_stop"() : () -> ()
    %504 = vector.shape_cast %503 : vector<2x8x32xf32> to vector<16x32xf32>
    %505 = arith.truncf %504 : vector<16x32xf32> to vector<16x32xbf16>
    %c7_287 = arith.constant 7 : index
    %c0_288 = arith.constant 0 : index
    %c0_289 = arith.constant 0 : index
    %506 = vector.load %arg10[%c7_287, %c0_288, %c0_289] : memref<8x32x128xbf16, #tpu.memory_space<vmem>>, vector<1x32x128xbf16>
    %507 = vector.shape_cast %506 : vector<1x32x128xbf16> to vector<32x128xbf16>
    %cst_290 = arith.constant dense<0.000000e+00> : vector<16x128xf32>
    %508 = tpu.matmul %505, %507, %cst_290 {dimension_numbers = #tpu.dot_dimension_numbers<[1], [0], [0], [1], [0, 0, 1, 1], [], []>} : vector<16x32xbf16>, vector<32x128xbf16>, vector<16x128xf32> -> vector<16x128xf32>
    %509 = arith.addf %459, %508 : vector<16x128xf32>
    %c1_291 = arith.constant 1 : index
    %c0_292 = arith.constant 0 : index
    %c0_293 = arith.constant 0 : index
    %510 = vector.load %arg11[%c1_291, %c0_292, %c0_293] : memref<2x1x128xf32, #tpu.memory_space<vmem>>, vector<1x1x128xf32>
    %511 = vector.shape_cast %510 : vector<1x1x128xf32> to vector<1x128xf32>
    %512 = vector.broadcast %511 : vector<1x128xf32> to vector<16x128xf32>
    %513 = arith.addf %509, %512 : vector<16x128xf32>
    %514 = arith.addf %513, %307 : vector<16x128xf32>
    %c1_294 = arith.constant 1 : index
    %c0_295 = arith.constant 0 : index
    %c0_296 = arith.constant 0 : index
    %515 = vector.load %arg12[%c1_294, %c0_295, %c0_296] : memref<2x1x128xf32, #tpu.memory_space<vmem>>, vector<1x1x128xf32>
    %516 = vector.shape_cast %515 : vector<1x1x128xf32> to vector<1x128xf32>
    %c1_297 = arith.constant 1 : index
    %c0_298 = arith.constant 0 : index
    %c0_299 = arith.constant 0 : index
    %517 = vector.load %arg13[%c1_297, %c0_298, %c0_299] : memref<2x1x128xf32, #tpu.memory_space<vmem>>, vector<1x1x128xf32>
    %518 = vector.shape_cast %517 : vector<1x1x128xf32> to vector<1x128xf32>
    %cst_300 = arith.constant dense<0.000000e+00> : vector<16xf32>
    %519 = vector.multi_reduction <add>, %514, %cst_300 [1] : vector<16x128xf32> to vector<16xf32>
    %520 = vector.shape_cast %519 : vector<16xf32> to vector<16x1xf32>
    %cst_301 = arith.constant 1.280000e+02 : f32
    %521 = vector.broadcast %cst_301 : f32 to vector<16x1xf32>
    %522 = arith.divf %520, %521 : vector<16x1xf32>
    %523 = vector.broadcast %522 : vector<16x1xf32> to vector<16x128xf32>
    %524 = arith.subf %514, %523 : vector<16x128xf32>
    %525 = arith.mulf %524, %524 : vector<16x128xf32>
    %cst_302 = arith.constant dense<0.000000e+00> : vector<16xf32>
    %526 = vector.multi_reduction <add>, %525, %cst_302 [1] : vector<16x128xf32> to vector<16xf32>
    %527 = vector.shape_cast %526 : vector<16xf32> to vector<16x1xf32>
    %cst_303 = arith.constant 1.280000e+02 : f32
    %528 = vector.broadcast %cst_303 : f32 to vector<16x1xf32>
    %529 = arith.divf %527, %528 : vector<16x1xf32>
    %cst_304 = arith.constant 9.99999996E-13 : f32
    %530 = vector.broadcast %cst_304 : f32 to vector<16x1xf32>
    %531 = arith.addf %529, %530 : vector<16x1xf32>
    %532 = math.rsqrt %531 : vector<16x1xf32>
    %533 = vector.broadcast %532 : vector<16x1xf32> to vector<16x128xf32>
    %534 = arith.mulf %524, %533 : vector<16x128xf32>
    %535 = vector.broadcast %516 : vector<1x128xf32> to vector<16x128xf32>
    %536 = arith.mulf %534, %535 : vector<16x128xf32>
    %537 = vector.broadcast %518 : vector<1x128xf32> to vector<16x128xf32>
    %538 = arith.addf %536, %537 : vector<16x128xf32>
    %c1_305 = arith.constant 1 : index
    %c0_306 = arith.constant 0 : index
    %c0_307 = arith.constant 0 : index
    %539 = vector.load %arg14[%c1_305, %c0_306, %c0_307] : memref<2x128x256xbf16, #tpu.memory_space<vmem>>, vector<1x128x256xbf16>
    %540 = vector.shape_cast %539 : vector<1x128x256xbf16> to vector<128x256xbf16>
    %541 = arith.truncf %538 : vector<16x128xf32> to vector<16x128xbf16>
    %cst_308 = arith.constant dense<0.000000e+00> : vector<16x256xf32>
    %542 = tpu.matmul %541, %540, %cst_308 {dimension_numbers = #tpu.dot_dimension_numbers<[1], [0], [0], [1], [0, 0, 1, 1], [], []>} : vector<16x128xbf16>, vector<128x256xbf16>, vector<16x256xf32> -> vector<16x256xf32>
    %c1_309 = arith.constant 1 : index
    %c0_310 = arith.constant 0 : index
    %c0_311 = arith.constant 0 : index
    %543 = vector.load %arg15[%c1_309, %c0_310, %c0_311] : memref<2x1x256xf32, #tpu.memory_space<vmem>>, vector<1x1x256xf32>
    %544 = vector.shape_cast %543 : vector<1x1x256xf32> to vector<1x256xf32>
    %545 = vector.broadcast %544 : vector<1x256xf32> to vector<16x256xf32>
    %546 = arith.addf %542, %545 : vector<16x256xf32>
    %cst_312 = arith.constant 5.000000e-01 : f32
    %547 = vector.broadcast %cst_312 : f32 to vector<16x256xf32>
    %548 = arith.mulf %547, %546 : vector<16x256xf32>
    %cst_313 = arith.constant 0.707106769 : f32
    %549 = vector.broadcast %cst_313 : f32 to vector<16x256xf32>
    %550 = arith.mulf %546, %549 : vector<16x256xf32>
    %551 = math.erf %550 : vector<16x256xf32>
    %cst_314 = arith.constant 1.000000e+00 : f32
    %552 = vector.broadcast %cst_314 : f32 to vector<16x256xf32>
    %553 = arith.addf %552, %551 : vector<16x256xf32>
    %554 = arith.mulf %548, %553 : vector<16x256xf32>
    %c1_315 = arith.constant 1 : index
    %c0_316 = arith.constant 0 : index
    %c0_317 = arith.constant 0 : index
    %555 = vector.load %arg16[%c1_315, %c0_316, %c0_317] : memref<2x256x128xbf16, #tpu.memory_space<vmem>>, vector<1x256x128xbf16>
    %556 = vector.shape_cast %555 : vector<1x256x128xbf16> to vector<256x128xbf16>
    %557 = arith.truncf %554 : vector<16x256xf32> to vector<16x256xbf16>
    %cst_318 = arith.constant dense<0.000000e+00> : vector<16x128xf32>
    %558 = tpu.matmul %557, %556, %cst_318 {dimension_numbers = #tpu.dot_dimension_numbers<[1], [0], [0], [1], [0, 0, 1, 1], [], []>} : vector<16x256xbf16>, vector<256x128xbf16>, vector<16x128xf32> -> vector<16x128xf32>
    %c1_319 = arith.constant 1 : index
    %c0_320 = arith.constant 0 : index
    %c0_321 = arith.constant 0 : index
    %559 = vector.load %arg17[%c1_319, %c0_320, %c0_321] : memref<2x1x128xf32, #tpu.memory_space<vmem>>, vector<1x1x128xf32>
    %560 = vector.shape_cast %559 : vector<1x1x128xf32> to vector<1x128xf32>
    %561 = vector.broadcast %560 : vector<1x128xf32> to vector<16x128xf32>
    %562 = arith.addf %558, %561 : vector<16x128xf32>
    %563 = arith.addf %562, %538 : vector<16x128xf32>
    %c1_322 = arith.constant 1 : index
    %c0_323 = arith.constant 0 : index
    %c0_324 = arith.constant 0 : index
    %564 = vector.load %arg18[%c1_322, %c0_323, %c0_324] : memref<2x1x128xf32, #tpu.memory_space<vmem>>, vector<1x1x128xf32>
    %565 = vector.shape_cast %564 : vector<1x1x128xf32> to vector<1x128xf32>
    %c1_325 = arith.constant 1 : index
    %c0_326 = arith.constant 0 : index
    %c0_327 = arith.constant 0 : index
    %566 = vector.load %arg19[%c1_325, %c0_326, %c0_327] : memref<2x1x128xf32, #tpu.memory_space<vmem>>, vector<1x1x128xf32>
    %567 = vector.shape_cast %566 : vector<1x1x128xf32> to vector<1x128xf32>
    %cst_328 = arith.constant dense<0.000000e+00> : vector<16xf32>
    %568 = vector.multi_reduction <add>, %563, %cst_328 [1] : vector<16x128xf32> to vector<16xf32>
    %569 = vector.shape_cast %568 : vector<16xf32> to vector<16x1xf32>
    %cst_329 = arith.constant 1.280000e+02 : f32
    %570 = vector.broadcast %cst_329 : f32 to vector<16x1xf32>
    %571 = arith.divf %569, %570 : vector<16x1xf32>
    %572 = vector.broadcast %571 : vector<16x1xf32> to vector<16x128xf32>
    %573 = arith.subf %563, %572 : vector<16x128xf32>
    %574 = arith.mulf %573, %573 : vector<16x128xf32>
    %cst_330 = arith.constant dense<0.000000e+00> : vector<16xf32>
    %575 = vector.multi_reduction <add>, %574, %cst_330 [1] : vector<16x128xf32> to vector<16xf32>
    %576 = vector.shape_cast %575 : vector<16xf32> to vector<16x1xf32>
    %cst_331 = arith.constant 1.280000e+02 : f32
    %577 = vector.broadcast %cst_331 : f32 to vector<16x1xf32>
    %578 = arith.divf %576, %577 : vector<16x1xf32>
    %cst_332 = arith.constant 9.99999996E-13 : f32
    %579 = vector.broadcast %cst_332 : f32 to vector<16x1xf32>
    %580 = arith.addf %578, %579 : vector<16x1xf32>
    %581 = math.rsqrt %580 : vector<16x1xf32>
    %582 = vector.broadcast %581 : vector<16x1xf32> to vector<16x128xf32>
    %583 = arith.mulf %573, %582 : vector<16x128xf32>
    %584 = vector.broadcast %565 : vector<1x128xf32> to vector<16x128xf32>
    %585 = arith.mulf %583, %584 : vector<16x128xf32>
    %586 = vector.broadcast %567 : vector<1x128xf32> to vector<16x128xf32>
    %587 = arith.addf %585, %586 : vector<16x128xf32>
    %588 = vector.shape_cast %587 : vector<16x128xf32> to vector<2x8x128xf32>
    %589 = vector.extract_strided_slice %588 {offsets = [0, 0, 0], sizes = [2, 1, 128], strides = [1, 1, 1]} : vector<2x8x128xf32> to vector<2x1x128xf32>
    %590 = vector.shape_cast %589 : vector<2x1x128xf32> to vector<2x128xf32>
    %c0_333 = arith.constant 0 : index
    %c0_334 = arith.constant 0 : index
    %591 = vector.load %arg20[%c0_333, %c0_334] : memref<2x128xf32, #tpu.memory_space<vmem>>, vector<2x128xf32>
    tpu.vector_store %arg20[%c0_333, %c0_334], %590 {strides = array<i32>} : memref<2x128xf32, #tpu.memory_space<vmem>>, vector<2x128xf32>,
    return
  }
}

</mosaic_0001>

<bundles_post_ra>
// kernel: bert_pool_forward.1
= control target key start
LH: loop header
LB: loop body
LE: loop exit
PB: predicated region body
PF: predicated region fallthrough
CT: control target
= control target key end

     0   :  { %s8187_s0 = inlined_call_operand.vmem [shape: f32[2,1,8], index: 0, kind: input, shape index: {}]   ;;  %s8188_s1 = inlined_call_operand.vmem [shape: f32[16,128], index: 1, kind: input, shape index: {}]   ;;  %s8189_s2 = inlined_call_operand.vmem [shape: f32[1,128], index: 2, kind: input, shape index: {}]   ;;  %s8190_s3 = inlined_call_operand.vmem [shape: f32[1,128], index: 3, kind: input, shape index: {}]   ;;  %s8191_s4 = inlined_call_operand.vmem [shape: bf16[8,128,32], index: 4, kind: input, shape index: {}]   ;;  %s8192_s5 = inlined_call_operand.vmem [shape: bf16[8,128,32], index: 5, kind: input, shape index: {}]   ;;  %s8193_s6 = inlined_call_operand.vmem [shape: bf16[8,128,32], index: 6, kind: input, shape index: {}]   ;;  %s8194_s7 = inlined_call_operand.vmem [shape: f32[8,1,32], index: 7, kind: input, shape index: {}]   ;;  %s8195_s8 = inlined_call_operand.vmem [shape: f32[8,1,32], index: 8, kind: input, shape index: {}]   ;;  %s8196_s9 = inlined_call_operand.vmem [shape: f32[8,1,32], index: 9, kind: input, shape index: {}]   ;;  %s8197_s10 = inlined_call_operand.vmem [shape: bf16[8,32,128], index: 10, kind: input, shape index: {}]   ;;  %s8198_s11 = inlined_call_operand.vmem [shape: f32[2,1,128], index: 11, kind: input, shape index: {}]   ;;  %s8199_s12 = inlined_call_operand.vmem [shape: f32[2,1,128], index: 12, kind: input, shape index: {}]   ;;  %s8200_s13 = inlined_call_operand.vmem [shape: f32[2,1,128], index: 13, kind: input, shape index: {}]   ;;  %s8201_s14 = inlined_call_operand.vmem [shape: bf16[2,128,256], index: 14, kind: input, shape index: {}]   ;;  %s8202_s15 = inlined_call_operand.vmem [shape: f32[2,1,256], index: 15, kind: input, shape index: {}]   ;;  %s8203_s16 = inlined_call_operand.vmem [shape: bf16[2,256,128], index: 16, kind: input, shape index: {}]   ;;  %s8204_s17 = inlined_call_operand.vmem [shape: f32[2,1,128], index: 17, kind: input, shape index: {}]   ;;  %s8205_s18 = inlined_call_operand.vmem [shape: f32[2,1,128], index: 18, kind: input, shape index: {}]   ;;  %s8206_s19 = inlined_call_operand.vmem [shape: f32[2,1,128], index: 19, kind: input, shape index: {}]   ;;  %s8207_s20 = inlined_call_operand.hbm [shape: f32[2,128], index: 20, kind: output, shape index: {}]  }
   0x1   :  { %8211 = sst [smem:[#allocation5_spill]] %s8187_s0 }
   0x2   :  { %8212 = sst [smem:[#allocation6_spill]] %s8188_s1 }
   0x3   :  { %8213 = sst [smem:[#allocation7_spill]] %s8189_s2 }
   0x4   :  { %8214 = sst [smem:[#allocation8_spill]] %s8190_s3 }
   0x5   :  { %8215 = sst [smem:[#allocation9_spill]] %s8191_s4 }
   0x6   :  { %s8216_s23 = sld [smem:[#allocation6_spill]] }
   0xc   :  { %v67_v0 = vld [vmem:[%s8216_s23] sm:$0xff]  ;;  %v68_v1 = vld [vmem:[%s8216_s23 + $0x8] sm:$0xff] }
   0xd   :  { %71 = vadd.xlane.f32.xlu0 %v67_v0 }
  0x15   :  { %73 = vadd.xlane.f32.xlu0 %v68_v1 }
  0x16   :  { %25 = vsyncpa [#allocation3], 0  ;;  %v6536_v2 = vmov 128.0   ;;  %v6111_v5 = vld [vmem:[%s8192_s5 + $0x38] sm:$0xff]  ;;  %v6110_v7 = vld [vmem:[%s8192_s5 + $0x30] sm:$0xff]  ;;  %s8217_s27 = sld [smem:[#allocation9_spill]] }
  0x17   :  { %6408 = vrcp.f32 %v6536_v2  ;;  %v6119_v6 = vld [vmem:[%s8193_s6 + $0x38] sm:$0xff]  ;;  %285 = vmatpush.bf16.msra.mxu1 %v6111_v5  ;;  %v6118_v8 = vld [vmem:[%s8193_s6 + $0x30] sm:$0xff]  ;;  %v6109_v21 = vld [vmem:[%s8192_s5 + $0x28] sm:$0xff]  ;;  %s8218_s23 = sld [smem:[#allocation7_spill]]  ;;  %vm387_vm7 = vcmask 261120   ;;  %vm464_vm8 = vcmask 1043456  }
  0x18   :  { %367 = vmatpush.bf16.msra.mxu2 %v6119_v6  ;;  %v6117_v22 = vld [vmem:[%s8193_s6 + $0x28] sm:$0xff]  ;;  %v6108_v23 = vld [vmem:[%s8192_s5 + $0x20] sm:$0xff]  ;;  %v6107_v26 = vld [vmem:[%s8192_s5 + $0x18] sm:$0xff]  ;;  %s8219_s25 = sld [smem:[#allocation8_spill]]  ;;  %vm436_vm9 = vcmask 64512   ;;  %s6537_s1 = smov [#allocation2]  }
  0x19   :  { %v6116_v24 = vld [vmem:[%s8193_s6 + $0x20] sm:$0xff]  ;;  %v6115_v27 = vld [vmem:[%s8193_s6 + $0x18] sm:$0xff]  ;;  %v6106_v29 = vld [vmem:[%s8192_s5 + $0x10] sm:$0xff]  ;;  %s4509_s22 = sshll.u32 %s6537_s1, 4  ;;  %s4510_s22 = int_to_ptr.vmem [resolvable:$true] %s4509_s22 }
  0x1a   :  { %v6114_v30 = vld [vmem:[%s8193_s6 + $0x10] sm:$0xff]  ;;  %v6105_v32 = vld [vmem:[%s8192_s5 + $0x8] sm:$0xff]  ;;  %v6104_v35 = vld [vmem:[%s8192_s5] sm:$0xff] }
  0x1b   :  { %286 = vmatpush.bf16.msra.mxu1 %v6110_v7  ;;  %v6113_v33 = vld [vmem:[%s8193_s6 + $0x8] sm:$0xff]  ;;  %v6112_v36 = vld [vmem:[%s8193_s6] sm:$0xff]  ;;  %v6137_v39 = vld [vmem:[%s8192_s5 + $0x78] sm:$0xff] }
  0x1c   :  { %368 = vmatpush.bf16.msra.mxu2 %v6118_v8  ;;  %v6103_v25 = vld [vmem:[%s8217_s27 + $0x38] sm:$0xff]  ;;  %v6102_v28 = vld [vmem:[%s8217_s27 + $0x30] sm:$0xff]  ;;  %v6101_v31 = vld [vmem:[%s8217_s27 + $0x28] sm:$0xff] }
  0x1d   :  { %v6409_v3 = vpop.eup %6408  ;;  %203 = vmatpush.bf16.msra.mxu0 %v6103_v25  ;;  %v6100_v34 = vld [vmem:[%s8217_s27 + $0x20] sm:$0xff]  ;;  %v6099_v37 = vld [vmem:[%s8217_s27 + $0x18] sm:$0xff]  ;;  %v6098_v40 = vld [vmem:[%s8217_s27 + $0x10] sm:$0xff] }
  0x1e   :  { %v76_v4 = vmul.f32 128.0, %v6409_v3  ;;  %vm80_vm0 = vweird.f32 %v6409_v3  ;;  %v6129_v38 = vld [vmem:[%s8217_s27 + $0x78] sm:$0xff]  ;;  %v6128_v41 = vld [vmem:[%s8217_s27 + $0x70] sm:$0xff]  ;;  %v6097_v43 = vld [vmem:[%s8217_s27 + $0x8] sm:$0xff] }
  0x1f   :  { %287 = vmatpush.bf16.msra.mxu1 %v6109_v21  ;;  %v6136_v42 = vld [vmem:[%s8192_s5 + $0x70] sm:$0xff]  ;;  %v6127_v44 = vld [vmem:[%s8217_s27 + $0x68] sm:$0xff]  ;;  %v6096_v48 = vld [vmem:[%s8217_s27] sm:$0xff] }
  0x20   :  { %v77_v9 = vsub.f32 1.0, %v76_v4  ;;  %369 = vmatpush.bf16.msra.mxu2 %v6117_v22  ;;  %v6135_v45 = vld [vmem:[%s8192_s5 + $0x68] sm:$0xff]  ;;  %v6126_v49 = vld [vmem:[%s8217_s27 + $0x60] sm:$0xff]  ;;  %v6125_v52 = vld [vmem:[%s8217_s27 + $0x58] sm:$0xff] }
  0x21   :  { %204 = vmatpush.bf16.msra.mxu0 %v6102_v28  ;;  %v6134_v50 = vld [vmem:[%s8192_s5 + $0x60] sm:$0xff]  ;;  %v6133_v53 = vld [vmem:[%s8192_s5 + $0x58] sm:$0xff]  ;;  %v6124_v56 = vld [vmem:[%s8217_s27 + $0x50] sm:$0xff] }
  0x22   :  { %v78_v10 = vmul.f32 %v6409_v3, %v77_v9  ;;  %v6132_v57 = vld [vmem:[%s8192_s5 + $0x50] sm:$0xff]  ;;  %v6123_v61 = vld [vmem:[%s8217_s27 + $0x48] sm:$0xff]  ;;  %v6130_v2 = vld [vmem:[%s8192_s5 + $0x40] sm:$0xff] }
  0x23   :  { %288 = vmatpush.bf16.msra.mxu1 %v6108_v23  ;;  %v6131_v62 = vld [vmem:[%s8192_s5 + $0x48] sm:$0xff] }
  0x24   :  { %v79_v11 = vadd.f32 %v6409_v3, %v78_v10  ;;  %370 = vmatpush.bf16.msra.mxu2 %v6116_v24 }
  0x25   :  { %205 = vmatpush.bf16.msra.mxu0 %v6101_v31 }
  0x26   :  { %v6661_v12 = vsel %vm80_vm0, %v6409_v3, %v79_v11  ;;  %v6370_v11 = vld [vmem:[%s8218_s23] ss:$0 sm:$0xff]  ;;  %s8220_s23 = sld [smem:[#allocation5_spill]] }
  0x27   :  { %289 = vmatpush.bf16.msra.mxu1 %v6107_v26  ;;  %v6372_v26 = vld [vmem:[%s8194_s7] ss:$0 sm:$0xff] }
  0x28   :  { %371 = vmatpush.bf16.msra.mxu2 %v6115_v27 }
  0x29   :  { %206 = vmatpush.bf16.msra.mxu0 %v6100_v34 }
  0x2b   :  { %290 = vmatpush.bf16.msra.mxu1 %v6106_v29  ;;  %v6374_v29 = vld [vmem:[%s8196_s9] ss:$0 sm:$0xff] }
  0x2c   :  { %372 = vmatpush.bf16.msra.mxu2 %v6114_v30 }
  0x2d   :  { %207 = vmatpush.bf16.msra.mxu0 %v6099_v37 }
  0x2f   :  { %291 = vmatpush.bf16.msra.mxu1 %v6105_v32 }
  0x30   :  { %373 = vmatpush.bf16.msra.mxu2 %v6113_v33 }
  0x31   :  { %208 = vmatpush.bf16.msra.mxu0 %v6098_v40 }
  0x33   :  { %292 = vmatpush.bf16.msra.mxu1 %v6104_v35 }
  0x34   :  { %374 = vmatpush.bf16.msra.mxu2 %v6112_v36 }
  0x35   :  { %209 = vmatpush.bf16.msra.mxu0 %v6097_v43 }
  0x37   :  { %575 = vmatpush.bf16.msrb.mxu1 %v6129_v38 }
  0x38   :  { %659 = vmatpush.bf16.msrb.mxu2 %v6137_v39 }
  0x39   :  { %210 = vmatpush.bf16.msra.mxu0 %v6096_v48 }
  0x3b   :  { %576 = vmatpush.bf16.msrb.mxu1 %v6128_v41 }
  0x3c   :  { %660 = vmatpush.bf16.msrb.mxu2 %v6136_v42 }
  0x3f   :  { %577 = vmatpush.bf16.msrb.mxu1 %v6127_v44 }
  0x40   :  { %661 = vmatpush.bf16.msrb.mxu2 %v6135_v45 }
  0x43   :  { %578 = vmatpush.bf16.msrb.mxu1 %v6126_v49 }
  0x44   :  { %662 = vmatpush.bf16.msrb.mxu2 %v6134_v50 }
  0x47   :  { %579 = vmatpush.bf16.msrb.mxu1 %v6125_v52 }
  0x48   :  { %663 = vmatpush.bf16.msrb.mxu2 %v6133_v53  ;;  %v128_v53 = vld [vmem:[%s8220_s23] sm:$0x1] }
  0x4b   :  { %580 = vmatpush.bf16.msrb.mxu1 %v6124_v56 }
  0x4c   :  { %664 = vmatpush.bf16.msrb.mxu2 %v6132_v57 }
  0x4f   :  { %581 = vmatpush.bf16.msrb.mxu1 %v6123_v61 }
  0x50   :  { %665 = vmatpush.bf16.msrb.mxu2 %v6131_v62 }
  0x54   :  { %666 = vmatpush.bf16.msrb.mxu2 %v6130_v2 }
  0x80   :  { %v72_v13 = vpop.xlane.xlu0 %71 }
  0x81   :  { %v82_v14 = vmul.f32 %v6661_v12, %v72_v13 }
  0x83   :  { %v6664_v15 = vsub.f32 %v67_v0, %v82_v14 }
  0x85   :  { %v86_v16 = vmul.f32 %v6664_v15, %v6664_v15 }
  0x87   :  { %88 = vadd.xlane.f32.xlu1 %v86_v16 }
  0x88   :  { %v74_v17 = vpop.xlane.xlu0 %73 }
  0x89   :  { %v83_v18 = vmul.f32 %v6661_v12, %v74_v17  ;;  %v6371_v17 = vld [vmem:[%s8219_s25] ss:$0 sm:$0xff] }
  0x8b   :  { %v6669_v19 = vsub.f32 %v68_v1, %v83_v18  ;;  %v6122_v1 = vld [vmem:[%s8217_s27 + $0x40] sm:$0xff] }
  0x8c   :  { %582 = vmatpush.bf16.msrb.mxu1 %v6122_v1 }
  0x8d   :  { %v87_v20 = vmul.f32 %v6669_v19, %v6669_v19 }
  0x8f   :  { %90 = vadd.xlane.f32.xlu1 %v87_v20 }
  0xfa   :  { %v89_v46 = vpop.xlane.xlu1 %88 }
  0xfb   :  { %v92_v47 = vmul.f32 %v89_v46, %v6661_v12  ;;  %v6821_v46 = vld [vmem:[%s8195_s8 + $0x1] ss:$0 sm:$0xff] }
  0xfd   :  { %v94_v51 = vadd.f32 1e-12, %v92_v47 }
  0xff   :  { %6410 = vrsqrt.f32 %v94_v51  ;;  %vm102_vm2 = vweird.f32 %v94_v51 }
 0x102   :  { %v91_v54 = vpop.xlane.xlu1 %90 }
 0x103   :  { %v93_v55 = vmul.f32 %v91_v54, %v6661_v12  ;;  %v130_v54 = vsub.f32 1.0, %v128_v53 }
 0x105   :  { %v6411_v58 = vpop.eup %6410  ;;  %v95_v59 = vadd.f32 1e-12, %v93_v55  ;;  %v132_v55 = vmul.f32 -10000.0, %v130_v54  ;;  %v6377_v54 = vld [vmem:[%s8196_s9 + $0x1] ss:$0 sm:$0xff] }
 0x106   :  { %v97_v60 = vmul.f32 %v6411_v58, %v94_v51  ;;  %vm103_vm1 = vweird.f32 %v6411_v58 }
 0x107   :  { %6412 = vrsqrt.f32 %v95_v59  ;;  %vm104_vm3 = vmor %vm102_vm2, %vm103_vm1  ;;  %vm112_vm5 = vweird.f32 %v95_v59  ;;  %v6829_v56 = vperm.slane %v132_v55, 0 }
 0x108   :  { %v98_v63 = vmul.f32 %v6411_v58, %v97_v60  ;;  %v129_v60 = vld [vmem:[%s8220_s23 + $0x1] sm:$0x1] }
 0x109   :  { %v131_v62 = vsub.f32 1.0, %v129_v60 }
 0x10a   :  { %v99_v0 = vmul.f32 0.5, %v98_v63 }
 0x10c   :  { %v100_v3 = vsub.f32 1.5, %v99_v0  ;;  %v133_v0 = vmul.f32 -10000.0, %v131_v62 }
 0x10d   :  { %v6413_v4 = vpop.eup %6412 }
 0x10e   :  { %v101_v5 = vmul.f32 %v6411_v58, %v100_v3  ;;  %v107_v6 = vmul.f32 %v6413_v4, %v95_v59  ;;  %vm113_vm4 = vweird.f32 %v6413_v4  ;;  %v6836_v1 = vperm.slane %v133_v0, 0 }
 0x10f   :  { %vm114_vm6 = vmor %vm112_vm5, %vm113_vm4 }
 0x110   :  { %v108_v7 = vmul.f32 %v6413_v4, %v107_v6  ;;  %v105_v8 = vsel %vm104_vm3, %v6411_v58, %v101_v5 }
 0x111   :  { %v116_v13 = vmul.f32 %v105_v8, %v6664_v15  ;;  %v6373_v15 = vld [vmem:[%s8195_s8] ss:$0 sm:$0xff] }
 0x112   :  { %v109_v9 = vmul.f32 0.5, %v108_v7  ;;  %v6145_v7 = vld [vmem:[%s8193_s6 + $0x78] sm:$0xff] }
 0x113   :  { %v121_v18 = vmul.f32 %v6370_v11, %v116_v13 }
 0x114   :  { %v110_v10 = vsub.f32 1.5, %v109_v9 }
 0x115   :  { %v6791_v22 = vadd.f32 %v6371_v17, %v121_v18 }
 0x116   :  { %v111_v14 = vmul.f32 %v6413_v4, %v110_v10 }
 0x118   :  { %v115_v16 = vsel %vm114_vm6, %v6413_v4, %v111_v14 }
 0x119   :  { %v117_v20 = vmul.f32 %v115_v16, %v6669_v19 }
 0x11b   :  { %v122_v21 = vmul.f32 %v6370_v11, %v117_v20 }
 0x11d   :  { %v6793_v23 = vadd.f32 %v6371_v17, %v122_v21  ;;  %v6144_v21 = vld [vmem:[%s8193_s6 + $0x70] sm:$0xff] }
 0x11f   :  { %v6797_v24 = vpack.c.bf16 %v6793_v23, %v6791_v22 }
 0x121   :  { %211 = vmatmul.bf16.vlgmr.msra.gmra.mxu0 %v6797_v24  ;;  %293 = vmatmul.bf16.vlgmr.msra.gmra.mxu1 %v6797_v24 }
 0x122   :  { %375 = vmatmul.bf16.vlgmr.msra.gmra.mxu2 %v6797_v24 }
 0x131   :  { %583 = vmatmul.bf16.vlgmr.msrb.gmra.mxu1 %v6797_v24 }
 0x132   :  { %667 = vmatmul.bf16.vlgmr.msrb.gmra.mxu2 %v6797_v24 }
 0x19e   :  { %v294_v19 = vpop.f32.mrf.mxu1  ;;  %v212_v28 = vpop.f32.mrf.mxu0 }
 0x19f   :  { %v295_v25 = vadd.f32 %v6373_v15, %v294_v19  ;;  %v213_v31 = vadd.f32 %v6372_v26, %v212_v28  ;;  %v6142_v19 = vld [vmem:[%s8193_s6 + $0x60] sm:$0xff] }
 0x1a0   :  { %v6138_v28 = vld [vmem:[%s8193_s6 + $0x40] sm:$0xff] }
 0x1a1   :  { %v383_v27 = vpack.c.bf16 %v295_v25, %v295_v25  ;;  %v381_v37 = vpack.c.bf16 %v213_v31, %v213_v31  ;;  %v6141_v25 = vld [vmem:[%s8193_s6 + $0x58] sm:$0xff] }
 0x1a3   :  { %v392_v30 = vsel %vm387_vm7, %v383_v27, 0  ;;  %v6139_v27 = vld [vmem:[%s8193_s6 + $0x48] sm:$0xff] }
 0x1a4   :  { %401 = vmatpush.bf16.xpose.msra.mxu3 %v392_v30 }
 0x1a5   :  { %v376_v32 = vpop.f32.mrf.mxu2 }
 0x1a6   :  { %v377_v33 = vadd.f32 %v6374_v29, %v376_v32  ;;  %v296_v34 = vpop.f32.mrf.mxu1  ;;  %v214_v44 = vpop.f32.mrf.mxu0 }
 0x1a7   :  { %v297_v35 = vadd.f32 %v6373_v15, %v296_v34  ;;  %v215_v47 = vadd.f32 %v6372_v26, %v214_v44  ;;  %v6143_v15 = vld [vmem:[%s8193_s6 + $0x68] sm:$0xff]  ;;  %v6140_v26 = vld [vmem:[%s8193_s6 + $0x50] sm:$0xff] }
 0x1a8   :  { %v385_v36 = vpack.c.bf16 %v377_v33, %v377_v33 }
 0x1a9   :  { %v384_v38 = vpack.c.bf16 %v297_v35, %v297_v35  ;;  %v382_v51 = vpack.c.bf16 %v215_v47, %v215_v47 }
 0x1aa   :  { %v466_v40 = vsel %vm464_vm8, %v385_v36, 0 }
 0x1ab   :  { %4616 = vmatmul.msk.bf16.vlgmr.msra.gmra.mxu3 %vm387_vm7, %v381_v37  ;;  %v411_v39 = vsel %vm387_vm7, %v384_v38, 0 }
 0x1ac   :  { %420 = vmatpush.bf16.xpose.msrb.mxu3 %v411_v39 }
 0x1ad   :  { %v378_v41 = vpop.f32.mrf.mxu2 }
 0x1ae   :  { %v379_v42 = vadd.f32 %v6374_v29, %v378_v41  ;;  %v6375_v41 = vld [vmem:[%s8194_s7 + $0x1] ss:$0 sm:$0xff] }
 0x1b0   :  { %v386_v43 = vpack.c.bf16 %v379_v42, %v379_v42  ;;  %v584_v42 = vpop.f32.mrf.mxu1 }
 0x1b2   :  { %v485_v45 = vsel %vm464_vm8, %v386_v43, 0  ;;  %v585_v43 = vadd.f32 %v6375_v41, %v584_v42  ;;  %v6156_v42 = vld [vmem:[%s8192_s5 + $0x80] sm:$0xff] }
 0x1b3   :  { %494 = vmatpush.bf16.msrb.mxu0 %v485_v45 }
 0x1b4   :  { %475 = vmatpush.bf16.msra.mxu3 %v466_v40  ;;  %v757_v44 = vpack.c.bf16 %v585_v43, %v585_v43 }
 0x1b5   :  { %v668_v48 = vpop.f32.mrf.mxu2 }
 0x1b6   :  { %v669_v49 = vadd.f32 %v6821_v46, %v668_v48  ;;  %v6121_v48 = vld [vmem:[%s8197_s10 + $0x8] sm:$0xff] }
 0x1b8   :  { %v759_v50 = vpack.c.bf16 %v669_v49, %v669_v49  ;;  %v586_v45 = vpop.f32.mrf.mxu1  ;;  %v6120_v49 = vld [vmem:[%s8197_s10] sm:$0xff] }
 0x1ba   :  { %v767_v52 = vsel %vm387_vm7, %v759_v50, 0 }
 0x1bb   :  { %776 = vmatpush.bf16.xpose.msra.mxu0 %v767_v52  ;;  %4617 = vmatmul.msk.bf16.vlgmr.msrb.gmra.mxu3 %vm387_vm7, %v382_v51 }
 0x1bc   :  { %743 = vmatpush.bf16.msrb.mxu3 %v6145_v7 }
 0x1bd   :  { %v670_v34 = vpop.f32.mrf.mxu2 }
 0x1be   :  { %v671_v35 = vadd.f32 %v6821_v46, %v670_v34  ;;  %v587_v46 = vadd.f32 %v6375_v41, %v586_v45  ;;  %v6149_v34 = vld [vmem:[%s8217_s27 + $0x88] sm:$0xff] }
 0x1bf   :  { %v6157_v41 = vld [vmem:[%s8192_s5 + $0x88] sm:$0xff] }
 0x1c0   :  { %744 = vmatpush.bf16.msrb.mxu3 %v6144_v21  ;;  %v760_v37 = vpack.c.bf16 %v671_v35, %v671_v35  ;;  %v758_v47 = vpack.c.bf16 %v587_v46, %v587_v46  ;;  %v6161_v35 = vld [vmem:[%s8192_s5 + $0xa8] sm:$0xff] }
 0x1c2   :  { %v786_v40 = vsel %vm387_vm7, %v760_v37, 0  ;;  %v6160_v37 = vld [vmem:[%s8192_s5 + $0xa0] sm:$0xff] }
 0x1c4   :  { %745 = vmatpush.bf16.msrb.mxu3 %v6143_v15 }
 0x1c8   :  { %746 = vmatpush.bf16.msrb.mxu3 %v6142_v19 }
 0x1cc   :  { %747 = vmatpush.bf16.msrb.mxu3 %v6141_v25 }
 0x1d0   :  { %748 = vmatpush.bf16.msrb.mxu3 %v6140_v26 }
 0x1d4   :  { %749 = vmatpush.bf16.msrb.mxu3 %v6139_v27  ;;  %v6154_v27 = vld [vmem:[%s8217_s27 + $0xb0] sm:$0xff] }
 0x1d8   :  { %750 = vmatpush.bf16.msrb.mxu3 %v6138_v28  ;;  %v6153_v28 = vld [vmem:[%s8217_s27 + $0xa8] sm:$0xff] }
 0x22e   :  { %v403_v57 = vpop.f32.mrf.mxu3 }
 0x22f   :  { %v426_v58 = vmul.f32 0.17677669, %v403_v57 }
 0x231   :  { %v434_v59 = vadd.f32 %v6829_v56, %v426_v58 }
 0x233   :  { %v437_v61 = vsel %vm436_vm9, %v434_v59, -inf }
 0x234   :  { %438 = vmax.xlane.f32.xlu0 %v437_v61 }
 0x236   :  { %v405_v63 = vpop.f32.mrf.mxu3 }
 0x23e   :  { %v422_v2 = vpop.f32.mrf.mxu3 }
 0x23f   :  { %v427_v3 = vmul.f32 0.17677669, %v422_v2 }
 0x241   :  { %v435_v4 = vadd.f32 %v6836_v1, %v427_v3 }
 0x243   :  { %v440_v5 = vsel %vm436_vm9, %v435_v4, -inf }
 0x244   :  { %441 = vmax.xlane.f32.xlu2 %v440_v5 }
 0x246   :  { %v424_v6 = vpop.f32.mrf.mxu3 }
 0x2a7   :  { %v439_v8 = vpop.xlane.xlu0 %438 }
 0x2a8   :  { %v443_v9 = vsub.f32 %v434_v59, %v439_v8 }
 0x2aa   :  { %v445_v10 = vmul.f32 1.442695, %v443_v9 }
 0x2ac   :  { %6414 = vpow2.f32 %v445_v10 }
 0x2b2   :  { %v6415_v11 = vpop.eup %6414 }
 0x2b3   :  { %v449_v13 = vsel %vm436_vm9, %v6415_v11, 0.0 }
 0x2b4   :  { %450 = vadd.xlane.f32.xlu1 %v449_v13  ;;  %v6155_v13 = vld [vmem:[%s8217_s27 + $0xb8] sm:$0xff] }
 0x2b7   :  { %v442_v14 = vpop.xlane.xlu2 %441 }
 0x2b8   :  { %v444_v16 = vsub.f32 %v435_v4, %v442_v14 }
 0x2ba   :  { %v447_v17 = vmul.f32 1.442695, %v444_v16 }
 0x2bc   :  { %6416 = vpow2.f32 %v447_v17 }
 0x2c2   :  { %v6417_v18 = vpop.eup %6416 }
 0x2c3   :  { %v452_v20 = vsel %vm436_vm9, %v6417_v18, 0.0 }
 0x2c4   :  { %453 = vadd.xlane.f32.xlu2 %v452_v20 }
 0x327   :  { %v451_v29 = vpop.xlane.xlu1 %450 }
 0x328   :  { %6418 = vrcp.f32 %v451_v29  ;;  %v6152_v29 = vld [vmem:[%s8217_s27 + $0xa0] sm:$0xff] }
 0x32e   :  { %v6419_v30 = vpop.eup %6418 }
 0x32f   :  { %v457_v31 = vmul.f32 %v6419_v30, %v6415_v11  ;;  %v6151_v30 = vld [vmem:[%s8217_s27 + $0x98] sm:$0xff] }
 0x331   :  { %v459_v32 = vpack.c.bf16 %v457_v31, %v457_v31  ;;  %v6163_v31 = vld [vmem:[%s8192_s5 + $0xb8] sm:$0xff] }
 0x333   :  { %4618 = vmatmul.msk.bf16.vlgmr.msra.gmra.mxu3 %vm436_vm9, %v459_v32  ;;  %v6150_v32 = vld [vmem:[%s8217_s27 + $0x90] sm:$0xff] }
 0x337   :  { %v454_v33 = vpop.xlane.xlu2 %453 }
 0x338   :  { %6420 = vrcp.f32 %v454_v33  ;;  %v6162_v33 = vld [vmem:[%s8192_s5 + $0xb0] sm:$0xff] }
 0x33e   :  { %v6421_v36 = vpop.eup %6420 }
 0x33f   :  { %v458_v38 = vmul.f32 %v6421_v36, %v6417_v18  ;;  %v6148_v36 = vld [vmem:[%s8217_s27 + $0x80] sm:$0xff] }
 0x341   :  { %v460_v39 = vpack.c.bf16 %v458_v38, %v458_v38  ;;  %v6159_v38 = vld [vmem:[%s8192_s5 + $0x98] sm:$0xff] }
 0x343   :  { %4619 = vmatmul.msk.bf16.vlgmr.msrb.gmra.mxu0 %vm436_vm9, %v460_v39  ;;  %751 = vmatmul.bf16.vlgmr.msrb.gmra.mxu3 %v6797_v24  ;;  %v6158_v39 = vld [vmem:[%s8192_s5 + $0x90] sm:$0xff] }
 0x344   :  { %795 = vmatpush.bf16.xpose.msrb.mxu0 %v786_v40 }
 0x353   :  { %4767 = vmatmul.msk.bf16.vlgmr.msra.gmra.mxu0 %vm387_vm7, %v757_v44 }
 0x354   :  { %923 = vmatpush.bf16.msra.mxu0 %v6121_v48 }
 0x358   :  { %924 = vmatpush.bf16.msra.mxu0 %v6120_v49 }
 0x363   :  { %4768 = vmatmul.msk.bf16.vlgmr.msrb.gmra.mxu0 %vm387_vm7, %v758_v47 }
 0x3b6   :  { %v477_v50 = vpop.f32.mrf.mxu3 }
 0x3be   :  { %v479_v51 = vpop.f32.mrf.mxu3 }
 0x3bf   :  { %v6146_v51 = vld [vmem:[%s8197_s10 + $0x10] sm:$0xff] }
 0x3c0   :  { %v496_v52 = vpop.f32.mrf.mxu0 }
 0x3c1   :  { %v500_v53 = vpack.c.bf16 %v496_v52, %v477_v50  ;;  %v6147_v50 = vld [vmem:[%s8197_s10 + $0x18] sm:$0xff] }
 0x3c2   :  { %894 = vmatpush.bf16.msra.mxu3 %v6147_v50  ;;  %v6171_v52 = vld [vmem:[%s8193_s6 + $0xb8] sm:$0xff] }
 0x3c3   :  { %4792 = vmatmul.msk.bf16.vlgmr.msra.gmra.mxu0 %vm387_vm7, %v500_v53  ;;  %v6170_v53 = vld [vmem:[%s8193_s6 + $0xb0] sm:$0xff] }
 0x3c6   :  { %v752_v55 = vpop.f32.mrf.mxu3  ;;  %895 = vmatpush.bf16.msra.mxu3 %v6146_v51 }
 0x3c7   :  { %v753_v57 = vadd.f32 %v6377_v54, %v752_v55  ;;  %v6168_v55 = vld [vmem:[%s8193_s6 + $0xa0] sm:$0xff] }
 0x3c8   :  { %v498_v58 = vpop.f32.mrf.mxu0 }
 0x3c9   :  { %v761_v59 = vpack.c.bf16 %v753_v57, %v753_v57  ;;  %v6167_v57 = vld [vmem:[%s8193_s6 + $0x98] sm:$0xff]  ;;  %v6166_v58 = vld [vmem:[%s8193_s6 + $0x90] sm:$0xff] }
 0x3ca   :  { %1169 = vmatpush.bf16.msrb.mxu3 %v6171_v52 }
 0x3cb   :  { %v833_v60 = vsel %vm464_vm8, %v761_v59, 0  ;;  %v6165_v59 = vld [vmem:[%s8193_s6 + $0x88] sm:$0xff] }
 0x3cc   :  { %842 = vmatpush.bf16.msra.mxu1 %v833_v60 }
 0x3ce   :  { %v754_v61 = vpop.f32.mrf.mxu3  ;;  %1170 = vmatpush.bf16.msrb.mxu3 %v6170_v53 }
 0x3cf   :  { %v755_v62 = vadd.f32 %v6377_v54, %v754_v61  ;;  %v6169_v54 = vld [vmem:[%s8193_s6 + $0xa8] sm:$0xff]  ;;  %v6164_v61 = vld [vmem:[%s8193_s6 + $0x80] sm:$0xff] }
 0x3d0   :  { %v778_v63 = vpop.f32.mrf.mxu0  ;;  %1001 = vmatpush.bf16.msrb.mxu1 %v6155_v13 }
 0x3d1   :  { %v762_v0 = vpack.c.bf16 %v755_v62, %v755_v62  ;;  %v801_v2 = vmul.f32 0.17677669, %v778_v63 }
 0x3d2   :  { %1171 = vmatpush.bf16.msrb.mxu3 %v6169_v54  ;;  %v6189_v54 = vld [vmem:[%s8192_s5 + $0xf8] sm:$0xff] }
 0x3d3   :  { %v852_v3 = vsel %vm464_vm8, %v762_v0, 0  ;;  %v803_v4 = vadd.f32 %v801_v2, %v6829_v56 }
 0x3d4   :  { %861 = vmatpush.bf16.msra.mxu2 %v852_v3  ;;  %1002 = vmatpush.bf16.msrb.mxu1 %v6154_v27  ;;  %v6379_v3 = vld [vmem:[%s8195_s8 + $0x2] ss:$0 sm:$0xff]  ;;  %v6177_v27 = vld [vmem:[%s8217_s27 + $0xd8] sm:$0xff] }
 0x3d5   :  { %v805_v5 = vsel %vm436_vm9, %v803_v4, -inf }
 0x3d6   :  { %806 = vmax.xlane.f32.xlu0 %v805_v5  ;;  %1172 = vmatpush.bf16.msrb.mxu3 %v6168_v55 }
 0x3d8   :  { %v780_v6 = vpop.f32.mrf.mxu0  ;;  %1003 = vmatpush.bf16.msrb.mxu1 %v6153_v28  ;;  %1085 = vmatpush.bf16.msrb.mxu2 %v6163_v31  ;;  %v6176_v28 = vld [vmem:[%s8217_s27 + $0xd0] sm:$0xff] }
 0x3d9   :  { %v6378_v6 = vld [vmem:[%s8194_s7 + $0x2] ss:$0 sm:$0xff] }
 0x3da   :  { %1173 = vmatpush.bf16.msrb.mxu3 %v6167_v57 }
 0x3dc   :  { %1004 = vmatpush.bf16.msrb.mxu1 %v6152_v29  ;;  %1086 = vmatpush.bf16.msrb.mxu2 %v6162_v33  ;;  %v6175_v29 = vld [vmem:[%s8217_s27 + $0xc8] sm:$0xff] }
 0x3de   :  { %1174 = vmatpush.bf16.msrb.mxu3 %v6166_v58 }
 0x3e0   :  { %v797_v7 = vpop.f32.mrf.mxu0  ;;  %1005 = vmatpush.bf16.msrb.mxu1 %v6151_v30  ;;  %1087 = vmatpush.bf16.msrb.mxu2 %v6161_v35  ;;  %v6174_v30 = vld [vmem:[%s8217_s27 + $0xc0] sm:$0xff] }
 0x3e1   :  { %v802_v8 = vmul.f32 0.17677669, %v797_v7  ;;  %v6380_v35 = vld [vmem:[%s8196_s9 + $0x2] ss:$0 sm:$0xff] }
 0x3e2   :  { %1175 = vmatpush.bf16.msrb.mxu3 %v6165_v59 }
 0x3e3   :  { %v804_v9 = vadd.f32 %v802_v8, %v6836_v1 }
 0x3e4   :  { %1006 = vmatpush.bf16.msrb.mxu1 %v6150_v32  ;;  %1088 = vmatpush.bf16.msrb.mxu2 %v6160_v37 }
 0x3e5   :  { %v808_v10 = vsel %vm436_vm9, %v804_v9, -inf }
 0x3e6   :  { %809 = vmax.xlane.f32.xlu2 %v808_v10  ;;  %1176 = vmatpush.bf16.msrb.mxu3 %v6164_v61 }
 0x3e8   :  { %v799_v11 = vpop.f32.mrf.mxu0  ;;  %1007 = vmatpush.bf16.msrb.mxu1 %v6149_v34  ;;  %1089 = vmatpush.bf16.msrb.mxu2 %v6159_v38 }
 0x3ec   :  { %1008 = vmatpush.bf16.msrb.mxu1 %v6148_v36  ;;  %1090 = vmatpush.bf16.msrb.mxu2 %v6158_v39 }
 0x3f0   :  { %1091 = vmatpush.bf16.msrb.mxu2 %v6157_v41 }
 0x3f4   :  { %1092 = vmatpush.bf16.msrb.mxu2 %v6156_v42 }
 0x440   :  { %v7015_v32 = vpop.f32.mrf.mxu0 }
 0x448   :  { %v7019_v34 = vpop.f32.mrf.mxu0 }
 0x449   :  { %v807_v14 = vpop.xlane.xlu0 %806 }
 0x44a   :  { %v811_v16 = vsub.f32 %v803_v4, %v807_v14 }
 0x44c   :  { %v813_v17 = vmul.f32 1.442695, %v811_v16 }
 0x44e   :  { %6422 = vpow2.f32 %v813_v17  ;;  %v6181_v17 = vld [vmem:[%s8217_s27 + $0xf8] sm:$0xff] }
 0x454   :  { %v6423_v18 = vpop.eup %6422 }
 0x455   :  { %v817_v20 = vsel %vm436_vm9, %v6423_v18, 0.0 }
 0x456   :  { %818 = vadd.xlane.f32.xlu2 %v817_v20  ;;  %v6180_v20 = vld [vmem:[%s8217_s27 + $0xf0] sm:$0xff] }
 0x459   :  { %v810_v21 = vpop.xlane.xlu2 %809 }
 0x45a   :  { %v812_v15 = vsub.f32 %v804_v9, %v810_v21  ;;  %v6179_v21 = vld [vmem:[%s8217_s27 + $0xe8] sm:$0xff] }
 0x45c   :  { %v815_v19 = vmul.f32 1.442695, %v812_v15 }
 0x45e   :  { %6424 = vpow2.f32 %v815_v19 }
 0x464   :  { %v6425_v25 = vpop.eup %6424 }
 0x465   :  { %v820_v26 = vsel %vm436_vm9, %v6425_v25, 0.0 }
 0x466   :  { %821 = vadd.xlane.f32.xlu1 %v820_v26 }
 0x4c9   :  { %v819_v40 = vpop.xlane.xlu2 %818 }
 0x4ca   :  { %6426 = vrcp.f32 %v819_v40 }
 0x4d0   :  { %v6427_v43 = vpop.eup %6426 }
 0x4d1   :  { %v825_v44 = vmul.f32 %v6427_v43, %v6423_v18 }
 0x4d3   :  { %v827_v45 = vpack.c.bf16 %v825_v44, %v825_v44 }
 0x4d5   :  { %4769 = vmatmul.msk.bf16.vlgmr.msra.gmra.mxu1 %vm436_vm9, %v827_v45 }
 0x4d9   :  { %v822_v46 = vpop.xlane.xlu1 %821 }
 0x4da   :  { %6428 = vrcp.f32 %v822_v46 }
 0x4e0   :  { %v6429_v47 = vpop.eup %6428 }
 0x4e1   :  { %v826_v48 = vmul.f32 %v6429_v47, %v6425_v25  ;;  %v6178_v25 = vld [vmem:[%s8217_s27 + $0xe0] sm:$0xff] }
 0x4e3   :  { %v828_v49 = vpack.c.bf16 %v826_v48, %v826_v48 }
 0x4e5   :  { %4770 = vmatmul.msk.bf16.vlgmr.msra.gmra.mxu2 %vm436_vm9, %v828_v49  ;;  %1009 = vmatmul.bf16.vlgmr.msrb.gmra.mxu1 %v6797_v24 }
 0x4f5   :  { %1093 = vmatmul.bf16.vlgmr.msrb.gmra.mxu2 %v6797_v24 }
 0x552   :  { %v844_v60 = vpop.f32.mrf.mxu1 }
 0x55a   :  { %v846_v62 = vpop.f32.mrf.mxu1 }
 0x562   :  { %v1010_v8 = vpop.f32.mrf.mxu1 }
 0x563   :  { %v1011_v10 = vadd.f32 %v6378_v6, %v1010_v8  ;;  %v6184_v8 = vld [vmem:[%s8192_s5 + $0xd0] sm:$0xff] }
 0x565   :  { %v1183_v14 = vpack.c.bf16 %v1011_v10, %v1011_v10  ;;  %v6183_v10 = vld [vmem:[%s8192_s5 + $0xc8] sm:$0xff] }
 0x568   :  { %v863_v63 = vpop.f32.mrf.mxu2 }
 0x569   :  { %v867_v0 = vpack.c.bf16 %v863_v63, %v844_v60 }
 0x56a   :  { %v1012_v15 = vpop.f32.mrf.mxu1 }
 0x56b   :  { %4783 = vmatmul.msk.bf16.vlgmr.msra.gmra.mxu3 %vm387_vm7, %v867_v0  ;;  %v1013_v19 = vadd.f32 %v6378_v6, %v1012_v15  ;;  %v6185_v6 = vld [vmem:[%s8192_s5 + $0xd8] sm:$0xff] }
 0x56d   :  { %v1184_v26 = vpack.c.bf16 %v1013_v19, %v1013_v19 }
 0x570   :  { %v865_v2 = vpop.f32.mrf.mxu2 }
 0x578   :  { %v1094_v4 = vpop.f32.mrf.mxu2 }
 0x579   :  { %v1095_v5 = vadd.f32 %v6379_v3, %v1094_v4  ;;  %v6187_v4 = vld [vmem:[%s8192_s5 + $0xe8] sm:$0xff] }
 0x57b   :  { %v1185_v7 = vpack.c.bf16 %v1095_v5, %v1095_v5  ;;  %1177 = vmatmul.bf16.vlgmr.msrb.gmra.mxu3 %v6797_v24  ;;  %v6186_v5 = vld [vmem:[%s8192_s5 + $0xe0] sm:$0xff] }
 0x57d   :  { %v1193_v9 = vsel %vm387_vm7, %v1185_v7, 0  ;;  %v6197_v7 = vld [vmem:[%s8193_s6 + $0xf8] sm:$0xff] }
 0x57e   :  { %1202 = vmatpush.bf16.xpose.msrb.mxu0 %v1193_v9  ;;  %v6196_v9 = vld [vmem:[%s8193_s6 + $0xf0] sm:$0xff] }
 0x580   :  { %v1096_v11 = vpop.f32.mrf.mxu2 }
 0x581   :  { %v1097_v13 = vadd.f32 %v6379_v3, %v1096_v11  ;;  %v6188_v3 = vld [vmem:[%s8192_s5 + $0xf0] sm:$0xff]  ;;  %v6195_v11 = vld [vmem:[%s8193_s6 + $0xe8] sm:$0xff] }
 0x583   :  { %v1186_v16 = vpack.c.bf16 %v1097_v13, %v1097_v13  ;;  %v6182_v13 = vld [vmem:[%s8192_s5 + $0xc0] sm:$0xff] }
 0x585   :  { %4940 = vmatmul.msk.bf16.vlgmr.msrb.gmra.mxu0 %vm387_vm7, %v1183_v14  ;;  %v1212_v18 = vsel %vm387_vm7, %v1186_v16, 0  ;;  %v6194_v14 = vld [vmem:[%s8193_s6 + $0xe0] sm:$0xff]  ;;  %v6193_v16 = vld [vmem:[%s8193_s6 + $0xd8] sm:$0xff] }
 0x586   :  { %1221 = vmatpush.bf16.xpose.msra.mxu0 %v1212_v18 }
 0x58e   :  { %1400 = vmatpush.bf16.msrb.mxu0 %v6181_v17  ;;  %v6192_v17 = vld [vmem:[%s8193_s6 + $0xd0] sm:$0xff] }
 0x592   :  { %1401 = vmatpush.bf16.msrb.mxu0 %v6180_v20  ;;  %v6191_v20 = vld [vmem:[%s8193_s6 + $0xc8] sm:$0xff] }
 0x595   :  { %4941 = vmatmul.msk.bf16.vlgmr.msra.gmra.mxu0 %vm387_vm7, %v1184_v26 }
 0x596   :  { %1402 = vmatpush.bf16.msrb.mxu0 %v6179_v21  ;;  %v6190_v21 = vld [vmem:[%s8193_s6 + $0xc0] sm:$0xff] }
 0x59a   :  { %1403 = vmatpush.bf16.msrb.mxu0 %v6178_v25 }
 0x59e   :  { %1404 = vmatpush.bf16.msrb.mxu0 %v6177_v27 }
 0x5a2   :  { %1405 = vmatpush.bf16.msrb.mxu0 %v6176_v28 }
 0x5a6   :  { %1406 = vmatpush.bf16.msrb.mxu0 %v6175_v29 }
 0x5aa   :  { %1407 = vmatpush.bf16.msrb.mxu0 %v6174_v30  ;;  %v6173_v30 = vld [vmem:[%s8197_s10 + $0x28] sm:$0xff] }
 0x5ab   :  { %1320 = vmatpush.bf16.msra.mxu3 %v6173_v30 }
 0x5ad   :  { %1408 = vmatmul.bf16.vlgmr.msrb.gmra.mxu0 %v6797_v24 }
 0x5ee   :  { %v7013_v31 = vpop.f32.mrf.mxu3 }
 0x5f6   :  { %v7017_v33 = vpop.f32.mrf.mxu3 }
 0x5fe   :  { %v1178_v36 = vpop.f32.mrf.mxu3 }
 0x5ff   :  { %v1179_v37 = vadd.f32 %v6380_v35, %v1178_v36 }
 0x601   :  { %v1187_v38 = vpack.c.bf16 %v1179_v37, %v1179_v37 }
 0x602   :  { %v1204_v39 = vpop.f32.mrf.mxu0 }
 0x603   :  { %v1259_v40 = vsel %vm464_vm8, %v1187_v38, 0  ;;  %v1227_v41 = vmul.f32 0.17677669, %v1204_v39  ;;  %v6382_v38 = vld [vmem:[%s8195_s8 + $0x3] ss:$0 sm:$0xff] }
 0x604   :  { %1268 = vmatpush.bf16.msra.mxu1 %v1259_v40 }
 0x605   :  { %v1229_v42 = vadd.f32 %v1227_v41, %v6829_v56 }
 0x606   :  { %v1180_v43 = vpop.f32.mrf.mxu3 }
 0x607   :  { %v1181_v44 = vadd.f32 %v6380_v35, %v1180_v43  ;;  %v1231_v45 = vsel %vm436_vm9, %v1229_v42, -inf  ;;  %v6172_v35 = vld [vmem:[%s8197_s10 + $0x20] sm:$0xff] }
 0x608   :  { %1232 = vmax.xlane.f32.xlu0 %v1231_v45  ;;  %1484 = vmatpush.bf16.msrb.mxu1 %v6189_v54 }
 0x609   :  { %v1188_v46 = vpack.c.bf16 %v1181_v44, %v1181_v44  ;;  %1321 = vmatpush.bf16.msra.mxu3 %v6172_v35 }
 0x60a   :  { %v1206_v47 = vpop.f32.mrf.mxu0 }
 0x60b   :  { %v1278_v48 = vsel %vm464_vm8, %v1188_v46, 0 }
 0x60c   :  { %1287 = vmatpush.bf16.msra.mxu2 %v1278_v48  ;;  %1485 = vmatpush.bf16.msrb.mxu1 %v6188_v3  ;;  %v927_v3 = vadd.f32 %v7015_v32, %v7013_v31 }
 0x610   :  { %1486 = vmatpush.bf16.msrb.mxu1 %v6187_v4  ;;  %1568 = vmatpush.bf16.msrb.mxu2 %v6197_v7 }
 0x612   :  { %v1223_v49 = vpop.f32.mrf.mxu0 }
 0x613   :  { %v1228_v50 = vmul.f32 0.17677669, %v1223_v49  ;;  %v6381_v49 = vld [vmem:[%s8194_s7 + $0x3] ss:$0 sm:$0xff] }
 0x614   :  { %1487 = vmatpush.bf16.msrb.mxu1 %v6186_v5  ;;  %1569 = vmatpush.bf16.msrb.mxu2 %v6196_v9 }
 0x615   :  { %v1230_v51 = vadd.f32 %v1228_v50, %v6836_v1 }
 0x617   :  { %v1234_v52 = vsel %vm436_vm9, %v1230_v51, -inf }
 0x618   :  { %1235 = vmax.xlane.f32.xlu1 %v1234_v52  ;;  %1488 = vmatpush.bf16.msrb.mxu1 %v6185_v6  ;;  %v6383_v52 = vld [vmem:[%s8196_s9 + $0x3] ss:$0 sm:$0xff] }
 0x619   :  { %1570 = vmatpush.bf16.msrb.mxu2 %v6195_v11 }
 0x61a   :  { %v1225_v53 = vpop.f32.mrf.mxu0 }
 0x61c   :  { %1489 = vmatpush.bf16.msrb.mxu1 %v6184_v8 }
 0x61d   :  { %1571 = vmatpush.bf16.msrb.mxu2 %v6194_v14 }
 0x620   :  { %1490 = vmatpush.bf16.msrb.mxu1 %v6183_v10 }
 0x621   :  { %1572 = vmatpush.bf16.msrb.mxu2 %v6193_v16 }
 0x624   :  { %1491 = vmatpush.bf16.msrb.mxu1 %v6182_v13 }
 0x625   :  { %1573 = vmatpush.bf16.msrb.mxu2 %v6192_v17 }
 0x629   :  { %1574 = vmatpush.bf16.msrb.mxu2 %v6191_v20 }
 0x62a   :  { %v1409_v50 = vpop.f32.mrf.mxu0 }
 0x62d   :  { %1575 = vmatpush.bf16.msrb.mxu2 %v6190_v21 }
 0x67b   :  { %v1233_v55 = vpop.xlane.xlu0 %1232 }
 0x67c   :  { %v1237_v57 = vsub.f32 %v1229_v42, %v1233_v55 }
 0x67e   :  { %v1239_v58 = vmul.f32 1.442695, %v1237_v57 }
 0x680   :  { %6430 = vpow2.f32 %v1239_v58 }
 0x686   :  { %v6431_v59 = vpop.eup %6430 }
 0x687   :  { %v1243_v60 = vsel %vm436_vm9, %v6431_v59, 0.0 }
 0x688   :  { %1244 = vadd.xlane.f32.xlu2 %v1243_v60 }
 0x68b   :  { %v1236_v61 = vpop.xlane.xlu1 %1235 }
 0x68c   :  { %v1238_v62 = vsub.f32 %v1230_v51, %v1236_v61  ;;  %v1410_v51 = vadd.f32 %v6381_v49, %v1409_v50  ;;  %v1411_v61 = vpop.f32.mrf.mxu0 }
 0x68e   :  { %v1241_v63 = vmul.f32 1.442695, %v1238_v62  ;;  %v1582_v54 = vpack.c.bf16 %v1410_v51, %v1410_v51  ;;  %v929_v51 = vadd.f32 %v7019_v34, %v7017_v33 }
 0x690   :  { %6432 = vpow2.f32 %v1241_v63  ;;  %v1412_v63 = vadd.f32 %v6381_v49, %v1411_v61 }
 0x696   :  { %v6433_v0 = vpop.eup %6432 }
 0x697   :  { %v1246_v2 = vsel %vm436_vm9, %v6433_v0, 0.0 }
 0x698   :  { %1247 = vadd.xlane.f32.xlu0 %v1246_v2  ;;  %v1583_v2 = vpack.c.bf16 %v1412_v63, %v1412_v63 }
 0x6fb   :  { %v1245_v18 = vpop.xlane.xlu2 %1244 }
 0x6fc   :  { %6434 = vrcp.f32 %v1245_v18 }
 0x702   :  { %v6435_v15 = vpop.eup %6434 }
 0x703   :  { %v1251_v19 = vmul.f32 %v6435_v15, %v6431_v59 }
 0x705   :  { %v1253_v25 = vpack.c.bf16 %v1251_v19, %v1251_v19 }
 0x707   :  { %4942 = vmatmul.msk.bf16.vlgmr.msra.gmra.mxu1 %vm436_vm9, %v1253_v25 }
 0x70b   :  { %v1248_v26 = vpop.xlane.xlu0 %1247 }
 0x70c   :  { %6436 = vrcp.f32 %v1248_v26 }
 0x712   :  { %v6437_v27 = vpop.eup %6436 }
 0x713   :  { %v1252_v28 = vmul.f32 %v6437_v27, %v6433_v0 }
 0x715   :  { %v1254_v29 = vpack.c.bf16 %v1252_v28, %v1252_v28 }
 0x717   :  { %4943 = vmatmul.msk.bf16.vlgmr.msra.gmra.mxu2 %vm436_vm9, %v1254_v29  ;;  %1492 = vmatmul.bf16.vlgmr.msrb.gmra.mxu1 %v6797_v24 }
 0x727   :  { %1576 = vmatmul.bf16.vlgmr.msrb.gmra.mxu2 %v6797_v24 }
 0x784   :  { %v1270_v36 = vpop.f32.mrf.mxu1 }
 0x78c   :  { %v1272_v37 = vpop.f32.mrf.mxu1 }
 0x794   :  { %v1493_v39 = vpop.f32.mrf.mxu1 }
 0x795   :  { %v1494_v40 = vadd.f32 %v6382_v38, %v1493_v39 }
 0x797   :  { %v1584_v41 = vpack.c.bf16 %v1494_v40, %v1494_v40 }
 0x799   :  { %v1592_v24 = vsel %vm387_vm7, %v1584_v41, 0  ;;  %v6199_v41 = vld [vmem:[%s8197_s10 + $0x38] sm:$0xff] }
 0x79a   :  { %v1289_v42 = vpop.f32.mrf.mxu2  ;;  %1601 = vmatpush.bf16.xpose.msrb.mxu3 %v1592_v24  ;;  %1719 = vmatpush.bf16.msra.mxu2 %v6199_v41  ;;  %v6198_v24 = vld [vmem:[%s8197_s10 + $0x30] sm:$0xff] }
 0x79b   :  { %v1293_v43 = vpack.c.bf16 %v1289_v42, %v1270_v36 }
 0x79c   :  { %v1495_v44 = vpop.f32.mrf.mxu1 }
 0x79d   :  { %v1496_v45 = vadd.f32 %v6382_v38, %v1495_v44  ;;  %4956 = vmatmul.msk.bf16.vlgmr.msra.gmra.mxu3 %vm387_vm7, %v1293_v43 }
 0x79e   :  { %1720 = vmatpush.bf16.msra.mxu2 %v6198_v24  ;;  %v5131_v24 = vld [vmem:[%s8201_s14 + $0x10] sm:$0xf] }
 0x79f   :  { %v1585_v46 = vpack.c.bf16 %v1496_v45, %v1496_v45 }
 0x7a1   :  { %v1611_v47 = vsel %vm387_vm7, %v1585_v46, 0 }
 0x7a2   :  { %v1291_v48 = vpop.f32.mrf.mxu2  ;;  %1620 = vmatpush.bf16.xpose.msra.mxu3 %v1611_v47  ;;  %v6384_v47 = vld [vmem:[%s8198_s11] ss:$0 sm:$0xff] }
 0x7aa   :  { %v1577_v53 = vpop.f32.mrf.mxu2 }
 0x7ab   :  { %v1578_v55 = vadd.f32 %v6383_v52, %v1577_v53 }
 0x7ad   :  { %v1586_v57 = vpack.c.bf16 %v1578_v55, %v1578_v55  ;;  %5104 = vmatmul.msk.bf16.vlgmr.msrb.gmra.mxu3 %vm387_vm7, %v1582_v54 }
 0x7af   :  { %v1658_v58 = vsel %vm464_vm8, %v1586_v57, 0 }
 0x7b0   :  { %1667 = vmatpush.bf16.msra.mxu0 %v1658_v58 }
 0x7b2   :  { %v1579_v59 = vpop.f32.mrf.mxu2 }
 0x7b3   :  { %v1580_v60 = vadd.f32 %v6383_v52, %v1579_v59 }
 0x7b5   :  { %v1587_v62 = vpack.c.bf16 %v1580_v60, %v1580_v60 }
 0x7b7   :  { %v1677_v0 = vsel %vm464_vm8, %v1587_v62, 0 }
 0x7b8   :  { %1686 = vmatpush.bf16.msra.mxu1 %v1677_v0  ;;  %v6215_v0 = vld [vmem:[%s8201_s14 + $0x74] sm:$0xf0] }
 0x7bd   :  { %5105 = vmatmul.msk.bf16.vlgmr.msra.gmra.mxu3 %vm387_vm7, %v1583_v2  ;;  %v6214_v2 = vld [vmem:[%s8201_s14 + $0x74] sm:$0xf] }
 0x820   :  { %v1323_v4 = vpop.f32.mrf.mxu3 }
 0x821   :  { %v1328_v5 = vadd.f32 %v1323_v4, %v927_v3  ;;  %v5181_v4 = vld [vmem:[%s8201_s14 + $0x78] sm:$0xf0] }
 0x828   :  { %v1325_v6 = vpop.f32.mrf.mxu3 }
 0x829   :  { %v1329_v53 = vadd.f32 %v1325_v6, %v929_v51  ;;  %v5171_v6 = vld [vmem:[%s8201_s14 + $0x60] sm:$0xf]  ;;  %v5125_v51 = vld [vmem:[%s8201_s14 + $0x8] sm:$0xf0] }
 0x830   :  { %v1603_v7 = vpop.f32.mrf.mxu3 }
 0x831   :  { %v1626_v8 = vmul.f32 0.17677669, %v1603_v7  ;;  %v6213_v7 = vld [vmem:[%s8201_s14 + $0x64] sm:$0xf0] }
 0x833   :  { %v1628_v9 = vadd.f32 %v1626_v8, %v6829_v56  ;;  %v6212_v8 = vld [vmem:[%s8201_s14 + $0x64] sm:$0xf] }
 0x835   :  { %v1630_v10 = vsel %vm436_vm9, %v1628_v9, -inf }
 0x836   :  { %1631 = vmax.xlane.f32.xlu1 %v1630_v10  ;;  %v5173_v10 = vld [vmem:[%s8201_s14 + $0x68] sm:$0xf0] }
 0x838   :  { %v1605_v11 = vpop.f32.mrf.mxu3 }
 0x839   :  { %v5176_v11 = vor.u32 %v6212_v8, %v5173_v10  ;;  %v6385_v8 = vld [vmem:[%s8199_s12] ss:$0 sm:$0xff] }
 0x840   :  { %v1622_v13 = vpop.f32.mrf.mxu3 }
 0x841   :  { %v1627_v14 = vmul.f32 0.17677669, %v1622_v13  ;;  %v5163_v13 = vld [vmem:[%s8201_s14 + $0x50] sm:$0xf] }
 0x843   :  { %v1629_v16 = vadd.f32 %v1627_v14, %v6836_v1  ;;  %v6211_v14 = vld [vmem:[%s8201_s14 + $0x54] sm:$0xf0] }
 0x845   :  { %v1633_v17 = vsel %vm436_vm9, %v1629_v16, -inf }
 0x846   :  { %1634 = vmax.xlane.f32.xlu2 %v1633_v17  ;;  %v5164_v17 = vor.u32 %v6211_v14, %v5163_v13  ;;  %v6386_v14 = vld [vmem:[%s8200_s13] ss:$0 sm:$0xff] }
 0x848   :  { %v1624_v18 = vpop.f32.mrf.mxu3 }
 0x849   :  { %v5165_v18 = vld [vmem:[%s8201_s14 + $0x58] sm:$0xf0] }
 0x8a9   :  { %v1632_v31 = vpop.xlane.xlu1 %1631 }
 0x8aa   :  { %v1636_v32 = vsub.f32 %v1628_v9, %v1632_v31  ;;  %v5172_v9 = vor.u32 %v6213_v7, %v5171_v6 }
 0x8ac   :  { %v1638_v20 = vmul.f32 1.442695, %v1636_v32  ;;  %v5155_v32 = vld [vmem:[%s8201_s14 + $0x40] sm:$0xf] }
 0x8ae   :  { %6438 = vpow2.f32 %v1638_v20  ;;  %v6209_v20 = vld [vmem:[%s8201_s14 + $0x44] sm:$0xf0] }
 0x8b4   :  { %v6439_v21 = vpop.eup %6438 }
 0x8b5   :  { %v1642_v15 = vsel %vm436_vm9, %v6439_v21, 0.0 }
 0x8b6   :  { %1643 = vadd.xlane.f32.xlu0 %v1642_v15  ;;  %v5156_v15 = vor.u32 %v6209_v20, %v5155_v32 }
 0x8b9   :  { %v1635_v19 = vpop.xlane.xlu2 %1634 }
 0x8ba   :  { %v1637_v25 = vsub.f32 %v1629_v16, %v1635_v19  ;;  %v6210_v16 = vld [vmem:[%s8201_s14 + $0x54] sm:$0xf]  ;;  %v5157_v19 = vld [vmem:[%s8201_s14 + $0x48] sm:$0xf0] }
 0x8bb   :  { %v5168_v31 = vor.u32 %v6210_v16, %v5165_v18 }
 0x8bc   :  { %v1640_v26 = vmul.f32 1.442695, %v1637_v25 }
 0x8be   :  { %6440 = vpow2.f32 %v1640_v26  ;;  %v5147_v26 = vld [vmem:[%s8201_s14 + $0x30] sm:$0xf] }
 0x8c4   :  { %v6441_v27 = vpop.eup %6440 }
 0x8c5   :  { %v1645_v28 = vsel %vm436_vm9, %v6441_v27, 0.0 }
 0x8c6   :  { %1646 = vadd.xlane.f32.xlu1 %v1645_v28  ;;  %v6206_v28 = vld [vmem:[%s8201_s14 + $0x34] sm:$0xf] }
 0x929   :  { %v1644_v29 = vpop.xlane.xlu0 %1643 }
 0x92a   :  { %6442 = vrcp.f32 %v1644_v29 }
 0x930   :  { %v6443_v30 = vpop.eup %6442 }
 0x931   :  { %v1650_v35 = vmul.f32 %v6443_v30, %v6439_v21  ;;  %v6208_v21 = vld [vmem:[%s8201_s14 + $0x44] sm:$0xf]  ;;  %v5149_v30 = vld [vmem:[%s8201_s14 + $0x38] sm:$0xf0] }
 0x932   :  { %v5160_v25 = vor.u32 %v6208_v21, %v5157_v19 }
 0x933   :  { %v1652_v36 = vpack.c.bf16 %v1650_v35, %v1650_v35  ;;  %v5152_v35 = vor.u32 %v6206_v28, %v5149_v30  ;;  %v6231_v28 = vld [vmem:[%s8203_s16 + $0x78] sm:$0xff] }
 0x934   :  { %2244 = vmatpush.bf16.msrb.mxu2 %v6231_v28 }
 0x935   :  { %5106 = vmatmul.msk.bf16.vlgmr.msra.gmra.mxu0 %vm436_vm9, %v1652_v36  ;;  %v5139_v36 = vld [vmem:[%s8201_s14 + $0x20] sm:$0xf] }
 0x939   :  { %v1647_v37 = vpop.xlane.xlu1 %1646 }
 0x93a   :  { %6444 = vrcp.f32 %v1647_v37  ;;  %v6205_v37 = vld [vmem:[%s8201_s14 + $0x24] sm:$0xf0] }
 0x940   :  { %v6445_v38 = vpop.eup %6444 }
 0x941   :  { %v1651_v39 = vmul.f32 %v6445_v38, %v6441_v27  ;;  %v6207_v27 = vld [vmem:[%s8201_s14 + $0x34] sm:$0xf0]  ;;  %v6204_v38 = vld [vmem:[%s8201_s14 + $0x24] sm:$0xf] }
 0x942   :  { %v5148_v29 = vor.u32 %v6207_v27, %v5147_v26 }
 0x943   :  { %v1653_v40 = vpack.c.bf16 %v1651_v39, %v1651_v39  ;;  %v5140_v39 = vor.u32 %v6205_v37, %v5139_v36 }
 0x945   :  { %5107 = vmatmul.msk.bf16.vlgmr.msra.gmra.mxu1 %vm436_vm9, %v1653_v40  ;;  %v5141_v40 = vld [vmem:[%s8201_s14 + $0x28] sm:$0xf0] }
 0x946   :  { %v5144_v41 = vor.u32 %v6204_v38, %v5141_v40 }
 0x9b2   :  { %v1669_v42 = vpop.f32.mrf.mxu0 }
 0x9ba   :  { %v1671_v43 = vpop.f32.mrf.mxu0 }
 0x9bb   :  { %v6202_v43 = vld [vmem:[%s8201_s14 + $0x14] sm:$0xf] }
 0x9c2   :  { %v1688_v44 = vpop.f32.mrf.mxu1 }
 0x9c3   :  { %v1692_v45 = vpack.c.bf16 %v1688_v44, %v1669_v42  ;;  %v6203_v42 = vld [vmem:[%s8201_s14 + $0x14] sm:$0xf0] }
 0x9c4   :  { %v5132_v44 = vor.u32 %v6203_v42, %v5131_v24 }
 0x9c5   :  { %5120 = vmatmul.msk.bf16.vlgmr.msra.gmra.mxu2 %vm387_vm7, %v1692_v45  ;;  %v5133_v45 = vld [vmem:[%s8201_s14 + $0x18] sm:$0xf0] }
 0x9ca   :  { %v1690_v46 = vpop.f32.mrf.mxu1 }
 0x9cb   :  { %v5123_v46 = vld [vmem:[%s8201_s14] sm:$0xf] }
 0xa48   :  { %v1722_v48 = vpop.f32.mrf.mxu2 }
 0xa49   :  { %v1727_v49 = vadd.f32 %v1722_v48, %v1328_v5  ;;  %v5184_v5 = vor.u32 %v6214_v2, %v5181_v4 }
 0xa4b   :  { %v1733_v50 = vadd.f32 %v6384_v47, %v1727_v49  ;;  %1906 = vmatpush.bf16.msrb.mxu0 %v5184_v5  ;;  %v5136_v49 = vor.u32 %v6202_v43, %v5133_v45  ;;  %v6223_v43 = vld [vmem:[%s8203_s16 + $0x38] sm:$0xff] }
 0xa4c   :  { %2230 = vmatpush.bf16.msrb.mxu1 %v6223_v43 }
 0xa4d   :  { %v1735_v52 = vadd.f32 %v1733_v50, %v6791_v22  ;;  %v6200_v50 = vld [vmem:[%s8201_s14 + $0x4] sm:$0xf] }
 0xa4f   :  { %1739 = vadd.xlane.f32.xlu2 %v1735_v52  ;;  %1907 = vmatpush.bf16.msrb.mxu0 %v5176_v11 }
 0xa50   :  { %v1724_v54 = vpop.f32.mrf.mxu2 }
 0xa51   :  { %v1728_v55 = vadd.f32 %v1724_v54, %v1329_v53  ;;  %v5128_v54 = vor.u32 %v6200_v50, %v5125_v51 }
 0xa53   :  { %v1734_v57 = vadd.f32 %v6384_v47, %v1728_v55  ;;  %1908 = vmatpush.bf16.msrb.mxu0 %v5168_v31  ;;  %v6201_v47 = vld [vmem:[%s8201_s14 + $0x4] sm:$0xf0]  ;;  %v1806_v31 = vld [vmem:[%s8202_s15] sm:$0x3] }
 0xa54   :  { %v5124_v53 = vor.u32 %v6201_v47, %v5123_v46 }
 0xa55   :  { %v1736_v58 = vadd.f32 %v1734_v57, %v6793_v23  ;;  %v5179_v23 = vld [vmem:[%s8201_s14 + $0x70] sm:$0xf] }
 0xa56   :  { %v5180_v3 = vor.u32 %v6215_v0, %v5179_v23 }
 0xa57   :  { %1741 = vadd.xlane.f32.xlu0 %v1736_v58  ;;  %1909 = vmatpush.bf16.msrb.mxu0 %v5160_v25 }
 0xa58   :  { %1892 = vmatpush.bf16.msrb.mxu3 %v5180_v3 }
 0xa5b   :  { %1910 = vmatpush.bf16.msrb.mxu0 %v5152_v35 }
 0xa5c   :  { %1893 = vmatpush.bf16.msrb.mxu3 %v5172_v9 }
 0xa5f   :  { %1911 = vmatpush.bf16.msrb.mxu0 %v5144_v41 }
 0xa60   :  { %1894 = vmatpush.bf16.msrb.mxu3 %v5164_v17 }
 0xa63   :  { %1912 = vmatpush.bf16.msrb.mxu0 %v5136_v49  ;;  %v6229_v49 = vld [vmem:[%s8203_s16 + $0x68] sm:$0xff] }
 0xa64   :  { %1895 = vmatpush.bf16.msrb.mxu3 %v5156_v15  ;;  %v1808_v15 = vperm.slane %v1806_v31, 0 }
 0xa67   :  { %1913 = vmatpush.bf16.msrb.mxu0 %v5128_v54 }
 0xa68   :  { %1896 = vmatpush.bf16.msrb.mxu3 %v5148_v29 }
 0xa6c   :  { %1897 = vmatpush.bf16.msrb.mxu3 %v5140_v39  ;;  %v6230_v39 = vld [vmem:[%s8203_s16 + $0x70] sm:$0xff] }
 0xa6d   :  { %2245 = vmatpush.bf16.msrb.mxu2 %v6230_v39 }
 0xa70   :  { %1898 = vmatpush.bf16.msrb.mxu3 %v5132_v44 }
 0xa71   :  { %2246 = vmatpush.bf16.msrb.mxu2 %v6229_v49 }
 0xa74   :  { %1899 = vmatpush.bf16.msrb.mxu3 %v5124_v53 }
 0xac2   :  { %v1740_v59 = vpop.xlane.xlu2 %1739 }
 0xac3   :  { %v1743_v60 = vmul.f32 %v1740_v59, %v6661_v12 }
 0xac5   :  { %v7131_v61 = vsub.f32 %v1735_v52, %v1743_v60 }
 0xac7   :  { %v1747_v62 = vmul.f32 %v7131_v61, %v7131_v61 }
 0xac9   :  { %1749 = vadd.xlane.f32.xlu1 %v1747_v62 }
 0xaca   :  { %v1742_v33 = vpop.xlane.xlu0 %1741 }
 0xacb   :  { %v1744_v22 = vmul.f32 %v1742_v33, %v6661_v12 }
 0xacd   :  { %v7136_v34 = vsub.f32 %v1736_v58, %v1744_v22 }
 0xacf   :  { %v1748_v63 = vmul.f32 %v7136_v34, %v7136_v34 }
 0xad1   :  { %1751 = vadd.xlane.f32.xlu2 %v1748_v63 }
 0xb3c   :  { %v1750_v48 = vpop.xlane.xlu1 %1749 }
 0xb3d   :  { %v1753_v52 = vmul.f32 %v1750_v48, %v6661_v12 }
 0xb3f   :  { %v1755_v55 = vadd.f32 1e-12, %v1753_v52 }
 0xb41   :  { %6446 = vrsqrt.f32 %v1755_v55  ;;  %vm1763_vm11 = vweird.f32 %v1755_v55 }
 0xb44   :  { %v1752_v57 = vpop.xlane.xlu2 %1751 }
 0xb45   :  { %v1754_v58 = vmul.f32 %v1752_v57, %v6661_v12 }
 0xb47   :  { %v6447_v59 = vpop.eup %6446  ;;  %v1756_v60 = vadd.f32 1e-12, %v1754_v58 }
 0xb48   :  { %v1758_v62 = vmul.f32 %v6447_v59, %v1755_v55  ;;  %vm1764_vm10 = vweird.f32 %v6447_v59  ;;  %v6222_v55 = vld [vmem:[%s8203_s16 + $0x30] sm:$0xff] }
 0xb49   :  { %6448 = vrsqrt.f32 %v1756_v60  ;;  %vm1765_vm12 = vmor %vm1763_vm11, %vm1764_vm10  ;;  %vm1773_vm14 = vweird.f32 %v1756_v60  ;;  %2231 = vmatpush.bf16.msrb.mxu1 %v6222_v55 }
 0xb4a   :  { %v1759_v33 = vmul.f32 %v6447_v59, %v1758_v62 }
 0xb4c   :  { %v1760_v22 = vmul.f32 0.5, %v1759_v33 }
 0xb4e   :  { %v1761_v63 = vsub.f32 1.5, %v1760_v22 }
 0xb4f   :  { %v6449_v23 = vpop.eup %6448 }
 0xb50   :  { %v1762_v0 = vmul.f32 %v6447_v59, %v1761_v63  ;;  %v1768_v2 = vmul.f32 %v6449_v23, %v1756_v60  ;;  %vm1774_vm13 = vweird.f32 %v6449_v23 }
 0xb51   :  { %vm1775_vm15 = vmor %vm1773_vm14, %vm1774_vm13 }
 0xb52   :  { %v1769_v3 = vmul.f32 %v6449_v23, %v1768_v2  ;;  %v1766_v4 = vsel %vm1765_vm12, %v6447_v59, %v1762_v0 }
 0xb53   :  { %v1777_v7 = vmul.f32 %v1766_v4, %v7131_v61 }
 0xb54   :  { %v1770_v5 = vmul.f32 0.5, %v1769_v3 }
 0xb55   :  { %v1782_v13 = vmul.f32 %v6385_v8, %v1777_v7 }
 0xb56   :  { %v1771_v6 = vsub.f32 1.5, %v1770_v5  ;;  %v6221_v5 = vld [vmem:[%s8203_s16 + $0x28] sm:$0xff] }
 0xb57   :  { %v7246_v17 = vadd.f32 %v6386_v14, %v1782_v13  ;;  %2232 = vmatpush.bf16.msrb.mxu1 %v6221_v5  ;;  %v6217_v5 = vld [vmem:[%s8203_s16 + $0x8] sm:$0xff] }
 0xb58   :  { %v1772_v9 = vmul.f32 %v6449_v23, %v1771_v6 }
 0xb5a   :  { %v1776_v10 = vsel %vm1775_vm15, %v6449_v23, %v1772_v9  ;;  %v6228_v23 = vld [vmem:[%s8203_s16 + $0x60] sm:$0xff] }
 0xb5b   :  { %v1778_v11 = vmul.f32 %v1776_v10, %v7136_v34  ;;  %v1809_v34 = vperm.slane %v1806_v31, 1  ;;  %2247 = vmatpush.bf16.msrb.mxu2 %v6228_v23 }
 0xb5d   :  { %v1783_v16 = vmul.f32 %v6385_v8, %v1778_v11 }
 0xb5f   :  { %v7248_v18 = vadd.f32 %v6386_v14, %v1783_v16  ;;  %v6227_v14 = vld [vmem:[%s8203_s16 + $0x58] sm:$0xff] }
 0xb60   :  { %2248 = vmatpush.bf16.msrb.mxu2 %v6227_v14 }
 0xb61   :  { %v1805_v61 = vpack.c.bf16 %v7248_v18, %v7246_v17 }
 0xb63   :  { %1900 = vmatmul.bf16.vlgmr.msrb.gmra.mxu3 %v1805_v61  ;;  %1914 = vmatmul.bf16.vlgmr.msrb.gmra.mxu0 %v1805_v61 }
 0xbe0   :  { %v1915_v32 = vpop.f32.mrf.mxu0 }
 0xbe1   :  { %v7255_v20 = vadd.f32 %v1915_v32, %v1809_v34  ;;  %v6220_v32 = vld [vmem:[%s8203_s16 + $0x20] sm:$0xff] }
 0xbe2   :  { %2233 = vmatpush.bf16.msrb.mxu1 %v6220_v32 }
 0xbe3   :  { %v7258_v21 = vmul.f32 0.70710677, %v7255_v20 }
 0xbe5   :  { %v1968_v19 = vmul.f32 %v7258_v21, %v7258_v21 }
 0xbe6   :  { %v1901_v25 = vpop.f32.mrf.mxu3 }
 0xbe7   :  { %v7262_v26 = vmin.f32 %v1968_v19, 16.0  ;;  %v7264_v27 = vadd.f32 %v1901_v25, %v1808_v15 }
 0xbe8   :  { %v1917_v29 = vpop.f32.mrf.mxu0 }
 0xbe9   :  { %v1970_v30 = vmul.f32 2.1237322e-06, %v7262_v26  ;;  %v1981_v35 = vmul.f32 3.8918573e-05, %v7262_v26  ;;  %v7271_v36 = vadd.f32 %v1917_v29, %v1809_v34  ;;  %v7274_v37 = vmul.f32 0.70710677, %v7264_v27 }
 0xbeb   :  { %v1982_v38 = vadd.f32 0.001143296, %v1981_v35  ;;  %v1971_v40 = vadd.f32 0.00028619796, %v1970_v30  ;;  %v1928_v41 = vmul.f32 %v7274_v37, %v7274_v37  ;;  %v7282_v24 = vmul.f32 0.70710677, %v7271_v36 }
 0xbec   :  { %v6226_v30 = vld [vmem:[%s8203_s16 + $0x50] sm:$0xff] }
 0xbed   :  { %v1983_v42 = vmul.f32 %v1982_v38, %v7262_v26  ;;  %v7288_v44 = vmin.f32 %v1928_v41, 16.0  ;;  %v2048_v45 = vmul.f32 %v7282_v24, %v7282_v24  ;;  %v1972_v50 = vmul.f32 %v1971_v40, %v7262_v26  ;;  %2249 = vmatpush.bf16.msrb.mxu2 %v6226_v30 }
 0xbee   :  { %v1903_v46 = vpop.f32.mrf.mxu3 }
 0xbef   :  { %v1984_v47 = vadd.f32 0.014752088, %v1983_v42  ;;  %v7292_v48 = vadd.f32 %v1903_v46, %v1808_v15  ;;  %v1941_v51 = vmul.f32 3.8918573e-05, %v7288_v44  ;;  %v7299_v52 = vmin.f32 %v2048_v45, 16.0  ;;  %v6219_v42 = vld [vmem:[%s8203_s16 + $0x18] sm:$0xff] }
 0xbf0   :  { %v1930_v57 = vmul.f32 2.1237322e-06, %v7288_v44  ;;  %v1973_v22 = vadd.f32 0.0036580483, %v1972_v50  ;;  %2234 = vmatpush.bf16.msrb.mxu1 %v6219_v42 }
 0xbf1   :  { %v1985_v53 = vmul.f32 %v1984_v47, %v7262_v26  ;;  %v7303_v54 = vmul.f32 0.70710677, %v7292_v48  ;;  %v1942_v58 = vadd.f32 0.001143296, %v1941_v51  ;;  %v2050_v59 = vmul.f32 2.1237322e-06, %v7299_v52 }
 0xbf2   :  { %v2061_v62 = vmul.f32 3.8918573e-05, %v7299_v52  ;;  %v1931_v6 = vadd.f32 0.00028619796, %v1930_v57  ;;  %v1974_v16 = vmul.f32 %v1973_v22, %v7262_v26  ;;  %v6225_v47 = vld [vmem:[%s8203_s16 + $0x48] sm:$0xff] }
 0xbf3   :  { %v1986_v60 = vadd.f32 0.112945676, %v1985_v53  ;;  %v2008_v33 = vmul.f32 %v7303_v54, %v7303_v54  ;;  %v1943_v63 = vmul.f32 %v1942_v58, %v7288_v44  ;;  %v2051_v2 = vadd.f32 0.00028619796, %v2050_v59  ;;  %v6218_v58 = vld [vmem:[%s8203_s16 + $0x10] sm:$0xff]  ;;  %2250 = vmatpush.bf16.msrb.mxu2 %v6225_v47 }
 0xbf4   :  { %v2062_v3 = vadd.f32 0.001143296, %v2061_v62  ;;  %v1932_v15 = vmul.f32 %v1931_v6, %v7288_v44  ;;  %v1975_v39 = vadd.f32 0.05243302, %v1974_v16  ;;  %2235 = vmatpush.bf16.msrb.mxu1 %v6218_v58 }
 0xbf5   :  { %v1987_v0 = vmul.f32 %v1986_v60, %v7262_v26  ;;  %v7318_v4 = vmin.f32 %v2008_v33, 16.0  ;;  %v1944_v7 = vadd.f32 0.014752088, %v1943_v63  ;;  %v2052_v31 = vmul.f32 %v2051_v2, %v7299_v52  ;;  %v6224_v63 = vld [vmem:[%s8203_s16 + $0x40] sm:$0xff] }
 0xbf6   :  { %v2063_v9 = vmul.f32 %v2062_v3, %v7299_v52  ;;  %v1933_v43 = vadd.f32 0.0036580483, %v1932_v15  ;;  %v1976_v51 = vmul.f32 %v1975_v39, %v7262_v26 }
 0xbf7   :  { %v1988_v8 = vadd.f32 0.4994258, %v1987_v0  ;;  %v1945_v10 = vmul.f32 %v1944_v7, %v7288_v44  ;;  %v2010_v11 = vmul.f32 2.1237322e-06, %v7318_v4  ;;  %v2021_v13 = vmul.f32 3.8918573e-05, %v7318_v4  ;;  %2251 = vmatpush.bf16.msrb.mxu2 %v6224_v63 }
 0xbf8   :  { %v2064_v34 = vadd.f32 0.014752088, %v2063_v9  ;;  %v2053_v40 = vadd.f32 0.0036580483, %v2052_v31  ;;  %v1934_v59 = vmul.f32 %v1933_v43, %v7288_v44  ;;  %v1977_v2 = vadd.f32 0.18741608, %v1976_v51  ;;  %2236 = vmatpush.bf16.msrb.mxu1 %v6217_v5 }
 0xbf9   :  { %v1989_v61 = vmul.f32 %v1988_v8, %v7262_v26  ;;  %v1946_v19 = vadd.f32 0.112945676, %v1945_v10  ;;  %v2022_v25 = vadd.f32 0.001143296, %v2021_v13  ;;  %v2011_v38 = vadd.f32 0.00028619796, %v2010_v11 }
 0xbfa   :  { %v2065_v29 = vmul.f32 %v2064_v34, %v7299_v52  ;;  %v2054_v53 = vmul.f32 %v2053_v40, %v7299_v52  ;;  %v1935_v7 = vadd.f32 0.05243302, %v1934_v59  ;;  %v1978_v16 = vmul.f32 %v1977_v2, %v7262_v26  ;;  %v6216_v31 = vld [vmem:[%s8203_s16] sm:$0xff] }
 0xbfb   :  { %v7337_v28 = vadd.f32 1.0, %v1989_v61  ;;  %v1947_v35 = vmul.f32 %v1946_v19, %v7288_v44  ;;  %v2023_v41 = vmul.f32 %v2022_v25, %v7318_v4  ;;  %v2012_v50 = vmul.f32 %v2011_v38, %v7318_v4 }
 0xbfc   :  { %v2066_v46 = vadd.f32 0.112945676, %v2065_v29  ;;  %v2055_v3 = vadd.f32 0.05243302, %v2054_v53  ;;  %v1936_v15 = vmul.f32 %v1935_v7, %v7288_v44  ;;  %2237 = vmatpush.bf16.msrb.mxu1 %v6216_v31  ;;  %v1979_v39 = vadd.f32 1.1283791, %v1978_v16 }
 0xbfd   :  { %6450 = vrcp.f32 %v7337_v28  ;;  %v1948_v45 = vadd.f32 0.4994258, %v1947_v35  ;;  %v2024_v57 = vadd.f32 0.014752088, %v2023_v41  ;;  %v2013_v0 = vadd.f32 0.0036580483, %v2012_v50 }
 0xbfe   :  { %v2067_v55 = vmul.f32 %v2066_v46, %v7299_v52  ;;  %v2056_v61 = vmul.f32 %v2055_v3, %v7299_v52  ;;  %v2002_v19 = vand.u32 2147483648, %v7337_v28  ;;  %vm1996_vm1 = vweird.f32 %v7337_v28 }
 0xbff   :  { %v1949_v49 = vmul.f32 %v1948_v45, %v7288_v44  ;;  %v2025_v22 = vmul.f32 %v2024_v57, %v7318_v4  ;;  %v2014_v13 = vmul.f32 %v2013_v0, %v7318_v4  ;;  %v2000_v26 = vand.u32 2147483647, %v7337_v28 }
 0xc00   :  { %v2068_v33 = vadd.f32 0.4994258, %v2067_v55  ;;  %v2057_v38 = vadd.f32 0.18741608, %v2056_v61  ;;  %v1937_v41 = vadd.f32 0.18741608, %v1936_v15  ;;  %v1980_v53 = vmul.f32 %v1979_v39, %v7258_v21 }
 0xc01   :  { %v7361_v60 = vadd.f32 1.0, %v1949_v49  ;;  %v2026_v9 = vadd.f32 0.112945676, %v2025_v22  ;;  %v2015_v29 = vadd.f32 0.05243302, %v2014_v13  ;;  %v2003_v43 = vor.u32 1.1754944e-38, %v2002_v19 }
 0xc02   :  { %v2069_v8 = vmul.f32 %v2068_v33, %v7299_v52  ;;  %vm2001_vm3 = vcmp.eq.f32.partialorder %v2000_v26, 8.507059e+37  ;;  %v1938_v55 = vmul.f32 %v1937_v41, %v7288_v44 }
 0xc03   :  { %v6451_v62 = vpop.eup %6450  ;;  %6452 = vrcp.f32 %v7361_v60  ;;  %v2027_v14 = vmul.f32 %v2026_v9, %v7318_v4  ;;  %v2016_v47 = vmul.f32 %v2015_v29, %v7318_v4  ;;  %vm1956_vm4 = vweird.f32 %v7361_v60 }
 0xc04   :  { %v1992_v23 = vmul.f32 %v6451_v62, %v7337_v28  ;;  %v7373_v11 = vadd.f32 1.0, %v2069_v8  ;;  %vm1997_vm0 = vweird.f32 %v6451_v62  ;;  %v2058_v28 = vmul.f32 %v2057_v38, %v7299_v52 }
 0xc05   :  { %v2028_v30 = vadd.f32 0.4994258, %v2027_v14  ;;  %vm1998_vm2 = vmor %vm1996_vm1, %vm1997_vm0  ;;  %v1960_v58 = vand.u32 2147483647, %v7361_v60  ;;  %v1962_v33 = vand.u32 2147483648, %v7361_v60 }
 0xc06   :  { %v1993_v6 = vsub.f32 1.0, %v1992_v23  ;;  %6454 = vrcp.f32 %v7373_v11  ;;  %v2082_v22 = vand.u32 2147483648, %v7373_v11  ;;  %v2017_v52 = vadd.f32 0.18741608, %v2016_v47 }
 0xc07   :  { %v2029_v42 = vmul.f32 %v2028_v30, %v7318_v4  ;;  %v2059_v63 = vadd.f32 1.1283791, %v2058_v28  ;;  %v2080_v21 = vand.u32 2147483647, %v7373_v11  ;;  %v1939_v44 = vadd.f32 1.1283791, %v1938_v55 }
 0xc08   :  { %v1994_v10 = vmul.f32 %v6451_v62, %v1993_v6  ;;  %vm1961_vm11 = vcmp.eq.f32.partialorder %v1960_v58, 8.507059e+37  ;;  %vm2076_vm12 = vweird.f32 %v7373_v11  ;;  %v1963_v7 = vor.u32 1.1754944e-38, %v1962_v33 }
 0xc09   :  { %v6453_v34 = vpop.eup %6452  ;;  %v2030_v49 = vadd.f32 1.0, %v2029_v42  ;;  %v2083_v8 = vor.u32 1.1754944e-38, %v2082_v22  ;;  %v2018_v9 = vmul.f32 %v2017_v52, %v7318_v4  ;;  %vm2081_vm14 = vcmp.eq.f32.partialorder %v2080_v21, 8.507059e+37 }
 0xc0a   :  { %v1995_v32 = vadd.f32 %v6451_v62, %v1994_v10  ;;  %v1952_v25 = vmul.f32 %v6453_v34, %v7361_v60  ;;  %vm1957_vm5 = vweird.f32 %v6453_v34  ;;  %v2060_v60 = vmul.f32 %v2059_v63, %v7282_v24  ;;  %v6255_v63 = vld [vmem:[%s8193_s6 + $0x138] sm:$0xff] }
 0xc0b   :  { %6456 = vrcp.f32 %v2030_v49  ;;  %vm7401_vm10 = vmor %vm1956_vm4, %vm1957_vm5  ;;  %v1940_v61 = vmul.f32 %v1939_v44, %v7274_v37  ;;  %v2040_v15 = vand.u32 2147483647, %v2030_v49  ;;  %v2042_v19 = vand.u32 2147483648, %v2030_v49  ;;  %2551 = vmatpush.bf16.msra.mxu1 %v6255_v63 }
 0xc0c   :  { %v1953_v35 = vsub.f32 1.0, %v1952_v25  ;;  %v1999_v40 = vsel %vm1998_vm2, %v6451_v62, %v1995_v32  ;;  %v6455_v46 = vpop.eup %6454  ;;  %v1921_v4 = vmul.f32 0.5, %v7255_v20  ;;  %v1923_v24 = vmul.f32 0.5, %v7271_v36 }
 0xc0d   :  { %v2004_v50 = vsel %vm2001_vm3, %v2003_v43, %v1999_v40  ;;  %v2072_v51 = vmul.f32 %v6455_v46, %v7373_v11  ;;  %vm2077_vm6 = vweird.f32 %v6455_v46  ;;  %v2019_v11 = vadd.f32 1.1283791, %v2018_v9  ;;  %v6247_v9 = vld [vmem:[%s8192_s5 + $0x138] sm:$0xff] }
 0xc0e   :  { %v1954_v45 = vmul.f32 %v6453_v34, %v1953_v35  ;;  %v2005_v62 = vmul.f32 %v2004_v50, %v1980_v53  ;;  %vm2078_vm13 = vmor %vm2076_vm12, %vm2077_vm6  ;;  %vm2036_vm0 = vweird.f32 %v2030_v49  ;;  %v2043_v39 = vor.u32 1.1754944e-38, %v2042_v19  ;;  %v6387_v53 = vld [vmem:[%s8204_s17] ss:$0 sm:$0xff]  ;;  %2467 = vmatpush.bf16.msra.mxu0 %v6247_v9  ;;  %v6243_v19 = vld [vmem:[%s8192_s5 + $0x118] sm:$0xff] }
 0xc0f   :  { %v2073_v59 = vsub.f32 1.0, %v2072_v51  ;;  %v2020_v37 = vmul.f32 %v2019_v11, %v7303_v54  ;;  %vm2041_vm2 = vcmp.eq.f32.partialorder %v2040_v15, 8.507059e+37  ;;  %v1920_v20 = vmul.f32 0.5, %v7264_v27  ;;  %v6248_v11 = vld [vmem:[%s8193_s6 + $0x100] sm:$0xff]  ;;  %v6235_v15 = vld [vmem:[%s8217_s27 + $0x118] sm:$0xff] }
 0xc10   :  { %v1955_v57 = vadd.f32 %v6453_v34, %v1954_v45  ;;  %v5186_v6 = vclamps-f32 %v2005_v62, 1.0  ;;  %v1922_v36 = vmul.f32 0.5, %v7292_v48 }
 0xc11   :  { %v2074_v23 = vmul.f32 %v6455_v46, %v2073_v59  ;;  %v6457_v5 = vpop.eup %6456 }
 0xc12   :  { %v1959_v2 = vsel %vm7401_vm10, %v6453_v34, %v1955_v57  ;;  %v2032_v13 = vmul.f32 %v6457_v5, %v2030_v49  ;;  %v2089_v32 = vadd.f32 1.0, %v5186_v6  ;;  %vm2037_vm15 = vweird.f32 %v6457_v5  ;;  %v6253_v6 = vld [vmem:[%s8193_s6 + $0x128] sm:$0xff] }
 0xc13   :  { %v2075_v3 = vadd.f32 %v6455_v46, %v2074_v23  ;;  %v1964_v14 = vsel %vm1961_vm11, %v1963_v7, %v1959_v2  ;;  %vm2038_vm1 = vmor %vm2036_vm0, %vm2037_vm15  ;;  %v6254_v23 = vld [vmem:[%s8193_s6 + $0x130] sm:$0xff]  ;;  %v6252_v7 = vld [vmem:[%s8193_s6 + $0x120] sm:$0xff] }
 0xc14   :  { %v2033_v34 = vsub.f32 1.0, %v2032_v13  ;;  %v1965_v25 = vmul.f32 %v1964_v14, %v1940_v61  ;;  %v2093_v38 = vmul.f32 %v2089_v32, %v1921_v4  ;;  %2552 = vmatpush.bf16.msra.mxu1 %v6254_v23  ;;  %v6246_v13 = vld [vmem:[%s8192_s5 + $0x130] sm:$0xff]  ;;  %v6245_v61 = vld [vmem:[%s8192_s5 + $0x128] sm:$0xff]  ;;  %v6244_v32 = vld [vmem:[%s8192_s5 + $0x120] sm:$0xff] }
 0xc15   :  { %v2079_v10 = vsel %vm2078_vm13, %v6455_v46, %v2075_v3  ;;  %2468 = vmatpush.bf16.msra.mxu0 %v6246_v13  ;;  %v6250_v14 = vld [vmem:[%s8193_s6 + $0x110] sm:$0xff]  ;;  %v6389_v23 = vld [vmem:[%s8206_s19] ss:$0 sm:$0xff] }
 0xc16   :  { %v2084_v16 = vsel %vm2081_vm14, %v2083_v8, %v2079_v10  ;;  %v2034_v29 = vmul.f32 %v6457_v5, %v2033_v34  ;;  %v5185_v40 = vclamps-f32 %v1965_v25, 1.0  ;;  %v6239_v8 = vld [vmem:[%s8217_s27 + $0x138] sm:$0xff]  ;;  %v6238_v10 = vld [vmem:[%s8217_s27 + $0x130] sm:$0xff]  ;;  %v6236_v34 = vld [vmem:[%s8217_s27 + $0x120] sm:$0xff] }
 0xc17   :  { %v2085_v31 = vmul.f32 %v2084_v16, %v2060_v60  ;;  %2383 = vmatpush.bf16.msra.mxu3 %v6239_v8  ;;  %v6251_v60 = vld [vmem:[%s8193_s6 + $0x118] sm:$0xff]  ;;  %v6237_v16 = vld [vmem:[%s8217_s27 + $0x128] sm:$0xff]  ;;  %v6264_v4 = vld [vmem:[%s8217_s27 + $0x170] sm:$0xff] }
 0xc18   :  { %v2035_v35 = vadd.f32 %v6457_v5, %v2034_v29  ;;  %v2088_v47 = vadd.f32 1.0, %v5185_v40  ;;  %2553 = vmatpush.bf16.msra.mxu1 %v6253_v6  ;;  %v6265_v25 = vld [vmem:[%s8217_s27 + $0x178] sm:$0xff]  ;;  %v6242_v29 = vld [vmem:[%s8192_s5 + $0x110] sm:$0xff]  ;;  %v6232_v40 = vld [vmem:[%s8217_s27 + $0x100] sm:$0xff] }
 0xc19   :  { %v5188_v26 = vclamps-f32 %v2085_v31, 1.0  ;;  %2469 = vmatpush.bf16.msra.mxu0 %v6245_v61  ;;  %v6249_v31 = vld [vmem:[%s8193_s6 + $0x108] sm:$0xff] }
 0xc1a   :  { %v2039_v42 = vsel %vm2038_vm1, %v6457_v5, %v2035_v35  ;;  %v2092_v28 = vmul.f32 %v2088_v47, %v1920_v20  ;;  %v6263_v35 = vld [vmem:[%s8217_s27 + $0x168] sm:$0xff]  ;;  %v6260_v47 = vld [vmem:[%s8217_s27 + $0x150] sm:$0xff] }
 0xc1b   :  { %v2091_v30 = vadd.f32 1.0, %v5188_v26  ;;  %v2044_v43 = vsel %vm2041_vm2, %v2043_v39, %v2039_v42  ;;  %2384 = vmatpush.bf16.msra.mxu3 %v6238_v10  ;;  %v6234_v26 = vld [vmem:[%s8217_s27 + $0x110] sm:$0xff]  ;;  %v6262_v42 = vld [vmem:[%s8217_s27 + $0x160] sm:$0xff] }
 0xc1c   :  { %v2045_v46 = vmul.f32 %v2044_v43, %v2020_v37  ;;  %2554 = vmatpush.bf16.msra.mxu1 %v6252_v7  ;;  %v6261_v43 = vld [vmem:[%s8217_s27 + $0x158] sm:$0xff]  ;;  %v6392_v10 = vld [vmem:[%s8194_s7 + $0x4] ss:$0 sm:$0xff] }
 0xc1d   :  { %v2095_v41 = vmul.f32 %v2091_v30, %v1923_v24  ;;  %2470 = vmatpush.bf16.msra.mxu0 %v6244_v32  ;;  %v6233_v24 = vld [vmem:[%s8217_s27 + $0x108] sm:$0xff] }
 0xc1e   :  { %v5187_v50 = vclamps-f32 %v2045_v46, 1.0  ;;  %v6241_v30 = vld [vmem:[%s8192_s5 + $0x108] sm:$0xff] }
 0xc1f   :  { %v2129_v45 = vpack.c.bf16 %v2095_v41, %v2093_v38  ;;  %2385 = vmatpush.bf16.msra.mxu3 %v6237_v16  ;;  %v6240_v41 = vld [vmem:[%s8192_s5 + $0x100] sm:$0xff] }
 0xc20   :  { %v2090_v49 = vadd.f32 1.0, %v5187_v50  ;;  %2555 = vmatpush.bf16.msra.mxu1 %v6251_v60 }
 0xc21   :  { %2252 = vmatmul.bf16.vlgmr.msrb.gmra.mxu2 %v2129_v45  ;;  %2471 = vmatpush.bf16.msra.mxu0 %v6243_v19 }
 0xc22   :  { %v2094_v51 = vmul.f32 %v2090_v49, %v1922_v36 }
 0xc23   :  { %2386 = vmatpush.bf16.msra.mxu3 %v6236_v34 }
 0xc24   :  { %v2128_v54 = vpack.c.bf16 %v2094_v51, %v2092_v28  ;;  %2556 = vmatpush.bf16.msra.mxu1 %v6250_v14  ;;  %v6259_v28 = vld [vmem:[%s8217_s27 + $0x148] sm:$0xff] }
 0xc25   :  { %2472 = vmatpush.bf16.msra.mxu0 %v6242_v29 }
 0xc26   :  { %2238 = vmatmul.bf16.vlgmr.msrb.gmra.mxu1 %v2128_v54 }
 0xc27   :  { %2387 = vmatpush.bf16.msra.mxu3 %v6235_v15 }
 0xc28   :  { %2557 = vmatpush.bf16.msra.mxu1 %v6249_v31 }
 0xc29   :  { %2473 = vmatpush.bf16.msra.mxu0 %v6241_v30  ;;  %v6272_v30 = vld [vmem:[%s8192_s5 + $0x170] sm:$0xff] }
 0xc2b   :  { %2388 = vmatpush.bf16.msra.mxu3 %v6234_v26  ;;  %v6273_v26 = vld [vmem:[%s8192_s5 + $0x178] sm:$0xff] }
 0xc2c   :  { %2558 = vmatpush.bf16.msra.mxu1 %v6248_v11 }
 0xc2d   :  { %2474 = vmatpush.bf16.msra.mxu0 %v6240_v41  ;;  %v6269_v41 = vld [vmem:[%s8192_s5 + $0x158] sm:$0xff] }
 0xc2f   :  { %2389 = vmatpush.bf16.msra.mxu3 %v6233_v24 }
 0xc30   :  { %2751 = vmatpush.bf16.msrb.mxu1 %v6265_v25 }
 0xc33   :  { %2390 = vmatpush.bf16.msra.mxu3 %v6232_v40 }
 0xc34   :  { %2752 = vmatpush.bf16.msrb.mxu1 %v6264_v4 }
 0xc38   :  { %2753 = vmatpush.bf16.msrb.mxu1 %v6263_v35  ;;  %v6271_v35 = vld [vmem:[%s8192_s5 + $0x168] sm:$0xff] }
 0xc3c   :  { %2754 = vmatpush.bf16.msrb.mxu1 %v6262_v42  ;;  %v6268_v42 = vld [vmem:[%s8192_s5 + $0x150] sm:$0xff] }
 0xc40   :  { %2755 = vmatpush.bf16.msrb.mxu1 %v6261_v43  ;;  %v6267_v43 = vld [vmem:[%s8192_s5 + $0x148] sm:$0xff] }
 0xc44   :  { %2756 = vmatpush.bf16.msrb.mxu1 %v6260_v47 }
 0xc48   :  { %2757 = vmatpush.bf16.msrb.mxu1 %v6259_v28 }
 0xca3   :  { %v2239_v55 = vpop.f32.mrf.mxu1 }
 0xca4   :  { %v2253_v57 = vpop.f32.mrf.mxu2  ;;  %v2240_v58 = vadd.f32 %v6387_v53, %v2239_v55 }
 0xca6   :  { %v2254_v59 = vadd.f32 %v2253_v57, %v2240_v58 }
 0xca8   :  { %v2258_v62 = vadd.f32 %v2254_v59, %v7246_v17 }
 0xcaa   :  { %2262 = vadd.xlane.f32.xlu0 %v2258_v62 }
 0xcab   :  { %v2241_v33 = vpop.f32.mrf.mxu1 }
 0xcac   :  { %v2242_v27 = vadd.f32 %v6387_v53, %v2241_v33  ;;  %v2255_v22 = vpop.f32.mrf.mxu2  ;;  %v6258_v53 = vld [vmem:[%s8217_s27 + $0x140] sm:$0xff] }
 0xcad   :  { %2758 = vmatpush.bf16.msrb.mxu1 %v6258_v53 }
 0xcae   :  { %v2256_v48 = vadd.f32 %v2255_v22, %v2242_v27  ;;  %v6388_v22 = vld [vmem:[%s8205_s18] ss:$0 sm:$0xff] }
 0xcb0   :  { %v2259_v52 = vadd.f32 %v2256_v48, %v7248_v18 }
 0xcb2   :  { %2264 = vadd.xlane.f32.xlu1 %v2259_v52 }
 0xd1d   :  { %v2263_v21 = vpop.xlane.xlu0 %2262 }
 0xd1e   :  { %v2266_v17 = vmul.f32 %v2263_v21, %v6661_v12 }
 0xd20   :  { %v7428_v44 = vsub.f32 %v2258_v62, %v2266_v17 }
 0xd22   :  { %v2270_v0 = vmul.f32 %v7428_v44, %v7428_v44 }
 0xd24   :  { %2272 = vadd.xlane.f32.xlu2 %v2270_v0 }
 0xd25   :  { %v2265_v18 = vpop.xlane.xlu1 %2264 }
 0xd26   :  { %v2267_v2 = vmul.f32 %v2265_v18, %v6661_v12 }
 0xd28   :  { %v7433_v3 = vsub.f32 %v2259_v52, %v2267_v2 }
 0xd2a   :  { %v2271_v5 = vmul.f32 %v7433_v3, %v7433_v3 }
 0xd2c   :  { %2274 = vadd.xlane.f32.xlu0 %v2271_v5 }
 0xd97   :  { %v2273_v38 = vpop.xlane.xlu2 %2272 }
 0xd98   :  { %v2276_v37 = vmul.f32 %v2273_v38, %v6661_v12 }
 0xd9a   :  { %v2278_v39 = vadd.f32 1e-12, %v2276_v37 }
 0xd9c   :  { %6458 = vrsqrt.f32 %v2278_v39  ;;  %vm2286_vm4 = vweird.f32 %v2278_v39 }
 0xd9f   :  { %v2275_v45 = vpop.xlane.xlu0 %2274 }
 0xda0   :  { %v2277_v46 = vmul.f32 %v2275_v45, %v6661_v12  ;;  %v6266_v45 = vld [vmem:[%s8192_s5 + $0x140] sm:$0xff] }
 0xda2   :  { %v6459_v50 = vpop.eup %6458  ;;  %v2279_v20 = vadd.f32 1e-12, %v2277_v46 }
 0xda3   :  { %v2281_v36 = vmul.f32 %v6459_v50, %v2278_v39  ;;  %vm2287_vm3 = vweird.f32 %v6459_v50  ;;  %v6270_v39 = vld [vmem:[%s8192_s5 + $0x160] sm:$0xff] }
 0xda4   :  { %6460 = vrsqrt.f32 %v2279_v20  ;;  %vm2288_vm5 = vmor %vm2286_vm4, %vm2287_vm3  ;;  %vm2296_vm10 = vweird.f32 %v2279_v20 }
 0xda5   :  { %v2282_v49 = vmul.f32 %v6459_v50, %v2281_v36 }
 0xda7   :  { %v2283_v51 = vmul.f32 0.5, %v2282_v49 }
 0xda9   :  { %v2284_v54 = vsub.f32 1.5, %v2283_v51 }
 0xdaa   :  { %v6461_v55 = vpop.eup %6460 }
 0xdab   :  { %v2285_v57 = vmul.f32 %v6459_v50, %v2284_v54  ;;  %v2291_v58 = vmul.f32 %v6461_v55, %v2279_v20  ;;  %vm2297_vm6 = vweird.f32 %v6461_v55 }
 0xdac   :  { %vm2298_vm11 = vmor %vm2296_vm10, %vm2297_vm6 }
 0xdad   :  { %v2292_v59 = vmul.f32 %v6461_v55, %v2291_v58  ;;  %v2289_v62 = vsel %vm2288_vm5, %v6459_v50, %v2285_v57 }
 0xdae   :  { %v2300_v48 = vmul.f32 %v2289_v62, %v7428_v44  ;;  %v6390_v44 = vld [vmem:[%s8195_s8 + $0x4] ss:$0 sm:$0xff] }
 0xdaf   :  { %v2293_v33 = vmul.f32 0.5, %v2292_v59 }
 0xdb0   :  { %v2305_v21 = vmul.f32 %v6388_v22, %v2300_v48 }
 0xdb1   :  { %v2294_v27 = vsub.f32 1.5, %v2293_v33  ;;  %v6281_v33 = vld [vmem:[%s8193_s6 + $0x178] sm:$0xff] }
 0xdb2   :  { %v7537_v18 = vadd.f32 %v6389_v23, %v2305_v21 }
 0xdb3   :  { %v2295_v52 = vmul.f32 %v6461_v55, %v2294_v27 }
 0xdb5   :  { %v2299_v63 = vsel %vm2298_vm11, %v6461_v55, %v2295_v52  ;;  %v6394_v55 = vld [vmem:[%s8195_s8 + $0x5] ss:$0 sm:$0xff] }
 0xdb6   :  { %v2301_v17 = vmul.f32 %v2299_v63, %v7433_v3  ;;  %v6391_v3 = vld [vmem:[%s8196_s9 + $0x4] ss:$0 sm:$0xff] }
 0xdb8   :  { %v2306_v0 = vmul.f32 %v6388_v22, %v2301_v17 }
 0xdba   :  { %v7539_v2 = vadd.f32 %v6389_v23, %v2306_v0 }
 0xdbc   :  { %v7543_v5 = vpack.c.bf16 %v7539_v2, %v7537_v18 }
 0xdbe   :  { %2391 = vmatmul.bf16.vlgmr.msra.gmra.mxu3 %v7543_v5  ;;  %2475 = vmatmul.bf16.vlgmr.msra.gmra.mxu0 %v7543_v5 }
 0xdbf   :  { %2559 = vmatmul.bf16.vlgmr.msra.gmra.mxu1 %v7543_v5 }
 0xdcf   :  { %2759 = vmatmul.bf16.vlgmr.msrb.gmra.mxu1 %v7543_v5 }
 0xe3b   :  { %v2476_v6 = vpop.f32.mrf.mxu0 }
 0xe3c   :  { %v2477_v7 = vadd.f32 %v6390_v44, %v2476_v6  ;;  %v2560_v8 = vpop.f32.mrf.mxu1  ;;  %v6279_v6 = vld [vmem:[%s8193_s6 + $0x168] sm:$0xff] }
 0xe3d   :  { %v2561_v9 = vadd.f32 %v6391_v3, %v2560_v8  ;;  %v6277_v8 = vld [vmem:[%s8193_s6 + $0x158] sm:$0xff] }
 0xe3e   :  { %v2567_v60 = vpack.c.bf16 %v2477_v7, %v2477_v7  ;;  %v6278_v7 = vld [vmem:[%s8193_s6 + $0x160] sm:$0xff] }
 0xe3f   :  { %v2569_v13 = vpack.c.bf16 %v2561_v9, %v2561_v9  ;;  %v6276_v9 = vld [vmem:[%s8193_s6 + $0x150] sm:$0xff] }
 0xe40   :  { %v2575_v14 = vsel %vm387_vm7, %v2567_v60, 0  ;;  %v6275_v60 = vld [vmem:[%s8193_s6 + $0x148] sm:$0xff] }
 0xe41   :  { %v2641_v16 = vsel %vm464_vm8, %v2569_v13, 0  ;;  %v2392_v61 = vpop.f32.mrf.mxu3  ;;  %2584 = vmatpush.bf16.xpose.msra.mxu2 %v2575_v14 }
 0xe42   :  { %v2393_v31 = vadd.f32 %v6392_v10, %v2392_v61  ;;  %2650 = vmatpush.bf16.msrb.mxu3 %v2641_v16 }
 0xe43   :  { %v2478_v34 = vpop.f32.mrf.mxu0 }
 0xe44   :  { %v2479_v32 = vadd.f32 %v6390_v44, %v2478_v34  ;;  %v2562_v11 = vpop.f32.mrf.mxu1  ;;  %v2565_v19 = vpack.c.bf16 %v2393_v31, %v2393_v31 }
 0xe45   :  { %v2563_v15 = vadd.f32 %v6391_v3, %v2562_v11  ;;  %v6280_v3 = vld [vmem:[%s8193_s6 + $0x170] sm:$0xff] }
 0xe46   :  { %v2568_v25 = vpack.c.bf16 %v2479_v32, %v2479_v32  ;;  %2919 = vmatpush.bf16.msra.mxu3 %v6281_v33 }
 0xe47   :  { %v2570_v29 = vpack.c.bf16 %v2563_v15, %v2563_v15 }
 0xe48   :  { %v2594_v4 = vsel %vm387_vm7, %v2568_v25, 0  ;;  %5400 = vmatmul.msk.bf16.vlgmr.msra.gmra.mxu2 %vm387_vm7, %v2565_v19 }
 0xe49   :  { %v2660_v24 = vsel %vm464_vm8, %v2570_v29, 0  ;;  %2603 = vmatpush.bf16.xpose.msrb.mxu2 %v2594_v4  ;;  %v2394_v38 = vpop.f32.mrf.mxu3  ;;  %v6393_v29 = vld [vmem:[%s8194_s7 + $0x5] ss:$0 sm:$0xff] }
 0xe4a   :  { %2669 = vmatpush.bf16.msrb.mxu0 %v2660_v24  ;;  %v2395_v37 = vadd.f32 %v6392_v10, %v2394_v38  ;;  %2920 = vmatpush.bf16.msra.mxu3 %v6280_v3  ;;  %v6274_v10 = vld [vmem:[%s8193_s6 + $0x140] sm:$0xff] }
 0xe4c   :  { %v2566_v40 = vpack.c.bf16 %v2395_v37, %v2395_v37  ;;  %v2760_v4 = vpop.f32.mrf.mxu1 }
 0xe4d   :  { %v2761_v24 = vadd.f32 %v6393_v29, %v2760_v4  ;;  %v6292_v4 = vld [vmem:[%s8192_s5 + $0x180] sm:$0xff] }
 0xe4e   :  { %2921 = vmatpush.bf16.msra.mxu3 %v6279_v6 }
 0xe51   :  { %2835 = vmatpush.bf16.msra.mxu2 %v6273_v26 }
 0xe52   :  { %2922 = vmatpush.bf16.msra.mxu3 %v6278_v7 }
 0xe55   :  { %2836 = vmatpush.bf16.msra.mxu2 %v6272_v30  ;;  %v2933_v30 = vpack.c.bf16 %v2761_v24, %v2761_v24 }
 0xe56   :  { %2923 = vmatpush.bf16.msra.mxu3 %v6277_v8 }
 0xe58   :  { %5401 = vmatmul.msk.bf16.vlgmr.msrb.gmra.mxu2 %vm387_vm7, %v2566_v40  ;;  %v6256_v40 = vld [vmem:[%s8197_s10 + $0x40] sm:$0xff] }
 0xe59   :  { %2837 = vmatpush.bf16.msra.mxu2 %v6271_v35  ;;  %v2762_v35 = vpop.f32.mrf.mxu1 }
 0xe5a   :  { %2924 = vmatpush.bf16.msra.mxu3 %v6276_v9  ;;  %v2763_v38 = vadd.f32 %v6393_v29, %v2762_v35  ;;  %v6293_v29 = vld [vmem:[%s8192_s5 + $0x188] sm:$0xff] }
 0xe5c   :  { %v2934_v37 = vpack.c.bf16 %v2763_v38, %v2763_v38 }
 0xe5d   :  { %2838 = vmatpush.bf16.msra.mxu2 %v6270_v39  ;;  %v6257_v39 = vld [vmem:[%s8197_s10 + $0x48] sm:$0xff] }
 0xe5e   :  { %2925 = vmatpush.bf16.msra.mxu3 %v6275_v60  ;;  %v6290_v60 = vld [vmem:[%s8217_s27 + $0x1b0] sm:$0xff] }
 0xe61   :  { %2839 = vmatpush.bf16.msra.mxu2 %v6269_v41 }
 0xe62   :  { %2926 = vmatpush.bf16.msra.mxu3 %v6274_v10  ;;  %v6289_v10 = vld [vmem:[%s8217_s27 + $0x1a8] sm:$0xff] }
 0xe65   :  { %2840 = vmatpush.bf16.msra.mxu2 %v6268_v42 }
 0xe69   :  { %2841 = vmatpush.bf16.msra.mxu2 %v6267_v43 }
 0xe6d   :  { %2842 = vmatpush.bf16.msra.mxu2 %v6266_v45 }
 0xe70   :  { %2843 = vmatmul.bf16.vlgmr.msra.gmra.mxu2 %v7543_v5 }
 0xecb   :  { %v2586_v46 = vpop.f32.mrf.mxu2 }
 0xecc   :  { %v2609_v47 = vmul.f32 0.17677669, %v2586_v46  ;;  %v6395_v46 = vld [vmem:[%s8196_s9 + $0x5] ss:$0 sm:$0xff] }
 0xece   :  { %v2611_v50 = vadd.f32 %v2609_v47, %v6829_v56 }
 0xed0   :  { %v2613_v20 = vsel %vm436_vm9, %v2611_v50, -inf }
 0xed1   :  { %2614 = vmax.xlane.f32.xlu0 %v2613_v20 }
 0xed3   :  { %v2588_v36 = vpop.f32.mrf.mxu2 }
 0xedb   :  { %v2605_v49 = vpop.f32.mrf.mxu2 }
 0xedc   :  { %v2610_v28 = vmul.f32 0.17677669, %v2605_v49 }
 0xede   :  { %v2612_v51 = vadd.f32 %v2610_v28, %v6836_v1 }
 0xee0   :  { %v2616_v54 = vsel %vm436_vm9, %v2612_v51, -inf }
 0xee1   :  { %2617 = vmax.xlane.f32.xlu1 %v2616_v54 }
 0xee3   :  { %v2607_v53 = vpop.f32.mrf.mxu2 }
 0xef3   :  { %v2844_v57 = vpop.f32.mrf.mxu2 }
 0xef4   :  { %v2845_v58 = vadd.f32 %v6394_v55, %v2844_v57 }
 0xef6   :  { %v2935_v59 = vpack.c.bf16 %v2845_v58, %v2845_v58 }
 0xef8   :  { %v2943_v62 = vsel %vm387_vm7, %v2935_v59, 0 }
 0xef9   :  { %2952 = vmatpush.bf16.xpose.msra.mxu0 %v2943_v62 }
 0xefb   :  { %v2846_v34 = vpop.f32.mrf.mxu2 }
 0xefc   :  { %v2847_v32 = vadd.f32 %v6394_v55, %v2846_v34  ;;  %v6285_v34 = vld [vmem:[%s8217_s27 + $0x188] sm:$0xff] }
 0xefe   :  { %v2936_v15 = vpack.c.bf16 %v2847_v32, %v2847_v32  ;;  %v6297_v32 = vld [vmem:[%s8192_s5 + $0x1a8] sm:$0xff] }
 0xf00   :  { %v2962_v26 = vsel %vm387_vm7, %v2936_v15, 0  ;;  %v6296_v15 = vld [vmem:[%s8192_s5 + $0x1a0] sm:$0xff] }
 0xf44   :  { %v2615_v27 = vpop.xlane.xlu0 %2614 }
 0xf45   :  { %v2619_v22 = vsub.f32 %v2611_v50, %v2615_v27 }
 0xf47   :  { %v2621_v48 = vmul.f32 1.442695, %v2619_v22 }
 0xf49   :  { %6462 = vpow2.f32 %v2621_v48 }
 0xf4f   :  { %v6463_v52 = vpop.eup %6462 }
 0xf50   :  { %v2625_v63 = vsel %vm436_vm9, %v6463_v52, 0.0 }
 0xf51   :  { %2626 = vadd.xlane.f32.xlu1 %v2625_v63  ;;  %v6291_v63 = vld [vmem:[%s8217_s27 + $0x1b8] sm:$0xff] }
 0xf54   :  { %v2618_v23 = vpop.xlane.xlu1 %2617 }
 0xf55   :  { %v2620_v21 = vsub.f32 %v2612_v51, %v2618_v23 }
 0xf57   :  { %v2623_v17 = vmul.f32 1.442695, %v2620_v21 }
 0xf59   :  { %6464 = vpow2.f32 %v2623_v17 }
 0xf5f   :  { %v6465_v0 = vpop.eup %6464 }
 0xf60   :  { %v2628_v44 = vsel %vm436_vm9, %v6465_v0, 0.0 }
 0xf61   :  { %2629 = vadd.xlane.f32.xlu2 %v2628_v44 }
 0xfc4   :  { %v2627_v13 = vpop.xlane.xlu1 %2626 }
 0xfc5   :  { %6466 = vrcp.f32 %v2627_v13  ;;  %v6288_v13 = vld [vmem:[%s8217_s27 + $0x1a0] sm:$0xff] }
 0xfcb   :  { %v6467_v14 = vpop.eup %6466 }
 0xfcc   :  { %v2633_v16 = vmul.f32 %v6467_v14, %v6463_v52  ;;  %v6287_v14 = vld [vmem:[%s8217_s27 + $0x198] sm:$0xff] }
 0xfce   :  { %v2635_v61 = vpack.c.bf16 %v2633_v16, %v2633_v16  ;;  %v6299_v16 = vld [vmem:[%s8192_s5 + $0x1b8] sm:$0xff] }
 0xfd0   :  { %5402 = vmatmul.msk.bf16.vlgmr.msrb.gmra.mxu3 %vm436_vm9, %v2635_v61  ;;  %v6286_v61 = vld [vmem:[%s8217_s27 + $0x190] sm:$0xff] }
 0xfd4   :  { %v2630_v31 = vpop.xlane.xlu2 %2629 }
 0xfd5   :  { %6468 = vrcp.f32 %v2630_v31  ;;  %v6298_v31 = vld [vmem:[%s8192_s5 + $0x1b0] sm:$0xff] }
 0xfdb   :  { %v6469_v11 = vpop.eup %6468 }
 0xfdc   :  { %v2634_v19 = vmul.f32 %v6469_v11, %v6465_v0  ;;  %v6284_v11 = vld [vmem:[%s8217_s27 + $0x180] sm:$0xff] }
 0xfde   :  { %v2636_v25 = vpack.c.bf16 %v2634_v19, %v2634_v19  ;;  %v6295_v19 = vld [vmem:[%s8192_s5 + $0x198] sm:$0xff] }
 0xfe0   :  { %5403 = vmatmul.msk.bf16.vlgmr.msrb.gmra.mxu0 %vm436_vm9, %v2636_v25  ;;  %2927 = vmatmul.bf16.vlgmr.msra.gmra.mxu3 %v7543_v5  ;;  %v6294_v25 = vld [vmem:[%s8192_s5 + $0x190] sm:$0xff] }
 0xfe1   :  { %2971 = vmatpush.bf16.xpose.msrb.mxu0 %v2962_v26 }
 0xff0   :  { %5555 = vmatmul.msk.bf16.vlgmr.msra.gmra.mxu0 %vm387_vm7, %v2933_v30 }
 0xff1   :  { %3099 = vmatpush.bf16.msra.mxu0 %v6257_v39 }
 0xff5   :  { %3100 = vmatpush.bf16.msra.mxu0 %v6256_v40 }
0x1000   :  { %5556 = vmatmul.msk.bf16.vlgmr.msrb.gmra.mxu0 %vm387_vm7, %v2934_v37 }
0x1053   :  { %v2652_v41 = vpop.f32.mrf.mxu3 }
0x105b   :  { %v2654_v42 = vpop.f32.mrf.mxu3 }
0x105c   :  { %v6282_v42 = vld [vmem:[%s8197_s10 + $0x50] sm:$0xff] }
0x105d   :  { %v2671_v43 = vpop.f32.mrf.mxu0 }
0x105e   :  { %v2675_v45 = vpack.c.bf16 %v2671_v43, %v2652_v41  ;;  %v6283_v41 = vld [vmem:[%s8197_s10 + $0x58] sm:$0xff] }
0x105f   :  { %3070 = vmatpush.bf16.msrb.mxu3 %v6283_v41  ;;  %v6307_v43 = vld [vmem:[%s8193_s6 + $0x1b8] sm:$0xff] }
0x1060   :  { %5580 = vmatmul.msk.bf16.vlgmr.msra.gmra.mxu0 %vm387_vm7, %v2675_v45  ;;  %v6306_v45 = vld [vmem:[%s8193_s6 + $0x1b0] sm:$0xff] }
0x1063   :  { %v2928_v47 = vpop.f32.mrf.mxu3  ;;  %3071 = vmatpush.bf16.msrb.mxu3 %v6282_v42 }
0x1064   :  { %v2929_v50 = vadd.f32 %v6395_v46, %v2928_v47  ;;  %v6304_v47 = vld [vmem:[%s8193_s6 + $0x1a0] sm:$0xff] }
0x1065   :  { %v2673_v20 = vpop.f32.mrf.mxu0 }
0x1066   :  { %v2937_v36 = vpack.c.bf16 %v2929_v50, %v2929_v50  ;;  %v6303_v50 = vld [vmem:[%s8193_s6 + $0x198] sm:$0xff]  ;;  %v6302_v20 = vld [vmem:[%s8193_s6 + $0x190] sm:$0xff] }
0x1067   :  { %3345 = vmatpush.bf16.msra.mxu3 %v6307_v43 }
0x1068   :  { %v3009_v49 = vsel %vm464_vm8, %v2937_v36, 0  ;;  %v6301_v36 = vld [vmem:[%s8193_s6 + $0x188] sm:$0xff] }
0x1069   :  { %3018 = vmatpush.bf16.msra.mxu1 %v3009_v49 }
0x106b   :  { %v2930_v28 = vpop.f32.mrf.mxu3  ;;  %3346 = vmatpush.bf16.msra.mxu3 %v6306_v45 }
0x106c   :  { %v2931_v51 = vadd.f32 %v6395_v46, %v2930_v28  ;;  %v6305_v46 = vld [vmem:[%s8193_s6 + $0x1a8] sm:$0xff]  ;;  %v6300_v28 = vld [vmem:[%s8193_s6 + $0x180] sm:$0xff] }
0x106d   :  { %v2954_v54 = vpop.f32.mrf.mxu0  ;;  %3177 = vmatpush.bf16.msrb.mxu1 %v6291_v63 }
0x106e   :  { %v2938_v53 = vpack.c.bf16 %v2931_v51, %v2931_v51  ;;  %v2977_v55 = vmul.f32 0.17677669, %v2954_v54 }
0x106f   :  { %3347 = vmatpush.bf16.msra.mxu3 %v6305_v46 }
0x1070   :  { %v3028_v57 = vsel %vm464_vm8, %v2938_v53, 0  ;;  %v2979_v58 = vadd.f32 %v2977_v55, %v6829_v56 }
0x1071   :  { %3037 = vmatpush.bf16.msrb.mxu2 %v3028_v57  ;;  %3178 = vmatpush.bf16.msrb.mxu1 %v6290_v60  ;;  %v6397_v57 = vld [vmem:[%s8195_s8 + $0x6] ss:$0 sm:$0xff]  ;;  %v6313_v60 = vld [vmem:[%s8217_s27 + $0x1d8] sm:$0xff] }
0x1072   :  { %v2981_v59 = vsel %vm436_vm9, %v2979_v58, -inf }
0x1073   :  { %2982 = vmax.xlane.f32.xlu0 %v2981_v59  ;;  %3348 = vmatpush.bf16.msra.mxu3 %v6304_v47  ;;  %v6325_v47 = vld [vmem:[%s8192_s5 + $0x1f8] sm:$0xff] }
0x1075   :  { %v2956_v62 = vpop.f32.mrf.mxu0  ;;  %3179 = vmatpush.bf16.msrb.mxu1 %v6289_v10  ;;  %3261 = vmatpush.bf16.msra.mxu2 %v6299_v16  ;;  %v6312_v10 = vld [vmem:[%s8217_s27 + $0x1d0] sm:$0xff] }
0x1076   :  { %v6396_v62 = vld [vmem:[%s8194_s7 + $0x6] ss:$0 sm:$0xff] }
0x1077   :  { %3349 = vmatpush.bf16.msra.mxu3 %v6303_v50 }
0x1079   :  { %3180 = vmatpush.bf16.msrb.mxu1 %v6288_v13  ;;  %3262 = vmatpush.bf16.msra.mxu2 %v6298_v31  ;;  %v6311_v13 = vld [vmem:[%s8217_s27 + $0x1c8] sm:$0xff] }
0x107b   :  { %3350 = vmatpush.bf16.msra.mxu3 %v6302_v20 }
0x107d   :  { %v2973_v33 = vpop.f32.mrf.mxu0  ;;  %3181 = vmatpush.bf16.msrb.mxu1 %v6287_v14  ;;  %3263 = vmatpush.bf16.msra.mxu2 %v6297_v32  ;;  %v6310_v14 = vld [vmem:[%s8217_s27 + $0x1c0] sm:$0xff] }
0x107e   :  { %v2978_v27 = vmul.f32 0.17677669, %v2973_v33 }
0x107f   :  { %3351 = vmatpush.bf16.msra.mxu3 %v6301_v36 }
0x1080   :  { %v2980_v22 = vadd.f32 %v2978_v27, %v6836_v1 }
0x1081   :  { %3182 = vmatpush.bf16.msrb.mxu1 %v6286_v61  ;;  %3264 = vmatpush.bf16.msra.mxu2 %v6296_v15 }
0x1082   :  { %v2984_v48 = vsel %vm436_vm9, %v2980_v22, -inf }
0x1083   :  { %2985 = vmax.xlane.f32.xlu2 %v2984_v48  ;;  %3352 = vmatpush.bf16.msra.mxu3 %v6300_v28 }
0x1085   :  { %v2975_v52 = vpop.f32.mrf.mxu0  ;;  %3183 = vmatpush.bf16.msrb.mxu1 %v6285_v34  ;;  %3265 = vmatpush.bf16.msra.mxu2 %v6295_v19 }
0x1089   :  { %3184 = vmatpush.bf16.msrb.mxu1 %v6284_v11  ;;  %3266 = vmatpush.bf16.msra.mxu2 %v6294_v25  ;;  %v6398_v11 = vld [vmem:[%s8196_s9 + $0x6] ss:$0 sm:$0xff] }
0x108d   :  { %3267 = vmatpush.bf16.msra.mxu2 %v6293_v29 }
0x1091   :  { %3268 = vmatpush.bf16.msra.mxu2 %v6292_v4 }
0x10dd   :  { %v7769_v16 = vpop.f32.mrf.mxu0 }
0x10e5   :  { %v3104_v31 = vpop.f32.mrf.mxu0 }
0x10e6   :  { %v2983_v23 = vpop.xlane.xlu0 %2982 }
0x10e7   :  { %v2987_v21 = vsub.f32 %v2979_v58, %v2983_v23 }
0x10e9   :  { %v2989_v17 = vmul.f32 1.442695, %v2987_v21 }
0x10eb   :  { %6470 = vpow2.f32 %v2989_v17  ;;  %v6317_v17 = vld [vmem:[%s8217_s27 + $0x1f8] sm:$0xff] }
0x10f1   :  { %v6471_v0 = vpop.eup %6470 }
0x10f2   :  { %v2993_v44 = vsel %vm436_vm9, %v6471_v0, 0.0 }
0x10f3   :  { %2994 = vadd.xlane.f32.xlu2 %v2993_v44  ;;  %v6316_v44 = vld [vmem:[%s8217_s27 + $0x1f0] sm:$0xff] }
0x10f6   :  { %v2986_v3 = vpop.xlane.xlu2 %2985 }
0x10f7   :  { %v2988_v6 = vsub.f32 %v2980_v22, %v2986_v3  ;;  %v6315_v3 = vld [vmem:[%s8217_s27 + $0x1e8] sm:$0xff] }
0x10f9   :  { %v2991_v7 = vmul.f32 1.442695, %v2988_v6 }
0x10fb   :  { %6472 = vpow2.f32 %v2991_v7 }
0x1101   :  { %v6473_v8 = vpop.eup %6472 }
0x1102   :  { %v2996_v9 = vsel %vm436_vm9, %v6473_v8, 0.0 }
0x1103   :  { %2997 = vadd.xlane.f32.xlu1 %v2996_v9 }
0x1166   :  { %v2995_v26 = vpop.xlane.xlu2 %2994 }
0x1167   :  { %6474 = vrcp.f32 %v2995_v26 }
0x116d   :  { %v6475_v24 = vpop.eup %6474 }
0x116e   :  { %v3001_v30 = vmul.f32 %v6475_v24, %v6471_v0 }
0x1170   :  { %v3003_v35 = vpack.c.bf16 %v3001_v30, %v3001_v30 }
0x1172   :  { %5557 = vmatmul.msk.bf16.vlgmr.msra.gmra.mxu1 %vm436_vm9, %v3003_v35 }
0x1176   :  { %v2998_v38 = vpop.xlane.xlu1 %2997 }
0x1177   :  { %6476 = vrcp.f32 %v2998_v38 }
0x117d   :  { %v6477_v37 = vpop.eup %6476 }
0x117e   :  { %v3002_v39 = vmul.f32 %v6477_v37, %v6473_v8  ;;  %v6314_v8 = vld [vmem:[%s8217_s27 + $0x1e0] sm:$0xff] }
0x1180   :  { %v3004_v40 = vpack.c.bf16 %v3002_v39, %v3002_v39 }
0x1182   :  { %5558 = vmatmul.msk.bf16.vlgmr.msrb.gmra.mxu2 %vm436_vm9, %v3004_v40  ;;  %3185 = vmatmul.bf16.vlgmr.msrb.gmra.mxu1 %v7543_v5 }
0x1192   :  { %3269 = vmatmul.bf16.vlgmr.msra.gmra.mxu2 %v7543_v5 }
0x11ef   :  { %v3020_v49 = vpop.f32.mrf.mxu1 }
0x11f7   :  { %v3022_v51 = vpop.f32.mrf.mxu1 }
0x11ff   :  { %v3186_v27 = vpop.f32.mrf.mxu1 }
0x1200   :  { %v3187_v48 = vadd.f32 %v6396_v62, %v3186_v27  ;;  %v6333_v27 = vld [vmem:[%s8193_s6 + $0x1f8] sm:$0xff] }
0x1202   :  { %v3359_v23 = vpack.c.bf16 %v3187_v48, %v3187_v48  ;;  %v6332_v48 = vld [vmem:[%s8193_s6 + $0x1f0] sm:$0xff] }
0x1205   :  { %v3039_v54 = vpop.f32.mrf.mxu2 }
0x1206   :  { %v3043_v53 = vpack.c.bf16 %v3039_v54, %v3020_v49 }
0x1207   :  { %v3188_v6 = vpop.f32.mrf.mxu1 }
0x1208   :  { %5571 = vmatmul.msk.bf16.vlgmr.msrb.gmra.mxu3 %vm387_vm7, %v3043_v53  ;;  %v3189_v7 = vadd.f32 %v6396_v62, %v3188_v6  ;;  %v6322_v62 = vld [vmem:[%s8192_s5 + $0x1e0] sm:$0xff] }
0x1209   :  { %v6326_v6 = vld [vmem:[%s8193_s6 + $0x1c0] sm:$0xff] }
0x120a   :  { %v3360_v9 = vpack.c.bf16 %v3189_v7, %v3189_v7 }
0x120d   :  { %v3041_v55 = vpop.f32.mrf.mxu2 }
0x1215   :  { %v3270_v58 = vpop.f32.mrf.mxu2 }
0x1216   :  { %v3271_v59 = vadd.f32 %v6397_v57, %v3270_v58  ;;  %v6324_v58 = vld [vmem:[%s8192_s5 + $0x1f0] sm:$0xff] }
0x1218   :  { %v3361_v33 = vpack.c.bf16 %v3271_v59, %v3271_v59  ;;  %3353 = vmatmul.bf16.vlgmr.msra.gmra.mxu3 %v7543_v5  ;;  %v6323_v59 = vld [vmem:[%s8192_s5 + $0x1e8] sm:$0xff] }
0x121a   :  { %v3369_v22 = vsel %vm387_vm7, %v3361_v33, 0  ;;  %v6321_v33 = vld [vmem:[%s8192_s5 + $0x1d8] sm:$0xff] }
0x121b   :  { %3378 = vmatpush.bf16.xpose.msrb.mxu0 %v3369_v22  ;;  %v6320_v22 = vld [vmem:[%s8192_s5 + $0x1d0] sm:$0xff] }
0x121d   :  { %v3272_v52 = vpop.f32.mrf.mxu2 }
0x121e   :  { %v3273_v63 = vadd.f32 %v6397_v57, %v3272_v52  ;;  %v6319_v52 = vld [vmem:[%s8192_s5 + $0x1c8] sm:$0xff] }
0x1220   :  { %v3362_v21 = vpack.c.bf16 %v3273_v63, %v3273_v63  ;;  %v6331_v63 = vld [vmem:[%s8193_s6 + $0x1e8] sm:$0xff] }
0x1222   :  { %v3388_v0 = vsel %vm387_vm7, %v3362_v21, 0  ;;  %5728 = vmatmul.msk.bf16.vlgmr.msrb.gmra.mxu0 %vm387_vm7, %v3359_v23  ;;  %v6318_v23 = vld [vmem:[%s8192_s5 + $0x1c0] sm:$0xff] }
0x1223   :  { %3397 = vmatpush.bf16.xpose.msra.mxu0 %v3388_v0  ;;  %v6330_v21 = vld [vmem:[%s8193_s6 + $0x1e0] sm:$0xff]  ;;  %v6328_v0 = vld [vmem:[%s8193_s6 + $0x1d0] sm:$0xff] }
0x122b   :  { %3576 = vmatpush.bf16.msrb.mxu0 %v6317_v17  ;;  %v6329_v17 = vld [vmem:[%s8193_s6 + $0x1d8] sm:$0xff] }
0x122f   :  { %3577 = vmatpush.bf16.msrb.mxu0 %v6316_v44 }
0x1232   :  { %5729 = vmatmul.msk.bf16.vlgmr.msra.gmra.mxu0 %vm387_vm7, %v3360_v9 }
0x1233   :  { %3578 = vmatpush.bf16.msrb.mxu0 %v6315_v3  ;;  %v6327_v3 = vld [vmem:[%s8193_s6 + $0x1c8] sm:$0xff] }
0x1237   :  { %3579 = vmatpush.bf16.msrb.mxu0 %v6314_v8 }
0x123b   :  { %3580 = vmatpush.bf16.msrb.mxu0 %v6313_v60 }
0x123f   :  { %3581 = vmatpush.bf16.msrb.mxu0 %v6312_v10 }
0x1243   :  { %3582 = vmatpush.bf16.msrb.mxu0 %v6311_v13 }
0x1247   :  { %3583 = vmatpush.bf16.msrb.mxu0 %v6310_v14 }
0x124a   :  { %3584 = vmatmul.bf16.vlgmr.msrb.gmra.mxu0 %v7543_v5 }
0x128b   :  { %v7771_v61 = vpop.f32.mrf.mxu3 }
0x1293   :  { %v3075_v34 = vpop.f32.mrf.mxu3 }
0x1294   :  { %v7773_v32 = vadd.f32 %v3104_v31, %v3075_v34  ;;  %v6309_v31 = vld [vmem:[%s8197_s10 + $0x68] sm:$0xff]  ;;  %v6308_v34 = vld [vmem:[%s8197_s10 + $0x60] sm:$0xff] }
0x1295   :  { %3496 = vmatpush.bf16.msrb.mxu3 %v6309_v31 }
0x1299   :  { %3497 = vmatpush.bf16.msrb.mxu3 %v6308_v34 }
0x129b   :  { %v3354_v15 = vpop.f32.mrf.mxu3 }
0x129c   :  { %v3355_v19 = vadd.f32 %v6398_v11, %v3354_v15 }
0x129e   :  { %v3363_v25 = vpack.c.bf16 %v3355_v19, %v3355_v19  ;;  %v6400_v19 = vld [vmem:[%s8195_s8 + $0x7] ss:$0 sm:$0xff]  ;;  %s4511_s8 = sshll.u32 %s8207_s20, 4  ;;  %s4512_s8 = int_to_ptr.hbm [resolvable:$true] %s4511_s8 }
0x129f   :  { %v3380_v26 = vpop.f32.mrf.mxu0 }
0x12a0   :  { %v3435_v29 = vsel %vm464_vm8, %v3363_v25, 0  ;;  %v3403_v4 = vmul.f32 0.17677669, %v3380_v26 }
0x12a1   :  { %3444 = vmatpush.bf16.msra.mxu1 %v3435_v29 }
0x12a2   :  { %v3405_v24 = vadd.f32 %v3403_v4, %v6829_v56 }
0x12a3   :  { %v3356_v30 = vpop.f32.mrf.mxu3 }
0x12a4   :  { %v3357_v35 = vadd.f32 %v6398_v11, %v3356_v30  ;;  %v3407_v38 = vsel %vm436_vm9, %v3405_v24, -inf }
0x12a5   :  { %3408 = vmax.xlane.f32.xlu0 %v3407_v38  ;;  %3660 = vmatpush.bf16.msrb.mxu1 %v6325_v47 }
0x12a6   :  { %v3364_v37 = vpack.c.bf16 %v3357_v35, %v3357_v35 }
0x12a7   :  { %v3382_v39 = vpop.f32.mrf.mxu0 }
0x12a8   :  { %v3454_v40 = vsel %vm464_vm8, %v3364_v37, 0 }
0x12a9   :  { %3463 = vmatpush.bf16.msrb.mxu2 %v3454_v40  ;;  %3661 = vmatpush.bf16.msrb.mxu1 %v6324_v58  ;;  %v6399_v40 = vld [vmem:[%s8194_s7 + $0x7] ss:$0 sm:$0xff] }
0x12ad   :  { %3662 = vmatpush.bf16.msrb.mxu1 %v6323_v59  ;;  %3744 = vmatpush.bf16.msra.mxu2 %v6333_v27 }
0x12af   :  { %v3399_v41 = vpop.f32.mrf.mxu0 }
0x12b0   :  { %v3404_v42 = vmul.f32 0.17677669, %v3399_v41 }
0x12b1   :  { %3663 = vmatpush.bf16.msrb.mxu1 %v6322_v62  ;;  %3745 = vmatpush.bf16.msra.mxu2 %v6332_v48 }
0x12b2   :  { %v3406_v43 = vadd.f32 %v3404_v42, %v6836_v1 }
0x12b4   :  { %v3410_v45 = vsel %vm436_vm9, %v3406_v43, -inf }
0x12b5   :  { %3411 = vmax.xlane.f32.xlu1 %v3410_v45  ;;  %3664 = vmatpush.bf16.msrb.mxu1 %v6321_v33 }
0x12b6   :  { %3746 = vmatpush.bf16.msra.mxu2 %v6331_v63 }
0x12b7   :  { %v3401_v46 = vpop.f32.mrf.mxu0 }
0x12b9   :  { %3665 = vmatpush.bf16.msrb.mxu1 %v6320_v22 }
0x12ba   :  { %3747 = vmatpush.bf16.msra.mxu2 %v6330_v21 }
0x12bd   :  { %3666 = vmatpush.bf16.msrb.mxu1 %v6319_v52 }
0x12be   :  { %3748 = vmatpush.bf16.msra.mxu2 %v6329_v17 }
0x12c1   :  { %3667 = vmatpush.bf16.msrb.mxu1 %v6318_v23 }
0x12c2   :  { %3749 = vmatpush.bf16.msra.mxu2 %v6328_v0 }
0x12c6   :  { %3750 = vmatpush.bf16.msra.mxu2 %v6327_v3 }
0x12c7   :  { %v3585_v41 = vpop.f32.mrf.mxu0 }
0x12c8   :  { %v3586_v42 = vadd.f32 %v6399_v40, %v3585_v41 }
0x12ca   :  { %3751 = vmatpush.bf16.msra.mxu2 %v6326_v6  ;;  %v3758_v46 = vpack.c.bf16 %v3586_v42, %v3586_v42 }
0x1318   :  { %v3409_v50 = vpop.xlane.xlu0 %3408 }
0x1319   :  { %v3413_v20 = vsub.f32 %v3405_v24, %v3409_v50 }
0x131b   :  { %v3415_v36 = vmul.f32 1.442695, %v3413_v20 }
0x131d   :  { %6478 = vpow2.f32 %v3415_v36 }
0x1323   :  { %v6479_v49 = vpop.eup %6478 }
0x1324   :  { %v3419_v28 = vsel %vm436_vm9, %v6479_v49, 0.0 }
0x1325   :  { %3420 = vadd.xlane.f32.xlu2 %v3419_v28  ;;  %v3587_v28 = vpop.f32.mrf.mxu0 }
0x1328   :  { %v3412_v51 = vpop.xlane.xlu1 %3411 }
0x1329   :  { %v3414_v54 = vsub.f32 %v3406_v43, %v3412_v51  ;;  %v6401_v43 = vld [vmem:[%s8196_s9 + $0x7] ss:$0 sm:$0xff] }
0x132b   :  { %v3417_v53 = vmul.f32 1.442695, %v3414_v54  ;;  %v3588_v54 = vadd.f32 %v6399_v40, %v3587_v28  ;;  %v6351_v28 = vld [vmem:[%s8201_s14 + $0xf4] sm:$0xf0] }
0x132d   :  { %6480 = vpow2.f32 %v3417_v53 }
0x1333   :  { %v6481_v55 = vpop.eup %6480 }
0x1334   :  { %v3422_v57 = vsel %vm436_vm9, %v6481_v55, 0.0 }
0x1335   :  { %3423 = vadd.xlane.f32.xlu0 %v3422_v57  ;;  %v3103_v57 = vadd.f32 %v7769_v16, %v7771_v61 }
0x1398   :  { %v3421_v44 = vpop.xlane.xlu2 %3420 }
0x1399   :  { %6482 = vrcp.f32 %v3421_v44 }
0x139f   :  { %v6483_v7 = vpop.eup %6482 }
0x13a0   :  { %v3427_v8 = vmul.f32 %v6483_v7, %v6479_v49 }
0x13a2   :  { %v3429_v9 = vpack.c.bf16 %v3427_v8, %v3427_v8 }
0x13a4   :  { %5730 = vmatmul.msk.bf16.vlgmr.msra.gmra.mxu1 %vm436_vm9, %v3429_v9 }
0x13a8   :  { %v3424_v60 = vpop.xlane.xlu0 %3423 }
0x13a9   :  { %6484 = vrcp.f32 %v3424_v60 }
0x13af   :  { %v6485_v10 = vpop.eup %6484 }
0x13b0   :  { %v3428_v13 = vmul.f32 %v6485_v10, %v6481_v55  ;;  %v3759_v55 = vpack.c.bf16 %v3588_v54, %v3588_v54 }
0x13b2   :  { %v3430_v14 = vpack.c.bf16 %v3428_v13, %v3428_v13 }
0x13b4   :  { %5731 = vmatmul.msk.bf16.vlgmr.msrb.gmra.mxu2 %vm436_vm9, %v3430_v14  ;;  %3668 = vmatmul.bf16.vlgmr.msrb.gmra.mxu1 %v7543_v5 }
0x13c4   :  { %3752 = vmatmul.bf16.vlgmr.msra.gmra.mxu2 %v7543_v5 }
0x1421   :  { %v3446_v11 = vpop.f32.mrf.mxu1 }
0x1429   :  { %v3448_v15 = vpop.f32.mrf.mxu1 }
0x1431   :  { %v3669_v25 = vpop.f32.mrf.mxu1 }
0x1432   :  { %v3670_v26 = vadd.f32 %v6400_v19, %v3669_v25  ;;  %v6334_v25 = vld [vmem:[%s8197_s10 + $0x70] sm:$0xff] }
0x1434   :  { %v3760_v29 = vpack.c.bf16 %v3670_v26, %v3670_v26 }
0x1436   :  { %v3768_v5 = vsel %vm387_vm7, %v3760_v29, 0 }
0x1437   :  { %v3465_v4 = vpop.f32.mrf.mxu2  ;;  %3777 = vmatpush.bf16.xpose.msra.mxu3 %v3768_v5 }
0x1438   :  { %v3469_v24 = vpack.c.bf16 %v3465_v4, %v3446_v11 }
0x1439   :  { %v3671_v30 = vpop.f32.mrf.mxu1 }
0x143a   :  { %v3672_v35 = vadd.f32 %v6400_v19, %v3671_v30  ;;  %5744 = vmatmul.msk.bf16.vlgmr.msrb.gmra.mxu3 %vm387_vm7, %v3469_v24  ;;  %v6335_v19 = vld [vmem:[%s8197_s10 + $0x78] sm:$0xff]  ;;  %v6402_v30 = vld [vmem:[%s8198_s11 + $0x1] ss:$0 sm:$0xff] }
0x143b   :  { %3895 = vmatpush.bf16.msrb.mxu2 %v6335_v19 }
0x143c   :  { %v3761_v38 = vpack.c.bf16 %v3672_v35, %v3672_v35 }
0x143e   :  { %v3787_v37 = vsel %vm387_vm7, %v3761_v38, 0 }
0x143f   :  { %v3467_v39 = vpop.f32.mrf.mxu2  ;;  %3796 = vmatpush.bf16.xpose.msrb.mxu3 %v3787_v37  ;;  %3896 = vmatpush.bf16.msrb.mxu2 %v6334_v25  ;;  %v5941_v25 = vld [vmem:[%s8201_s14 + $0x98] sm:$0xf0] }
0x1447   :  { %v3753_v45 = vpop.f32.mrf.mxu2 }
0x1448   :  { %v3754_v47 = vadd.f32 %v6401_v43, %v3753_v45 }
0x144a   :  { %v3762_v50 = vpack.c.bf16 %v3754_v47, %v3754_v47  ;;  %5892 = vmatmul.msk.bf16.vlgmr.msra.gmra.mxu3 %vm387_vm7, %v3758_v46 }
0x144c   :  { %v3834_v20 = vsel %vm464_vm8, %v3762_v50, 0 }
0x144d   :  { %3843 = vmatpush.bf16.msra.mxu0 %v3834_v20 }
0x144f   :  { %v3755_v36 = vpop.f32.mrf.mxu2 }
0x1450   :  { %v3756_v49 = vadd.f32 %v6401_v43, %v3755_v36 }
0x1452   :  { %v3763_v51 = vpack.c.bf16 %v3756_v49, %v3756_v49 }
0x1454   :  { %v3853_v53 = vsel %vm464_vm8, %v3763_v51, 0  ;;  %v6350_v51 = vld [vmem:[%s8201_s14 + $0xf4] sm:$0xf] }
0x1455   :  { %3862 = vmatpush.bf16.msra.mxu1 %v3853_v53  ;;  %v5989_v53 = vld [vmem:[%s8201_s14 + $0xf8] sm:$0xf0] }
0x145a   :  { %5893 = vmatmul.msk.bf16.vlgmr.msrb.gmra.mxu3 %vm387_vm7, %v3759_v55  ;;  %v5992_v55 = vor.u32 %v6350_v51, %v5989_v53 }
0x145c   :  { %4087 = vmatpush.bf16.msrb.mxu0 %v5992_v55  ;;  %v6403_v55 = vld [vmem:[%s8199_s12 + $0x1] ss:$0 sm:$0xff] }
0x14bd   :  { %v3499_v58 = vpop.f32.mrf.mxu3 }
0x14be   :  { %v3504_v59 = vadd.f32 %v3499_v58, %v3103_v57  ;;  %v5979_v57 = vld [vmem:[%s8201_s14 + $0xe0] sm:$0xf]  ;;  %v6349_v58 = vld [vmem:[%s8201_s14 + $0xe4] sm:$0xf0] }
0x14c5   :  { %v3501_v62 = vpop.f32.mrf.mxu3 }
0x14c6   :  { %v3505_v33 = vadd.f32 %v3501_v62, %v7773_v32  ;;  %v5980_v62 = vor.u32 %v6349_v58, %v5979_v57 }
0x14cd   :  { %v3779_v27 = vpop.f32.mrf.mxu3 }
0x14ce   :  { %v3802_v22 = vmul.f32 0.17677669, %v3779_v27 }
0x14d0   :  { %v3804_v48 = vadd.f32 %v3802_v22, %v6829_v56  ;;  %v5971_v22 = vld [vmem:[%s8201_s14 + $0xd0] sm:$0xf] }
0x14d2   :  { %v3806_v52 = vsel %vm436_vm9, %v3804_v48, -inf }
0x14d3   :  { %3807 = vmax.xlane.f32.xlu1 %v3806_v52  ;;  %v6346_v52 = vld [vmem:[%s8201_s14 + $0xd4] sm:$0xf] }
0x14d5   :  { %v3781_v63 = vpop.f32.mrf.mxu3 }
0x14dd   :  { %v3798_v23 = vpop.f32.mrf.mxu3 }
0x14de   :  { %v3803_v21 = vmul.f32 0.17677669, %v3798_v23  ;;  %v5973_v23 = vld [vmem:[%s8201_s14 + $0xd8] sm:$0xf0] }
0x14e0   :  { %v3805_v17 = vadd.f32 %v3803_v21, %v6836_v1  ;;  %v5976_v21 = vor.u32 %v6346_v52, %v5973_v23 }
0x14e2   :  { %v3809_v0 = vsel %vm436_vm9, %v3805_v17, -inf }
0x14e3   :  { %3810 = vmax.xlane.f32.xlu2 %v3809_v0  ;;  %v6345_v0 = vld [vmem:[%s8201_s14 + $0xc4] sm:$0xf0] }
0x14e5   :  { %v3800_v16 = vpop.f32.mrf.mxu3 }
0x14e6   :  { %v6344_v16 = vld [vmem:[%s8201_s14 + $0xc4] sm:$0xf] }
0x1546   :  { %v3808_v61 = vpop.xlane.xlu1 %3807 }
0x1547   :  { %v3812_v44 = vsub.f32 %v3804_v48, %v3808_v61  ;;  %v6347_v48 = vld [vmem:[%s8201_s14 + $0xd4] sm:$0xf0] }
0x1548   :  { %v5972_v63 = vor.u32 %v6347_v48, %v5971_v22 }
0x1549   :  { %v3814_v3 = vmul.f32 1.442695, %v3812_v44  ;;  %v5965_v44 = vld [vmem:[%s8201_s14 + $0xc8] sm:$0xf0] }
0x154b   :  { %6486 = vpow2.f32 %v3814_v3  ;;  %v5968_v3 = vor.u32 %v6344_v16, %v5965_v44 }
0x1551   :  { %v6487_v32 = vpop.eup %6486 }
0x1552   :  { %v3818_v6 = vsel %vm436_vm9, %v6487_v32, 0.0 }
0x1553   :  { %3819 = vadd.xlane.f32.xlu0 %v3818_v6  ;;  %v6343_v6 = vld [vmem:[%s8201_s14 + $0xb4] sm:$0xf0] }
0x1556   :  { %v3811_v56 = vpop.xlane.xlu2 %3810 }
0x1557   :  { %v3813_v7 = vsub.f32 %v3805_v17, %v3811_v56  ;;  %v5963_v17 = vld [vmem:[%s8201_s14 + $0xc0] sm:$0xf]  ;;  %v6342_v56 = vld [vmem:[%s8201_s14 + $0xb4] sm:$0xf] }
0x1558   :  { %v5964_v61 = vor.u32 %v6345_v0, %v5963_v17 }
0x1559   :  { %v3816_v8 = vmul.f32 1.442695, %v3813_v7 }
0x155b   :  { %6488 = vpow2.f32 %v3816_v8  ;;  %v5957_v8 = vld [vmem:[%s8201_s14 + $0xb8] sm:$0xf0] }
0x1561   :  { %v6489_v9 = vpop.eup %6488 }
0x1562   :  { %v3821_v60 = vsel %vm436_vm9, %v6489_v9, 0.0 }
0x1563   :  { %3822 = vadd.xlane.f32.xlu1 %v3821_v60  ;;  %v5947_v60 = vld [vmem:[%s8201_s14 + $0xa0] sm:$0xf] }
0x15c6   :  { %v3820_v1 = vpop.xlane.xlu0 %3819 }
0x15c7   :  { %6490 = vrcp.f32 %v3820_v1  ;;  %v6341_v1 = vld [vmem:[%s8201_s14 + $0xa4] sm:$0xf0] }
0x15cd   :  { %v6491_v10 = vpop.eup %6490 }
0x15ce   :  { %v3826_v13 = vmul.f32 %v6491_v10, %v6487_v32  ;;  %v5955_v32 = vld [vmem:[%s8201_s14 + $0xb0] sm:$0xf]  ;;  %v6340_v10 = vld [vmem:[%s8201_s14 + $0xa4] sm:$0xf] }
0x15cf   :  { %v5956_v7 = vor.u32 %v6343_v6, %v5955_v32  ;;  %v6367_v32 = vld [vmem:[%s8203_s16 + $0xf8] sm:$0xff] }
0x15d0   :  { %v3828_v14 = vpack.c.bf16 %v3826_v13, %v3826_v13  ;;  %v5948_v13 = vor.u32 %v6341_v1, %v5947_v60  ;;  %4427 = vmatpush.bf16.msra.mxu2 %v6367_v32  ;;  %v6366_v1 = vld [vmem:[%s8203_s16 + $0xf0] sm:$0xff] }
0x15d1   :  { %v6362_v32 = vld [vmem:[%s8203_s16 + $0xd0] sm:$0xff] }
0x15d2   :  { %5894 = vmatmul.msk.bf16.vlgmr.msra.gmra.mxu0 %vm436_vm9, %v3828_v14  ;;  %v5949_v14 = vld [vmem:[%s8201_s14 + $0xa8] sm:$0xf0] }
0x15d4   :  { %4428 = vmatpush.bf16.msra.mxu2 %v6366_v1 }
0x15d6   :  { %v3823_v31 = vpop.xlane.xlu1 %3822 }
0x15d7   :  { %6492 = vrcp.f32 %v3823_v31  ;;  %v5952_v31 = vor.u32 %v6340_v10, %v5949_v14 }
0x15dd   :  { %v6493_v34 = vpop.eup %6492 }
0x15de   :  { %v3827_v11 = vmul.f32 %v6493_v34, %v6489_v9  ;;  %v5960_v9 = vor.u32 %v6342_v56, %v5957_v8  ;;  %v5939_v34 = vld [vmem:[%s8201_s14 + $0x90] sm:$0xf] }
0x15e0   :  { %v3829_v15 = vpack.c.bf16 %v3827_v11, %v3827_v11  ;;  %v6339_v11 = vld [vmem:[%s8201_s14 + $0x94] sm:$0xf0] }
0x15e1   :  { %v5940_v19 = vor.u32 %v6339_v11, %v5939_v34  ;;  %v6359_v34 = vld [vmem:[%s8203_s16 + $0xb8] sm:$0xff] }
0x15e2   :  { %5895 = vmatmul.msk.bf16.vlgmr.msra.gmra.mxu1 %vm436_vm9, %v3829_v15  ;;  %v6338_v15 = vld [vmem:[%s8201_s14 + $0x94] sm:$0xf] }
0x15e3   :  { %4413 = vmatpush.bf16.msrb.mxu1 %v6359_v34 }
0x164f   :  { %v3845_v26 = vpop.f32.mrf.mxu0 }
0x1657   :  { %v3847_v29 = vpop.f32.mrf.mxu0 }
0x1658   :  { %v5944_v29 = vor.u32 %v6338_v15, %v5941_v25 }
0x165f   :  { %v3864_v5 = vpop.f32.mrf.mxu1 }
0x1660   :  { %v3868_v4 = vpack.c.bf16 %v3864_v5, %v3845_v26 }
0x1662   :  { %5908 = vmatmul.msk.bf16.vlgmr.msrb.gmra.mxu2 %vm387_vm7, %v3868_v4  ;;  %v5931_v4 = vld [vmem:[%s8201_s14 + $0x80] sm:$0xf] }
0x1667   :  { %v3866_v24 = vpop.f32.mrf.mxu1 }
0x1668   :  { %v6337_v24 = vld [vmem:[%s8201_s14 + $0x84] sm:$0xf0] }
0x16e5   :  { %v3898_v35 = vpop.f32.mrf.mxu2 }
0x16e6   :  { %v3903_v38 = vadd.f32 %v3898_v35, %v3504_v59  ;;  %v6348_v59 = vld [vmem:[%s8201_s14 + $0xe4] sm:$0xf] }
0x16e8   :  { %v3910_v37 = vadd.f32 %v6402_v30, %v3903_v38  ;;  %v5932_v38 = vor.u32 %v6337_v24, %v5931_v4 }
0x16ea   :  { %v3912_v39 = vadd.f32 %v3910_v37, %v7537_v18  ;;  %v5933_v37 = vld [vmem:[%s8201_s14 + $0x88] sm:$0xf0] }
0x16ec   :  { %3918 = vadd.xlane.f32.xlu2 %v3912_v39 }
0x16ed   :  { %v3900_v40 = vpop.f32.mrf.mxu2 }
0x16ee   :  { %v3904_v41 = vadd.f32 %v3900_v40, %v3505_v33  ;;  %v5981_v33 = vld [vmem:[%s8201_s14 + $0xe8] sm:$0xf0] }
0x16ef   :  { %v5984_v27 = vor.u32 %v6348_v59, %v5981_v33 }
0x16f0   :  { %v3911_v42 = vadd.f32 %v6402_v30, %v3904_v41  ;;  %v6336_v30 = vld [vmem:[%s8201_s14 + $0x84] sm:$0xf] }
0x16f1   :  { %4088 = vmatpush.bf16.msrb.mxu0 %v5984_v27 }
0x16f2   :  { %v3913_v43 = vadd.f32 %v3911_v42, %v7539_v2  ;;  %v5987_v2 = vld [vmem:[%s8201_s14 + $0xf0] sm:$0xf] }
0x16f3   :  { %v5988_v54 = vor.u32 %v6351_v28, %v5987_v2 }
0x16f4   :  { %3920 = vadd.xlane.f32.xlu0 %v3913_v43 }
0x16f5   :  { %4073 = vmatpush.bf16.msra.mxu3 %v5988_v54  ;;  %4089 = vmatpush.bf16.msrb.mxu0 %v5976_v21 }
0x16f9   :  { %4074 = vmatpush.bf16.msra.mxu3 %v5980_v62  ;;  %4090 = vmatpush.bf16.msrb.mxu0 %v5968_v3  ;;  %v6404_v62 = vld [vmem:[%s8200_s13 + $0x1] ss:$0 sm:$0xff] }
0x16fd   :  { %4075 = vmatpush.bf16.msra.mxu3 %v5972_v63  ;;  %4091 = vmatpush.bf16.msrb.mxu0 %v5960_v9 }
0x1701   :  { %4076 = vmatpush.bf16.msra.mxu3 %v5964_v61  ;;  %4092 = vmatpush.bf16.msrb.mxu0 %v5952_v31 }
0x1705   :  { %4077 = vmatpush.bf16.msra.mxu3 %v5956_v7  ;;  %4093 = vmatpush.bf16.msrb.mxu0 %v5944_v29  ;;  %v6365_v29 = vld [vmem:[%s8203_s16 + $0xe8] sm:$0xff] }
0x1706   :  { %4429 = vmatpush.bf16.msra.mxu2 %v6365_v29 }
0x1709   :  { %4078 = vmatpush.bf16.msra.mxu3 %v5948_v13 }
0x170d   :  { %4079 = vmatpush.bf16.msra.mxu3 %v5940_v19 }
0x1711   :  { %4080 = vmatpush.bf16.msra.mxu3 %v5932_v38  ;;  %v6358_v38 = vld [vmem:[%s8203_s16 + $0xb0] sm:$0xff] }
0x1712   :  { %4414 = vmatpush.bf16.msrb.mxu1 %v6358_v38  ;;  %v6354_v38 = vld [vmem:[%s8203_s16 + $0x90] sm:$0xff] }
0x175f   :  { %v3919_v45 = vpop.xlane.xlu2 %3918 }
0x1760   :  { %v3922_v46 = vmul.f32 %v3919_v45, %v6661_v12 }
0x1762   :  { %v7884_v47 = vsub.f32 %v3912_v39, %v3922_v46  ;;  %v5936_v39 = vor.u32 %v6336_v30, %v5933_v37 }
0x1764   :  { %v3926_v50 = vmul.f32 %v7884_v47, %v7884_v47  ;;  %4094 = vmatpush.bf16.msrb.mxu0 %v5936_v39 }
0x1766   :  { %3928 = vadd.xlane.f32.xlu1 %v3926_v50 }
0x1767   :  { %v3921_v20 = vpop.xlane.xlu0 %3920 }
0x1768   :  { %v3923_v36 = vmul.f32 %v3921_v20, %v6661_v12 }
0x176a   :  { %v7889_v18 = vsub.f32 %v3913_v43, %v3923_v36 }
0x176c   :  { %v3927_v49 = vmul.f32 %v7889_v18, %v7889_v18 }
0x176e   :  { %3930 = vadd.xlane.f32.xlu2 %v3927_v49 }
0x17d9   :  { %v3929_v26 = vpop.xlane.xlu1 %3928 }
0x17da   :  { %v3932_v5 = vmul.f32 %v3929_v26, %v6661_v12 }
0x17dc   :  { %v3934_v35 = vadd.f32 1e-12, %v3932_v5 }
0x17de   :  { %6494 = vrsqrt.f32 %v3934_v35  ;;  %vm3942_vm8 = vweird.f32 %v3934_v35 }
0x17e1   :  { %v3931_v40 = vpop.xlane.xlu2 %3930 }
0x17e2   :  { %v3933_v41 = vmul.f32 %v3931_v40, %v6661_v12 }
0x17e4   :  { %v6495_v42 = vpop.eup %6494  ;;  %v3935_v43 = vadd.f32 1e-12, %v3933_v41 }
0x17e5   :  { %v3937_v45 = vmul.f32 %v6495_v42, %v3934_v35  ;;  %vm3943_vm7 = vweird.f32 %v6495_v42 }
0x17e6   :  { %6496 = vrsqrt.f32 %v3935_v43  ;;  %vm3944_vm9 = vmor %vm3942_vm8, %vm3943_vm7  ;;  %vm3952_vm13 = vweird.f32 %v3935_v43 }
0x17e7   :  { %v3938_v46 = vmul.f32 %v6495_v42, %v3937_v45 }
0x17e9   :  { %v3939_v50 = vmul.f32 0.5, %v3938_v46 }
0x17eb   :  { %v3940_v20 = vsub.f32 1.5, %v3939_v50  ;;  %v6364_v50 = vld [vmem:[%s8203_s16 + $0xe0] sm:$0xff] }
0x17ec   :  { %v6497_v36 = vpop.eup %6496  ;;  %4430 = vmatpush.bf16.msra.mxu2 %v6364_v50 }
0x17ed   :  { %v3941_v49 = vmul.f32 %v6495_v42, %v3940_v20  ;;  %v3947_v2 = vmul.f32 %v6497_v36, %v3935_v43  ;;  %vm3953_vm12 = vweird.f32 %v6497_v36 }
0x17ee   :  { %vm3954_vm14 = vmor %vm3952_vm13, %vm3953_vm12 }
0x17ef   :  { %v3948_v28 = vmul.f32 %v6497_v36, %v3947_v2  ;;  %v3945_v51 = vsel %vm3944_vm9, %v6495_v42, %v3941_v49 }
0x17f0   :  { %v3956_v57 = vmul.f32 %v3945_v51, %v7884_v47  ;;  %v5928_v47 = vld [vmem:[%s8202_s15 + $0x2] sm:$0x3] }
0x17f1   :  { %v3949_v54 = vmul.f32 0.5, %v3948_v28  ;;  %v3990_v23 = vperm.slane %v5928_v47, 1  ;;  %v3989_v0 = vperm.slane %v5928_v47, 0  ;;  %v6357_v28 = vld [vmem:[%s8203_s16 + $0xa8] sm:$0xff]  ;;  %v6356_v47 = vld [vmem:[%s8203_s16 + $0xa0] sm:$0xff] }
0x17f2   :  { %v3961_v33 = vmul.f32 %v6403_v55, %v3956_v57  ;;  %4415 = vmatpush.bf16.msrb.mxu1 %v6357_v28 }
0x17f3   :  { %v3950_v53 = vsub.f32 1.5, %v3949_v54 }
0x17f4   :  { %v7999_v48 = vadd.f32 %v6404_v62, %v3961_v33 }
0x17f5   :  { %v3951_v58 = vmul.f32 %v6497_v36, %v3950_v53 }
0x17f6   :  { %4416 = vmatpush.bf16.msrb.mxu1 %v6356_v47 }
0x17f7   :  { %v3955_v59 = vsel %vm3954_vm14, %v6497_v36, %v3951_v58 }
0x17f8   :  { %v3957_v27 = vmul.f32 %v3955_v59, %v7889_v18 }
0x17fa   :  { %v3962_v22 = vmul.f32 %v6403_v55, %v3957_v27 }
0x17fc   :  { %v8001_v52 = vadd.f32 %v6404_v62, %v3962_v22  ;;  %v6363_v62 = vld [vmem:[%s8203_s16 + $0xd8] sm:$0xff] }
0x17fd   :  { %4431 = vmatpush.bf16.msra.mxu2 %v6363_v62 }
0x17fe   :  { %v3985_v63 = vpack.c.bf16 %v8001_v52, %v7999_v48 }
0x1800   :  { %4081 = vmatmul.bf16.vlgmr.msra.gmra.mxu3 %v3985_v63  ;;  %4095 = vmatmul.bf16.vlgmr.msrb.gmra.mxu0 %v3985_v63 }
0x1801   :  { %4432 = vmatpush.bf16.msra.mxu2 %v6362_v32 }
0x187d   :  { %v4096_v21 = vpop.f32.mrf.mxu0 }
0x187e   :  { %v8008_v17 = vadd.f32 %v4096_v21, %v3990_v23 }
0x1880   :  { %v8011_v18 = vmul.f32 0.70710677, %v8008_v17 }
0x1882   :  { %v4149_v16 = vmul.f32 %v8011_v18, %v8011_v18 }
0x1883   :  { %v4082_v61 = vpop.f32.mrf.mxu3 }
0x1884   :  { %v8015_v44 = vmin.f32 %v4149_v16, 16.0  ;;  %v8017_v3 = vadd.f32 %v4082_v61, %v3989_v0 }
0x1885   :  { %v4098_v6 = vpop.f32.mrf.mxu0 }
0x1886   :  { %v4151_v56 = vmul.f32 2.1237322e-06, %v8015_v44  ;;  %v4162_v7 = vmul.f32 3.8918573e-05, %v8015_v44  ;;  %v8024_v8 = vadd.f32 %v4098_v6, %v3990_v23  ;;  %v8027_v9 = vmul.f32 0.70710677, %v8017_v3 }
0x1888   :  { %v4163_v60 = vadd.f32 0.001143296, %v4162_v7  ;;  %v4152_v10 = vadd.f32 0.00028619796, %v4151_v56  ;;  %v4109_v13 = vmul.f32 %v8027_v9, %v8027_v9  ;;  %v8035_v14 = vmul.f32 0.70710677, %v8024_v8 }
0x188a   :  { %v4164_v31 = vmul.f32 %v4163_v60, %v8015_v44  ;;  %v8041_v11 = vmin.f32 %v4109_v13, 16.0  ;;  %v4229_v15 = vmul.f32 %v8035_v14, %v8035_v14  ;;  %v4153_v5 = vmul.f32 %v4152_v10, %v8015_v44  ;;  %v6355_v10 = vld [vmem:[%s8203_s16 + $0x98] sm:$0xff] }
0x188b   :  { %v4084_v19 = vpop.f32.mrf.mxu3  ;;  %4417 = vmatpush.bf16.msrb.mxu1 %v6355_v10 }
0x188c   :  { %v4165_v25 = vadd.f32 0.014752088, %v4164_v31  ;;  %v8045_v26 = vadd.f32 %v4084_v19, %v3989_v0  ;;  %v4122_v4 = vmul.f32 3.8918573e-05, %v8041_v11  ;;  %v8052_v24 = vmin.f32 %v4229_v15, 16.0  ;;  %v6361_v15 = vld [vmem:[%s8203_s16 + $0xc8] sm:$0xff] }
0x188d   :  { %v4111_v37 = vmul.f32 2.1237322e-06, %v8041_v11  ;;  %v4154_v45 = vadd.f32 0.0036580483, %v4153_v5  ;;  %4433 = vmatpush.bf16.msra.mxu2 %v6361_v15 }
0x188e   :  { %v4166_v30 = vmul.f32 %v4165_v25, %v8015_v44  ;;  %v8056_v35 = vmul.f32 0.70710677, %v8045_v26  ;;  %v4123_v39 = vadd.f32 0.001143296, %v4122_v4  ;;  %v4231_v40 = vmul.f32 2.1237322e-06, %v8052_v24 }
0x188f   :  { %v4242_v42 = vmul.f32 3.8918573e-05, %v8052_v24  ;;  %v4112_v51 = vadd.f32 0.00028619796, %v4111_v37  ;;  %v4155_v33 = vmul.f32 %v4154_v45, %v8015_v44  ;;  %4418 = vmatpush.bf16.msrb.mxu1 %v6354_v38 }
0x1890   :  { %v4167_v41 = vadd.f32 0.112945676, %v4166_v30  ;;  %v4189_v43 = vmul.f32 %v8056_v35, %v8056_v35  ;;  %v4124_v46 = vmul.f32 %v4123_v39, %v8041_v11  ;;  %v4232_v36 = vadd.f32 0.00028619796, %v4231_v40 }
0x1891   :  { %v4243_v49 = vadd.f32 0.001143296, %v4242_v42  ;;  %v4113_v23 = vmul.f32 %v4112_v51, %v8041_v11  ;;  %v4156_v7 = vadd.f32 0.05243302, %v4155_v33  ;;  %v6352_v33 = vld [vmem:[%s8203_s16 + $0x80] sm:$0xff] }
0x1892   :  { %v4168_v20 = vmul.f32 %v4167_v41, %v8015_v44  ;;  %v8071_v2 = vmin.f32 %v4189_v43, 16.0  ;;  %v4125_v54 = vadd.f32 0.014752088, %v4124_v46  ;;  %v4233_v22 = vmul.f32 %v4232_v36, %v8052_v24  ;;  %v6360_v43 = vld [vmem:[%s8203_s16 + $0xc0] sm:$0xff]  ;;  %v6353_v36 = vld [vmem:[%s8203_s16 + $0x88] sm:$0xff] }
0x1893   :  { %v4244_v55 = vmul.f32 %v4243_v49, %v8052_v24  ;;  %v4114_v13 = vadd.f32 0.0036580483, %v4113_v23  ;;  %v4157_v29 = vmul.f32 %v4156_v7, %v8015_v44  ;;  %4434 = vmatpush.bf16.msra.mxu2 %v6360_v43  ;;  %4419 = vmatpush.bf16.msrb.mxu1 %v6353_v36 }
0x1894   :  { %v4169_v53 = vadd.f32 0.4994258, %v4168_v20  ;;  %v4126_v57 = vmul.f32 %v4125_v54, %v8041_v11  ;;  %v4191_v58 = vmul.f32 2.1237322e-06, %v8071_v2  ;;  %v4202_v59 = vmul.f32 3.8918573e-05, %v8071_v2 }
0x1895   :  { %v4245_v63 = vadd.f32 0.014752088, %v4244_v55  ;;  %v4234_v60 = vadd.f32 0.0036580483, %v4233_v22  ;;  %v4115_v37 = vmul.f32 %v4114_v13, %v8041_v11  ;;  %v4158_v50 = vadd.f32 0.18741608, %v4157_v29 }
0x1896   :  { %v4170_v27 = vmul.f32 %v4169_v53, %v8015_v44  ;;  %v4127_v21 = vadd.f32 0.112945676, %v4126_v57  ;;  %v4203_v0 = vadd.f32 0.001143296, %v4202_v59  ;;  %v4192_v56 = vadd.f32 0.00028619796, %v4191_v58 }
0x1897   :  { %v4246_v61 = vmul.f32 %v4245_v63, %v8052_v24  ;;  %v4235_v5 = vmul.f32 %v4234_v60, %v8052_v24  ;;  %v4116_v28 = vadd.f32 0.05243302, %v4115_v37  ;;  %v4159_v59 = vmul.f32 %v4158_v50, %v8015_v44  ;;  %4420 = vmatpush.bf16.msrb.mxu1 %v6352_v33 }
0x1898   :  { %v8090_v16 = vadd.f32 1.0, %v4170_v27  ;;  %v4128_v6 = vmul.f32 %v4127_v21, %v8041_v11  ;;  %v4204_v1 = vmul.f32 %v4203_v0, %v8071_v2  ;;  %v4193_v25 = vmul.f32 %v4192_v56, %v8071_v2 }
0x1899   :  { %v4247_v34 = vadd.f32 0.112945676, %v4246_v61  ;;  %v4236_v20 = vadd.f32 0.05243302, %v4235_v5  ;;  %v4117_v63 = vmul.f32 %v4116_v28, %v8041_v11 }
0x189a   :  { %6498 = vrcp.f32 %v8090_v16  ;;  %v4129_v31 = vadd.f32 0.4994258, %v4128_v6  ;;  %v4205_v30 = vadd.f32 0.014752088, %v4204_v1  ;;  %v4194_v46 = vadd.f32 0.0036580483, %v4193_v25 }
0x189b   :  { %v4248_v4 = vmul.f32 %v4247_v34, %v8052_v24  ;;  %v4237_v62 = vmul.f32 %v4236_v20, %v8052_v24  ;;  %v4183_v47 = vand.u32 2147483648, %v8090_v16  ;;  %vm4177_vm0 = vweird.f32 %v8090_v16 }
0x189c   :  { %v4130_v19 = vmul.f32 %v4129_v31, %v8041_v11  ;;  %v4206_v42 = vmul.f32 %v4205_v30, %v8071_v2  ;;  %v4195_v57 = vmul.f32 %v4194_v46, %v8071_v2  ;;  %v4181_v44 = vand.u32 2147483647, %v8090_v16 }
0x189d   :  { %v4249_v41 = vadd.f32 0.4994258, %v4248_v4  ;;  %v4238_v32 = vadd.f32 0.18741608, %v4237_v62  ;;  %v4160_v6 = vadd.f32 1.1283791, %v4159_v59 }
0x189e   :  { %v8114_v39 = vadd.f32 1.0, %v4130_v19  ;;  %v4207_v54 = vadd.f32 0.112945676, %v4206_v42  ;;  %v4196_v21 = vadd.f32 0.05243302, %v4195_v57  ;;  %v4184_v1 = vor.u32 1.1754944e-38, %v4183_v47 }
0x189f   :  { %v4250_v51 = vmul.f32 %v4249_v41, %v8052_v24  ;;  %v4118_v7 = vadd.f32 0.18741608, %v4117_v63  ;;  %vm4182_vm2 = vcmp.eq.f32.partialorder %v4181_v44, 8.507059e+37  ;;  %v4161_v25 = vmul.f32 %v4160_v6, %v8011_v18 }
0x18a0   :  { %v6499_v40 = vpop.eup %6498  ;;  %6500 = vrcp.f32 %v8114_v39  ;;  %v4208_v58 = vmul.f32 %v4207_v54, %v8071_v2  ;;  %v4197_v31 = vmul.f32 %v4196_v21, %v8071_v2  ;;  %vm4137_vm3 = vweird.f32 %v8114_v39 }
0x18a1   :  { %v4173_v45 = vmul.f32 %v6499_v40, %v8090_v16  ;;  %v8126_v55 = vadd.f32 1.0, %v4250_v51  ;;  %vm4178_vm15 = vweird.f32 %v6499_v40  ;;  %v4239_v16 = vmul.f32 %v4238_v32, %v8052_v24 }
0x18a2   :  { %v4209_v0 = vadd.f32 0.4994258, %v4208_v58  ;;  %vm4179_vm1 = vmor %vm4177_vm0, %vm4178_vm15  ;;  %v4119_v29 = vmul.f32 %v4118_v7, %v8041_v11  ;;  %v4141_v4 = vand.u32 2147483647, %v8114_v39  ;;  %v4143_v37 = vand.u32 2147483648, %v8114_v39 }
0x18a3   :  { %v4174_v49 = vsub.f32 1.0, %v4173_v45  ;;  %6502 = vrcp.f32 %v8126_v55  ;;  %v4198_v24 = vadd.f32 0.18741608, %v4197_v31  ;;  %v4240_v41 = vadd.f32 1.1283791, %v4239_v16 }
0x18a4   :  { %v4210_v60 = vmul.f32 %v4209_v0, %v8071_v2  ;;  %v4261_v18 = vand.u32 2147483647, %v8126_v55  ;;  %v4120_v11 = vadd.f32 1.1283791, %v4119_v29  ;;  %vm4142_vm10 = vcmp.eq.f32.partialorder %v4141_v4, 8.507059e+37 }
0x18a5   :  { %v4175_v53 = vmul.f32 %v6499_v40, %v4174_v49  ;;  %vm4257_vm11 = vweird.f32 %v8126_v55  ;;  %v4144_v36 = vor.u32 1.1754944e-38, %v4143_v37  ;;  %v4199_v28 = vmul.f32 %v4198_v24, %v8071_v2  ;;  %v6405_v16 = vld [vmem:[%s8204_s17 + $0x1] ss:$0 sm:$0xff] }
0x18a6   :  { %v6501_v27 = vpop.eup %6500  ;;  %v4211_v34 = vadd.f32 1.0, %v4210_v60  ;;  %vm4262_vm8 = vcmp.eq.f32.partialorder %v4261_v18, 8.507059e+37  ;;  %v4121_v58 = vmul.f32 %v4120_v11, %v8027_v9  ;;  %v4102_v2 = vmul.f32 0.5, %v8008_v17 }
0x18a7   :  { %v4176_v22 = vadd.f32 %v6499_v40, %v4175_v53  ;;  %v4133_v23 = vmul.f32 %v6501_v27, %v8114_v39  ;;  %vm4138_vm4 = vweird.f32 %v6501_v27  ;;  %v4241_v39 = vmul.f32 %v4240_v41, %v8035_v14 }
0x18a8   :  { %6504 = vrcp.f32 %v4211_v34  ;;  %vm8154_vm6 = vmor %vm4137_vm3, %vm4138_vm4  ;;  %v4104_v14 = vmul.f32 0.5, %v8024_v8  ;;  %vm4217_vm12 = vweird.f32 %v4211_v34  ;;  %v4101_v17 = vmul.f32 0.5, %v8017_v3 }
0x18a9   :  { %v4134_v61 = vsub.f32 1.0, %v4133_v23  ;;  %v4180_v56 = vsel %vm4179_vm1, %v6499_v40, %v4176_v22  ;;  %v6503_v13 = vpop.eup %6502  ;;  %v4263_v40 = vand.u32 2147483648, %v8126_v55  ;;  %v4223_v22 = vand.u32 2147483648, %v4211_v34 }
0x18aa   :  { %v4185_v15 = vsel %vm4182_vm2, %v4184_v1, %v4180_v56  ;;  %v4253_v19 = vmul.f32 %v6503_v13, %v8126_v55  ;;  %vm4258_vm5 = vweird.f32 %v6503_v13  ;;  %v4200_v55 = vadd.f32 1.1283791, %v4199_v28 }
0x18ab   :  { %v4135_v10 = vmul.f32 %v6501_v27, %v4134_v61  ;;  %v4186_v38 = vmul.f32 %v4185_v15, %v4161_v25  ;;  %vm4259_vm7 = vmor %vm4257_vm11, %vm4258_vm5  ;;  %v4264_v49 = vor.u32 1.1754944e-38, %v4263_v40  ;;  %v4224_v61 = vor.u32 1.1754944e-38, %v4223_v22  ;;  %v6406_v22 = vld [vmem:[%s8205_s18 + $0x1] ss:$0 sm:$0xff] }
0x18ac   :  { %v4254_v30 = vsub.f32 1.0, %v4253_v19  ;;  %v4201_v9 = vmul.f32 %v4200_v55, %v8056_v35  ;;  %v4103_v8 = vmul.f32 0.5, %v8045_v26  ;;  %vm4500_vm5 = vcmask 1041409  }
0x18ad   :  { %v4136_v5 = vadd.f32 %v6501_v27, %v4135_v10  ;;  %v5994_v20 = vclamps-f32 %v4186_v38, 1.0 }
0x18ae   :  { %v4255_v42 = vmul.f32 %v6503_v13, %v4254_v30  ;;  %v6505_v50 = vpop.eup %6504 }
0x18af   :  { %v4140_v45 = vsel %vm8154_vm6, %v6501_v27, %v4136_v5  ;;  %v4213_v54 = vmul.f32 %v6505_v50, %v4211_v34  ;;  %v4270_v33 = vadd.f32 1.0, %v5994_v20  ;;  %v4221_v27 = vand.u32 2147483647, %v4211_v34 }
0x18b0   :  { %v4256_v46 = vadd.f32 %v6503_v13, %v4255_v42  ;;  %v4145_v53 = vsel %vm4142_vm10, %v4144_v36, %v4140_v45  ;;  %vm4218_vm9 = vweird.f32 %v6505_v50 }
0x18b1   :  { %v4214_v62 = vsub.f32 1.0, %v4213_v54  ;;  %v4146_v63 = vmul.f32 %v4145_v53, %v4121_v58  ;;  %v4274_v0 = vmul.f32 %v4270_v33, %v4102_v2  ;;  %vm4219_vm13 = vmor %vm4217_vm12, %vm4218_vm9  ;;  %vm4222_vm14 = vcmp.eq.f32.partialorder %v4221_v27, 8.507059e+37 }
0x18b2   :  { %v4260_v51 = vsel %vm4259_vm7, %v6503_v13, %v4256_v46 }
0x18b3   :  { %v4265_v57 = vsel %vm4262_vm8, %v4264_v49, %v4260_v51  ;;  %v4215_v23 = vmul.f32 %v6505_v50, %v4214_v62  ;;  %v5993_v32 = vclamps-f32 %v4146_v63, 1.0 }
0x18b4   :  { %v4266_v59 = vmul.f32 %v4265_v57, %v4241_v39 }
0x18b5   :  { %v4216_v21 = vadd.f32 %v6505_v50, %v4215_v23  ;;  %v4269_v10 = vadd.f32 1.0, %v5993_v32 }
0x18b6   :  { %v5996_v47 = vclamps-f32 %v4266_v59, 1.0 }
0x18b7   :  { %v4220_v56 = vsel %vm4219_vm13, %v6505_v50, %v4216_v21  ;;  %v4273_v34 = vmul.f32 %v4269_v10, %v4101_v17 }
0x18b8   :  { %v4272_v44 = vadd.f32 1.0, %v5996_v47  ;;  %v4225_v7 = vsel %vm4222_vm14, %v4224_v61, %v4220_v56 }
0x18b9   :  { %v4226_v1 = vmul.f32 %v4225_v7, %v4201_v9 }
0x18ba   :  { %v4276_v6 = vmul.f32 %v4272_v44, %v4104_v14  ;;  %v6407_v14 = vld [vmem:[%s8206_s19 + $0x1] ss:$0 sm:$0xff] }
0x18bb   :  { %v5995_v13 = vclamps-f32 %v4226_v1, 1.0 }
0x18bc   :  { %v4311_v60 = vpack.c.bf16 %v4276_v6, %v4274_v0 }
0x18bd   :  { %v4271_v31 = vadd.f32 1.0, %v5995_v13 }
0x18be   :  { %4435 = vmatmul.bf16.vlgmr.msra.gmra.mxu2 %v4311_v60 }
0x18bf   :  { %v4275_v15 = vmul.f32 %v4271_v31, %v4103_v8 }
0x18c1   :  { %v4310_v35 = vpack.c.bf16 %v4275_v15, %v4273_v34 }
0x18c3   :  { %4421 = vmatmul.bf16.vlgmr.msrb.gmra.mxu1 %v4310_v35 }
0x1940   :  { %v4422_v19 = vpop.f32.mrf.mxu1 }
0x1941   :  { %v4436_v25 = vpop.f32.mrf.mxu2  ;;  %v4423_v29 = vadd.f32 %v6405_v16, %v4422_v19 }
0x1943   :  { %v4437_v5 = vadd.f32 %v4436_v25, %v4423_v29 }
0x1945   :  { %v4441_v4 = vadd.f32 %v4437_v5, %v7999_v48 }
0x1947   :  { %4447 = vadd.xlane.f32.xlu1 %v4441_v4 }
0x1948   :  { %v4424_v30 = vpop.f32.mrf.mxu1 }
0x1949   :  { %v4425_v3 = vadd.f32 %v6405_v16, %v4424_v30  ;;  %v4438_v38 = vpop.f32.mrf.mxu2 }
0x194b   :  { %v4439_v26 = vadd.f32 %v4438_v38, %v4425_v3 }
0x194d   :  { %v4442_v37 = vadd.f32 %v4439_v26, %v8001_v52 }
0x194f   :  { %4449 = vadd.xlane.f32.xlu0 %v4442_v37 }
0x19ba   :  { %v4448_v40 = vpop.xlane.xlu1 %4447 }
0x19bb   :  { %v4451_v24 = vmul.f32 %v4448_v40, %v6661_v12 }
0x19bd   :  { %v4453_v41 = vsub.f32 %v4441_v4, %v4451_v24 }
0x19bf   :  { %v4455_v42 = vmul.f32 %v4453_v41, %v4453_v41 }
0x19c1   :  { %4457 = vadd.xlane.f32.xlu0 %v4455_v42 }
0x19c2   :  { %v4450_v18 = vpop.xlane.xlu0 %4449 }
0x19c3   :  { %v4452_v11 = vmul.f32 %v4450_v18, %v6661_v12 }
0x19c5   :  { %v4454_v43 = vsub.f32 %v4442_v37, %v4452_v11 }
0x19c7   :  { %v4456_v45 = vmul.f32 %v4454_v43, %v4454_v43 }
0x19c9   :  { %4459 = vadd.xlane.f32.xlu2 %v4456_v45 }
0x1a34   :  { %v4458_v48 = vpop.xlane.xlu0 %4457 }
0x1a35   :  { %v4461_v46 = vmul.f32 %v4458_v48, %v6661_v12 }
0x1a37   :  { %v4463_v50 = vadd.f32 1e-12, %v4461_v46 }
0x1a39   :  { %6506 = vrsqrt.f32 %v4463_v50  ;;  %vm4471_vm0 = vweird.f32 %v4463_v50 }
0x1a3c   :  { %v4460_v20 = vpop.xlane.xlu2 %4459 }
0x1a3d   :  { %v4462_v52 = vmul.f32 %v4460_v20, %v6661_v12 }
0x1a3f   :  { %v6507_v36 = vpop.eup %6506  ;;  %v4464_v49 = vadd.f32 1e-12, %v4462_v52 }
0x1a40   :  { %v4466_v28 = vmul.f32 %v6507_v36, %v4463_v50  ;;  %vm4472_vm15 = vweird.f32 %v6507_v36 }
0x1a41   :  { %6508 = vrsqrt.f32 %v4464_v49  ;;  %vm4473_vm1 = vmor %vm4471_vm0, %vm4472_vm15  ;;  %vm4481_vm3 = vweird.f32 %v4464_v49 }
0x1a42   :  { %v4467_v39 = vmul.f32 %v6507_v36, %v4466_v28 }
0x1a44   :  { %v4468_v51 = vmul.f32 0.5, %v4467_v39 }
0x1a46   :  { %v4469_v54 = vsub.f32 1.5, %v4468_v51 }
0x1a47   :  { %v6509_v53 = vpop.eup %6508 }
0x1a48   :  { %v4476_v57 = vmul.f32 %v6509_v53, %v4464_v49  ;;  %v4470_v58 = vmul.f32 %v6507_v36, %v4469_v54  ;;  %vm4482_vm2 = vweird.f32 %v6509_v53 }
0x1a49   :  { %vm4483_vm4 = vmor %vm4481_vm3, %vm4482_vm2 }
0x1a4a   :  { %v4477_v59 = vmul.f32 %v6509_v53, %v4476_v57  ;;  %v4474_v33 = vsel %vm4473_vm1, %v6507_v36, %v4470_v58 }
0x1a4b   :  { %v4485_v12 = vmul.f32 %v4474_v33, %v4453_v41 }
0x1a4c   :  { %v4478_v62 = vmul.f32 0.5, %v4477_v59 }
0x1a4d   :  { %v4490_v23 = vmul.f32 %v6406_v22, %v4485_v12 }
0x1a4e   :  { %v4479_v55 = vsub.f32 1.5, %v4478_v62 }
0x1a4f   :  { %v4495_v21 = vadd.f32 %v6407_v14, %v4490_v23 }
0x1a50   :  { %v4480_v27 = vmul.f32 %v6509_v53, %v4479_v55 }
0x1a52   :  { %v4484_v63 = vsel %vm4483_vm4, %v6509_v53, %v4480_v27 }
0x1a53   :  { %v4486_v47 = vmul.f32 %v4484_v63, %v4454_v43 }
0x1a55   :  { %v4491_v2 = vmul.f32 %v6406_v22, %v4486_v47 }
0x1a57   :  { %v4496_v44 = vadd.f32 %v6407_v14, %v4491_v2 }
0x1a59   :  { %v4499_v0 = vrot.slane %v4496_v44, 7 }
0x1a5b   :  { %v4501_v9 = vsel %vm4500_vm5, %v4499_v0, %v4495_v21 }
0x1a5c   :  { %4503 = vst [vmem:[#allocation2] sm:$0x3] %v4501_v9 }
0x1a5d   :  { %4514 = dma.vmem_to_hbm [thread:$0]  %s4510_s22, 32, %s4512_s8, [#allocation3]  }
0x1a5e   :  { %6534 = dma.done.wait [#allocation3], 32  }
0x1a5f   :  { %6535 = vsyncadd [#allocation3], 4294967264 }
0x1a60   :  { %4519 = vsyncpa [#allocation3], 1 }

</bundles_post_ra>
